<compile_context>
chip_gen: v6e
topology: v6e:2x2x1
jax: 0.10.0
libtpu: 0.0.40
codegen_flags: <defaults>
</compile_context>

<pallas_src>
import functools

import jax
import jax.numpy as jnp
import numpy as np
from jax.experimental import pallas as pl
from jax.experimental.pallas import tpu as pltpu


# ----------------------------------------------------------------------------
# Static parameter preprocessing (host-side, one-time).
# ----------------------------------------------------------------------------
def _make_upsample_pad_matrix(t_in: int, t_up: int, t_target: int) -> jnp.ndarray:
    """Ut (t_target, t_in): Ut @ x reproduces torch Upsample(linear, x2,
    align_corners=True) along time followed by F.pad(diff//2, diff-diff//2)."""
    U = np.zeros((t_up, t_in), dtype=np.float64)
    if t_in == 1:
        U[:, 0] = 1.0
    else:
        scale = (t_in - 1) / (t_up - 1)
        for j in range(t_up):
            src = j * scale
            i0 = min(int(np.floor(src)), t_in - 1)
            i1 = min(i0 + 1, t_in - 1)
            frac = src - i0
            U[j, i0] += 1.0 - frac
            U[j, i1] += frac
    diff = t_target - t_up
    pad_l = diff // 2                       # matches torch tensor // semantics
    Ut = np.zeros((t_target, t_in), dtype=np.float64)
    for t in range(t_target):
        s = t - pad_l
        if 0 <= s < t_up:
            Ut[t] = U[s]
    return jnp.asarray(Ut, dtype=jnp.float32)


def _band_conv_weights(w, V: int) -> jnp.ndarray:
    """(Cout, Cin, 5, 5) torch conv weight -> (5*Cin*V, Cout*V) bf16 matrix.

    Activation lane layout is c*V + v with NO lane halo: the node (width)
    zero-padding of the conv is folded in by dropping out-of-range dx taps.
    The 5 per-dy bands are stacked along K so each conv is a single matmul
    against a dy-im2col LHS.
    """
    w = np.asarray(w, dtype=np.float32)
    Cout, Cin, KH, KW = w.shape
    K = Cin * V
    Wb = np.zeros((KH, K, Cout * V), dtype=np.float32)
    ci = np.arange(Cin)
    co = np.arange(Cout)
    for dy in range(KH):
        for dx in range(KW):
            blk = w[:, :, dy, dx].T                      # (Cin, Cout)
            for v in range(V):
                u = v + dx - 2                           # input node index
                if 0 <= u < V:                           # else: zero padding
                    Wb[dy][np.ix_(ci * V + u, co * V + v)] = blk
    return jnp.asarray(Wb.reshape(KH * K, Cout * V), dtype=jnp.bfloat16)


def _lane_vec(per_channel, V: int) -> jnp.ndarray:
    """Broadcast per-channel scale/shift onto the (c, v) lane layout."""
    c = np.asarray(per_channel, dtype=np.float32)
    return jnp.asarray(np.repeat(c, V)[None, :])         # (1, Cout*V), f32


def prepare_params(params, t1: int, t2: int, V: int):
    """Fold BN, band/stack the conv weights (bf16) and build the
    upsample+pad matrix."""
    p1, p2 = params["conv1"], params["conv2"]
    return {
        "ut":  _make_upsample_pad_matrix(t1, 2 * t1, t2),     # (T2, T1) f32
        "w1b": _band_conv_weights(p1["w"], V),                # (5*Cin*V, Cout*V)
        "s1":  _lane_vec(p1["scale"], V),
        "b1":  _lane_vec(p1["shift"], V),
        "w2b": _band_conv_weights(p2["w"], V),                # (5*Cout*V, Cout*V)
        "s2":  _lane_vec(p2["scale"], V),
        "b2":  _lane_vec(p2["shift"], V),
    }


# ----------------------------------------------------------------------------
# Fused kernel: upsample + pad + concat + conv1/BN/ReLU + conv2/BN/ReLU.
# One grid step processes `nb` batch samples.
# ----------------------------------------------------------------------------
def _up_fused_kernel(x1_ref, x2_ref, ut_ref, w1_ref, s1_ref, b1_ref,
                     w2_ref, s2_ref, b2_ref, o_ref,
                     xpad1, col1, xpad2, col2, *, nb, t2, kh):
    # x1_ref : (nb, T1, C1*V)  f32   lane layout (c1, v)
    # x2_ref : (nb, T2, C2*V)  f32   lane layout (c2, v)
    # ut_ref : (T2, T1)        f32   upsample(linear,x2,align_corners)+pad
    # w1_ref : (5*Cin*V, Cout*V) bf16 dy-stacked banded conv1 weights
    # w2_ref : (5*Cout*V, Cout*V) bf16 dy-stacked banded conv2 weights
    # s*/b*  : (1, Cout*V)     f32   folded BN scale/shift
    # o_ref  : (nb, T2, Cout*V) f32  lane-dense output, layout (co, v)
    # xpad1/2: bf16 scratch, nb sample blocks of (T2+4) rows (2+2 time halos)
    # col1/2 : bf16 dy-im2col scratch, (M, 5*K) with M = nb*(T2+4)-4
    srow = t2 + 4                   # rows per sample incl. 2+2 time halo rows
    rows = nb * srow                # total xpad rows
    m = rows - 4                    # conv matmul M (buffer rows [2, rows-2))
    k1 = xpad1.shape[1]             # Cin*V  (conv1 contraction lanes per dy)
    k2 = xpad2.shape[1]             # Cout*V (conv2 contraction lanes per dy)
    c2v = x2_ref.shape[2]           # C2*V
    c1v = x1_ref.shape[2]           # C1*V

    # ---- stage 1: upsample x1 (time), channel-concat with x2, scatter ------
    # Only the time-halo rows are re-zeroed (valid rows are fully overwritten
    # every step); no full-buffer memset, and no program_id gating (megacore
    # safe).
    xpad1[pl.ds(0, 2), :] = jnp.zeros((2, k1), jnp.bfloat16)
    xpad1[pl.ds(rows - 2, 2), :] = jnp.zeros((2, k1), jnp.bfloat16)
    for s in range(1, nb):
        xpad1[pl.ds(s * srow - 2, 4), :] = jnp.zeros((4, k1), jnp.bfloat16)

    for s in range(nb):
        # Upsample(linear, x2, align_corners=True) + F.pad as one small matmul
        # over the whole (T1, C1*V) lane-dense slab of this sample.
        up_s = jnp.dot(ut_ref[...], x1_ref[s],
                       preferred_element_type=jnp.float32)      # (T2, C1*V)
        r0 = s * srow + 2
        # cat([x2, x1], dim=1): x2 channels first -> lanes [0, C2*V), then x1.
        xpad1[pl.ds(r0, t2), pl.ds(0, c2v)] = x2_ref[s].astype(jnp.bfloat16)
        xpad1[pl.ds(r0, t2), pl.ds(c2v, c1v)] = up_s.astype(jnp.bfloat16)

    # ---- stage 2: conv1 (5x5, pad 2) + BN(eval) + ReLU ----------------------
    # dy-im2col: 5 time-shifted slabs stacked along K -> ONE matmul
    # (M, 5*Cin*V) @ (5*Cin*V, Cout*V) with bf16 operands, f32 accumulation.
    for dy in range(kh):
        col1[:, pl.ds(dy * k1, k1)] = xpad1[pl.ds(dy, m), :]
    acc1 = jnp.dot(col1[...], w1_ref[...], preferred_element_type=jnp.float32)
    y1 = jnp.maximum(acc1 * s1_ref[...] + b1_ref[...], 0.0)

    # One wide store of the activation, then re-zero the halo rows that the
    # wide store filled with cross-sample garbage.
    xpad2[pl.ds(2, m), :] = y1.astype(jnp.bfloat16)
    xpad2[pl.ds(0, 2), :] = jnp.zeros((2, k2), jnp.bfloat16)
    xpad2[pl.ds(rows - 2, 2), :] = jnp.zeros((2, k2), jnp.bfloat16)
    for s in range(1, nb):
        xpad2[pl.ds(s * srow - 2, 4), :] = jnp.zeros((4, k2), jnp.bfloat16)

    # ---- stage 3: conv2 (5x5, pad 2) + BN(eval) + ReLU ----------------------
    for dy in range(kh):
        col2[:, pl.ds(dy * k2, k2)] = xpad2[pl.ds(dy, m), :]
    acc2 = jnp.dot(col2[...], w2_ref[...], preferred_element_type=jnp.float32)
    out = jnp.maximum(acc2 * s2_ref[...] + b2_ref[...], 0.0)

    # Lane-dense (co, v) output; extract each sample's valid rows (full
    # 128-lane stores).
    for s in range(nb):
        o_ref[s] = out[s * srow:s * srow + t2, :].astype(o_ref.dtype)


def _choose_samples_per_step(n: int, t2: int) -> int:
    # Target M >= ~128 conv rows per step, but keep >= 2 grid steps whenever
    # possible so v7x's two TensorCores both get work (no-op on v5e/v6e).
    target = max(1, -(-128 // t2))
    return max(1, min(target, -(-n // 2)))


@jax.jit
def up_forward(x1, x2, prep):
    """x1 (N,C1,T1,V), x2 (N,C2,T2,V) NCHW -> (N, T2, Cout*V) lane-dense
    output with lane layout (cout, v).  Use `lane_dense_to_nchw` if the
    consumer needs the module's NCHW layout (extra HBM round-trip)."""
    n, c1, t1, v = x1.shape
    _, c2, t2, _ = x2.shape
    cin = c1 + c2
    coutv = prep["w2b"].shape[1]
    kh = prep["w1b"].shape[0] // (cin * v)

    nb = _choose_samples_per_step(n, t2)
    g = -(-n // nb)
    n_pad = g * nb
    if n_pad != n:
        x1 = jnp.pad(x1, ((0, n_pad - n), (0, 0), (0, 0), (0, 0)))
        x2 = jnp.pad(x2, ((0, n_pad - n), (0, 0), (0, 0), (0, 0)))

    # Wrapper-side layout plumbing (inputs are tiny): lane-dense (c, v) slabs
    # so stage 1 issues wide aligned stores instead of per-channel 16-lane
    # masked stores.
    x1r = jnp.transpose(x1, (0, 2, 1, 3)).reshape(n_pad, t1, c1 * v)
    x2r = jnp.transpose(x2, (0, 2, 1, 3)).reshape(n_pad, t2, c2 * v)

    srow = t2 + 4
    kernel = functools.partial(_up_fused_kernel, nb=nb, t2=t2, kh=kh)

    out = pl.pallas_call(
        kernel,
        out_shape=jax.ShapeDtypeStruct((n_pad, t2, coutv), jnp.float32),
        grid=(g,),
        in_specs=[
            pl.BlockSpec((nb, t1, c1 * v), lambda i: (i, 0, 0)),
            pl.BlockSpec((nb, t2, c2 * v), lambda i: (i, 0, 0)),
            pl.BlockSpec((t2, t1), lambda i: (0, 0)),
            # Constant-index weight / BN blocks stay VMEM-resident across the
            # grid (bf16 weights ~160 KiB each at these channel counts).
            # TODO(synk): at production channel counts single-buffer these
            # (pipeline_mode=pl.Buffered(1)) or tile Cout over a grid axis so
            # the banded weights fit v7x's 64 MiB VMEM.
            pl.BlockSpec((kh * cin * v, coutv), lambda i: (0, 0)),
            pl.BlockSpec((1, coutv), lambda i: (0, 0)),
            pl.BlockSpec((1, coutv), lambda i: (0, 0)),
            pl.BlockSpec((kh * coutv, coutv), lambda i: (0, 0)),
            pl.BlockSpec((1, coutv), lambda i: (0, 0)),
            pl.BlockSpec((1, coutv), lambda i: (0, 0)),
        ],
        out_specs=pl.BlockSpec((nb, t2, coutv), lambda i: (i, 0, 0)),
        scratch_shapes=[
            pltpu.VMEM((nb * srow, cin * v), jnp.bfloat16),             # xpad1
            pltpu.VMEM((nb * srow - 4, kh * cin * v), jnp.bfloat16),    # col1
            pltpu.VMEM((nb * srow, coutv), jnp.bfloat16),               # xpad2
            pltpu.VMEM((nb * srow - 4, kh * coutv), jnp.bfloat16),      # col2
        ],
        compiler_params=pltpu.CompilerParams(
            dimension_semantics=("parallel",),
            vmem_limit_bytes=32 * 1024 * 1024),
    )(x1r, x2r, prep["ut"], prep["w1b"], prep["s1"], prep["b1"],
      prep["w2b"], prep["s2"], prep["b2"])

    return out[:n]


def lane_dense_to_nchw(out_ld, cout: int, v: int):
    """Optional layout change to the module's NCHW output.  This is a separate
    XLA op with an extra HBM round-trip; fuse into the consumer instead when
    possible."""
    n, t2, _ = out_ld.shape
    return jnp.transpose(out_ld.reshape(n, t2, cout, v), (0, 2, 1, 3))


# ----------------------------------------------------------------------------
# Synthetic parameters (deterministic) with conv bias + eval-mode BatchNorm
# folded into per-channel (scale, shift).
# ----------------------------------------------------------------------------
def make_params(key, in_channels, out_channels):
    eps = 1e-5

    def conv_block(k, cin, cout):
        k1, k2, k3, k4, k5, k6 = jax.random.split(k, 6)
        bound = 1.0 / np.sqrt(cin * 25)
        w = jax.random.uniform(k1, (cout, cin, 5, 5), jnp.float32, -bound, bound)
        b = jax.random.uniform(k2, (cout,), jnp.float32, -bound, bound)
        gamma = jax.random.uniform(k3, (cout,), jnp.float32, 0.5, 1.5)
        beta = jax.random.uniform(k4, (cout,), jnp.float32, -0.1, 0.1)
        mean = jax.random.uniform(k5, (cout,), jnp.float32, -0.1, 0.1)
        var = jax.random.uniform(k6, (cout,), jnp.float32, 0.5, 1.5)
        inv_std = 1.0 / jnp.sqrt(var + eps)
        scale = gamma * inv_std
        shift = beta + scale * (b - mean)
        return {"w": w, "scale": scale, "shift": shift}

    k1, k2 = jax.random.split(key)
    return {"conv1": conv_block(k1, in_channels, out_channels),
            "conv2": conv_block(k2, out_channels, out_channels)}


# ----------------------------------------------------------------------------
# Dense float64 reference (host-side) for a sanity check of the fused kernel.
# ----------------------------------------------------------------------------
def _reference_forward(x1, x2, params):
    x1 = np.asarray(x1, np.float64)
    x2 = np.asarray(x2, np.float64)
    N, C1, T1, V = x1.shape
    T2 = x2.shape[2]
    Ut = np.asarray(_make_upsample_pad_matrix(T1, 2 * T1, T2), np.float64)
    x1u = np.einsum("st,nctv->ncsv", Ut, x1)
    x = np.concatenate([x2, x1u], axis=1)
    for name in ("conv1", "conv2"):
        p = params[name]
        w = np.asarray(p["w"], np.float64)
        scale = np.asarray(p["scale"], np.float64)
        shift = np.asarray(p["shift"], np.float64)
        Cout = w.shape[0]
        T, Vv = x.shape[2], x.shape[3]
        xp = np.pad(x, ((0, 0), (0, 0), (2, 2), (2, 2)))
        out = np.zeros((N, Cout, T, Vv))
        for dy in range(5):
            for dx in range(5):
                out += np.einsum("oi,nitv->notv", w[:, :, dy, dx],
                                 xp[:, :, dy:dy + T, dx:dx + Vv])
        x = np.maximum(out * scale[None, :, None, None]
                       + shift[None, :, None, None], 0.0)
    return x


if __name__ == "__main__":
    key = jax.random.PRNGKey(0)
    k_x1, k_x2, k_p = jax.random.split(key, 3)

    # x1: (N, C1, T1, V), x2: (N, C2, 2*T1, V); in_channels = C1 + C2.
    # N=16 so the per-step sample batching kicks in (nb=8, grid=2, M=156).
    N, C1, C2, T1, V = 16, 4, 4, 8, 16
    T2 = 2 * T1
    in_channels, out_channels = C1 + C2, 8

    x1 = jax.random.normal(k_x1, (N, C1, T1, V), dtype=jnp.float32)
    x2 = jax.random.normal(k_x2, (N, C2, T2, V), dtype=jnp.float32)
    params = make_params(k_p, in_channels, out_channels)
    prep = prepare_params(params, T1, T2, V)

    out_ld = up_forward(x1, x2, prep)               # (N, T2, Cout*V) lane-dense
    jax.block_until_ready(out_ld)
    assert out_ld.shape == (N, T2, out_channels * V), out_ld.shape

    # Module-shape view (optional extra transpose, see lane_dense_to_nchw doc).
    out_nchw = lane_dense_to_nchw(out_ld, out_channels, V)
    assert out_nchw.shape == (N, out_channels, T2, V), out_nchw.shape

    # Numerical check vs. dense float64 reference.  Tolerance is bf16-class:
    # matmul operands are bf16 with f32 accumulation (matches TPU default
    # matmul precision for f32 operands).
    ref = _reference_forward(x1, x2, params)                     # (N,Cout,T2,V)
    ref_ld = ref.transpose(0, 2, 1, 3).reshape(N, T2, out_channels * V)
    got = np.asarray(out_ld, np.float64)
    ok = np.abs(got - ref_ld) <= 5e-2 + 5e-2 * np.abs(ref_ld)
    assert ok.all(), f"max abs err vs reference: {np.max(np.abs(got - ref_ld))}"

    print("KERNEL_OK")
</pallas_src>

<mosaic_0001>
module attributes {stable_mosaic.version = 11 : i64} {
  func.func @_up_fused_kernel(%arg0: i32, %arg1: memref<8x8x64xf32, #tpu.memory_space<vmem>>, %arg2: memref<8x16x64xf32, #tpu.memory_space<vmem>>, %arg3: memref<16x8xf32, #tpu.memory_space<vmem>>, %arg4: memref<640x128xbf16, #tpu.memory_space<vmem>>, %arg5: memref<1x128xf32, #tpu.memory_space<vmem>>, %arg6: memref<1x128xf32, #tpu.memory_space<vmem>>, %arg7: memref<640x128xbf16, #tpu.memory_space<vmem>>, %arg8: memref<1x128xf32, #tpu.memory_space<vmem>>, %arg9: memref<1x128xf32, #tpu.memory_space<vmem>>, %arg10: memref<8x16x128xf32, #tpu.memory_space<vmem>>, %arg11: memref<160x128xbf16, #tpu.memory_space<vmem>>, %arg12: memref<156x640xbf16, #tpu.memory_space<vmem>>, %arg13: memref<160x128xbf16, #tpu.memory_space<vmem>>, %arg14: memref<156x640xbf16, #tpu.memory_space<vmem>>) attributes {dimension_semantics = [#tpu.dimension_semantics<parallel>], iteration_bounds = array<i64: 2>, scalar_prefetch = 0 : i64, scratch_operands = 4 : i64, tpu.core_type = #tpu.core_type<tc>, window_params = [{transform_indices = @transform_0, window_bounds = array<i64: 8, 8, 64>}, {transform_indices = @transform_1, window_bounds = array<i64: 8, 16, 64>}, {pipeline_mode = #tpu.pipeline_mode<synchronous>, transform_indices = @transform_2, window_bounds = array<i64: 16, 8>}, {pipeline_mode = #tpu.pipeline_mode<synchronous>, transform_indices = @transform_3, window_bounds = array<i64: 640, 128>}, {pipeline_mode = #tpu.pipeline_mode<synchronous>, transform_indices = @transform_4, window_bounds = array<i64: 1, 128>}, {pipeline_mode = #tpu.pipeline_mode<synchronous>, transform_indices = @transform_5, window_bounds = array<i64: 1, 128>}, {pipeline_mode = #tpu.pipeline_mode<synchronous>, transform_indices = @transform_6, window_bounds = array<i64: 640, 128>}, {pipeline_mode = #tpu.pipeline_mode<synchronous>, transform_indices = @transform_7, window_bounds = array<i64: 1, 128>}, {pipeline_mode = #tpu.pipeline_mode<synchronous>, transform_indices = @transform_8, window_bounds = array<i64: 1, 128>}, {transform_indices = @transform_9, window_bounds = array<i64: 8, 16, 128>}]} {
    %cst = arith.constant 0.000000e+00 : bf16
    %0 = vector.broadcast %cst : bf16 to vector<2x128xbf16>
    %c0 = arith.constant 0 : index
    %c0_0 = arith.constant 0 : index
    %1 = vector.load %arg11[%c0, %c0_0] : memref<160x128xbf16, #tpu.memory_space<vmem>>, vector<2x128xbf16>
    tpu.vector_store %arg11[%c0, %c0_0], %0 {strides = array<i32>} : memref<160x128xbf16, #tpu.memory_space<vmem>>, vector<2x128xbf16>,
    %cst_1 = arith.constant 0.000000e+00 : bf16
    %2 = vector.broadcast %cst_1 : bf16 to vector<2x128xbf16>
    %c158 = arith.constant 158 : index
    %c0_2 = arith.constant 0 : index
    %3 = vector.load %arg11[%c158, %c0_2] : memref<160x128xbf16, #tpu.memory_space<vmem>>, vector<2x128xbf16>
    tpu.vector_store %arg11[%c158, %c0_2], %2 {strides = array<i32>} : memref<160x128xbf16, #tpu.memory_space<vmem>>, vector<2x128xbf16>,
    %cst_3 = arith.constant 0.000000e+00 : bf16
    %4 = vector.broadcast %cst_3 : bf16 to vector<4x128xbf16>
    %c18 = arith.constant 18 : index
    %c0_4 = arith.constant 0 : index
    %5 = vector.load %arg11[%c18, %c0_4] : memref<160x128xbf16, #tpu.memory_space<vmem>>, vector<4x128xbf16>
    tpu.vector_store %arg11[%c18, %c0_4], %4 {strides = array<i32>} : memref<160x128xbf16, #tpu.memory_space<vmem>>, vector<4x128xbf16>,
    %cst_5 = arith.constant 0.000000e+00 : bf16
    %6 = vector.broadcast %cst_5 : bf16 to vector<4x128xbf16>
    %c38 = arith.constant 38 : index
    %c0_6 = arith.constant 0 : index
    %7 = vector.load %arg11[%c38, %c0_6] : memref<160x128xbf16, #tpu.memory_space<vmem>>, vector<4x128xbf16>
    tpu.vector_store %arg11[%c38, %c0_6], %6 {strides = array<i32>} : memref<160x128xbf16, #tpu.memory_space<vmem>>, vector<4x128xbf16>,
    %cst_7 = arith.constant 0.000000e+00 : bf16
    %8 = vector.broadcast %cst_7 : bf16 to vector<4x128xbf16>
    %c58 = arith.constant 58 : index
    %c0_8 = arith.constant 0 : index
    %9 = vector.load %arg11[%c58, %c0_8] : memref<160x128xbf16, #tpu.memory_space<vmem>>, vector<4x128xbf16>
    tpu.vector_store %arg11[%c58, %c0_8], %8 {strides = array<i32>} : memref<160x128xbf16, #tpu.memory_space<vmem>>, vector<4x128xbf16>,
    %cst_9 = arith.constant 0.000000e+00 : bf16
    %10 = vector.broadcast %cst_9 : bf16 to vector<4x128xbf16>
    %c78 = arith.constant 78 : index
    %c0_10 = arith.constant 0 : index
    %11 = vector.load %arg11[%c78, %c0_10] : memref<160x128xbf16, #tpu.memory_space<vmem>>, vector<4x128xbf16>
    tpu.vector_store %arg11[%c78, %c0_10], %10 {strides = array<i32>} : memref<160x128xbf16, #tpu.memory_space<vmem>>, vector<4x128xbf16>,
    %cst_11 = arith.constant 0.000000e+00 : bf16
    %12 = vector.broadcast %cst_11 : bf16 to vector<4x128xbf16>
    %c98 = arith.constant 98 : index
    %c0_12 = arith.constant 0 : index
    %13 = vector.load %arg11[%c98, %c0_12] : memref<160x128xbf16, #tpu.memory_space<vmem>>, vector<4x128xbf16>
    tpu.vector_store %arg11[%c98, %c0_12], %12 {strides = array<i32>} : memref<160x128xbf16, #tpu.memory_space<vmem>>, vector<4x128xbf16>,
    %cst_13 = arith.constant 0.000000e+00 : bf16
    %14 = vector.broadcast %cst_13 : bf16 to vector<4x128xbf16>
    %c118 = arith.constant 118 : index
    %c0_14 = arith.constant 0 : index
    %15 = vector.load %arg11[%c118, %c0_14] : memref<160x128xbf16, #tpu.memory_space<vmem>>, vector<4x128xbf16>
    tpu.vector_store %arg11[%c118, %c0_14], %14 {strides = array<i32>} : memref<160x128xbf16, #tpu.memory_space<vmem>>, vector<4x128xbf16>,
    %cst_15 = arith.constant 0.000000e+00 : bf16
    %16 = vector.broadcast %cst_15 : bf16 to vector<4x128xbf16>
    %c138 = arith.constant 138 : index
    %c0_16 = arith.constant 0 : index
    %17 = vector.load %arg11[%c138, %c0_16] : memref<160x128xbf16, #tpu.memory_space<vmem>>, vector<4x128xbf16>
    tpu.vector_store %arg11[%c138, %c0_16], %16 {strides = array<i32>} : memref<160x128xbf16, #tpu.memory_space<vmem>>, vector<4x128xbf16>,
    %c0_17 = arith.constant 0 : index
    %c0_18 = arith.constant 0 : index
    %18 = vector.load %arg3[%c0_17, %c0_18] : memref<16x8xf32, #tpu.memory_space<vmem>>, vector<16x8xf32>
    %c0_19 = arith.constant 0 : index
    %c0_20 = arith.constant 0 : index
    %c0_21 = arith.constant 0 : index
    %19 = vector.load %arg1[%c0_19, %c0_20, %c0_21] : memref<8x8x64xf32, #tpu.memory_space<vmem>>, vector<1x8x64xf32>
    %20 = vector.shape_cast %19 : vector<1x8x64xf32> to vector<8x64xf32>
    %cst_22 = arith.constant dense<0.000000e+00> : vector<16x64xf32>
    %21 = tpu.matmul %18, %20, %cst_22 {dimension_numbers = #tpu.dot_dimension_numbers<[1], [0], [0], [1], [0, 0, 1, 1], [], []>} : vector<16x8xf32>, vector<8x64xf32>, vector<16x64xf32> -> vector<16x64xf32>
    %c0_23 = arith.constant 0 : index
    %c0_24 = arith.constant 0 : index
    %c0_25 = arith.constant 0 : index
    %22 = vector.load %arg2[%c0_23, %c0_24, %c0_25] : memref<8x16x64xf32, #tpu.memory_space<vmem>>, vector<1x16x64xf32>
    %23 = vector.shape_cast %22 : vector<1x16x64xf32> to vector<16x64xf32>
    %24 = arith.truncf %23 : vector<16x64xf32> to vector<16x64xbf16>
    %c2 = arith.constant 2 : index
    %c0_26 = arith.constant 0 : index
    %25 = vector.load %arg11[%c2, %c0_26] : memref<160x128xbf16, #tpu.memory_space<vmem>>, vector<16x64xbf16>
    tpu.vector_store %arg11[%c2, %c0_26], %24 {strides = array<i32>} : memref<160x128xbf16, #tpu.memory_space<vmem>>, vector<16x64xbf16>,
    %26 = arith.truncf %21 : vector<16x64xf32> to vector<16x64xbf16>
    %c2_27 = arith.constant 2 : index
    %c64 = arith.constant 64 : index
    %27 = vector.load %arg11[%c2_27, %c64] : memref<160x128xbf16, #tpu.memory_space<vmem>>, vector<16x64xbf16>
    tpu.vector_store %arg11[%c2_27, %c64], %26 {strides = array<i32>} : memref<160x128xbf16, #tpu.memory_space<vmem>>, vector<16x64xbf16>,
    %c0_28 = arith.constant 0 : index
    %c0_29 = arith.constant 0 : index
    %28 = vector.load %arg3[%c0_28, %c0_29] : memref<16x8xf32, #tpu.memory_space<vmem>>, vector<16x8xf32>
    %c1 = arith.constant 1 : index
    %c0_30 = arith.constant 0 : index
    %c0_31 = arith.constant 0 : index
    %29 = vector.load %arg1[%c1, %c0_30, %c0_31] : memref<8x8x64xf32, #tpu.memory_space<vmem>>, vector<1x8x64xf32>
    %30 = vector.shape_cast %29 : vector<1x8x64xf32> to vector<8x64xf32>
    %cst_32 = arith.constant dense<0.000000e+00> : vector<16x64xf32>
    %31 = tpu.matmul %28, %30, %cst_32 {dimension_numbers = #tpu.dot_dimension_numbers<[1], [0], [0], [1], [0, 0, 1, 1], [], []>} : vector<16x8xf32>, vector<8x64xf32>, vector<16x64xf32> -> vector<16x64xf32>
    %c1_33 = arith.constant 1 : index
    %c0_34 = arith.constant 0 : index
    %c0_35 = arith.constant 0 : index
    %32 = vector.load %arg2[%c1_33, %c0_34, %c0_35] : memref<8x16x64xf32, #tpu.memory_space<vmem>>, vector<1x16x64xf32>
    %33 = vector.shape_cast %32 : vector<1x16x64xf32> to vector<16x64xf32>
    %34 = arith.truncf %33 : vector<16x64xf32> to vector<16x64xbf16>
    %c22 = arith.constant 22 : index
    %c0_36 = arith.constant 0 : index
    %35 = vector.load %arg11[%c22, %c0_36] : memref<160x128xbf16, #tpu.memory_space<vmem>>, vector<16x64xbf16>
    tpu.vector_store %arg11[%c22, %c0_36], %34 {strides = array<i32>} : memref<160x128xbf16, #tpu.memory_space<vmem>>, vector<16x64xbf16>,
    %36 = arith.truncf %31 : vector<16x64xf32> to vector<16x64xbf16>
    %c22_37 = arith.constant 22 : index
    %c64_38 = arith.constant 64 : index
    %37 = vector.load %arg11[%c22_37, %c64_38] : memref<160x128xbf16, #tpu.memory_space<vmem>>, vector<16x64xbf16>
    tpu.vector_store %arg11[%c22_37, %c64_38], %36 {strides = array<i32>} : memref<160x128xbf16, #tpu.memory_space<vmem>>, vector<16x64xbf16>,
    %c0_39 = arith.constant 0 : index
    %c0_40 = arith.constant 0 : index
    %38 = vector.load %arg3[%c0_39, %c0_40] : memref<16x8xf32, #tpu.memory_space<vmem>>, vector<16x8xf32>
    %c2_41 = arith.constant 2 : index
    %c0_42 = arith.constant 0 : index
    %c0_43 = arith.constant 0 : index
    %39 = vector.load %arg1[%c2_41, %c0_42, %c0_43] : memref<8x8x64xf32, #tpu.memory_space<vmem>>, vector<1x8x64xf32>
    %40 = vector.shape_cast %39 : vector<1x8x64xf32> to vector<8x64xf32>
    %cst_44 = arith.constant dense<0.000000e+00> : vector<16x64xf32>
    %41 = tpu.matmul %38, %40, %cst_44 {dimension_numbers = #tpu.dot_dimension_numbers<[1], [0], [0], [1], [0, 0, 1, 1], [], []>} : vector<16x8xf32>, vector<8x64xf32>, vector<16x64xf32> -> vector<16x64xf32>
    %c2_45 = arith.constant 2 : index
    %c0_46 = arith.constant 0 : index
    %c0_47 = arith.constant 0 : index
    %42 = vector.load %arg2[%c2_45, %c0_46, %c0_47] : memref<8x16x64xf32, #tpu.memory_space<vmem>>, vector<1x16x64xf32>
    %43 = vector.shape_cast %42 : vector<1x16x64xf32> to vector<16x64xf32>
    %44 = arith.truncf %43 : vector<16x64xf32> to vector<16x64xbf16>
    %c42 = arith.constant 42 : index
    %c0_48 = arith.constant 0 : index
    %45 = vector.load %arg11[%c42, %c0_48] : memref<160x128xbf16, #tpu.memory_space<vmem>>, vector<16x64xbf16>
    tpu.vector_store %arg11[%c42, %c0_48], %44 {strides = array<i32>} : memref<160x128xbf16, #tpu.memory_space<vmem>>, vector<16x64xbf16>,
    %46 = arith.truncf %41 : vector<16x64xf32> to vector<16x64xbf16>
    %c42_49 = arith.constant 42 : index
    %c64_50 = arith.constant 64 : index
    %47 = vector.load %arg11[%c42_49, %c64_50] : memref<160x128xbf16, #tpu.memory_space<vmem>>, vector<16x64xbf16>
    tpu.vector_store %arg11[%c42_49, %c64_50], %46 {strides = array<i32>} : memref<160x128xbf16, #tpu.memory_space<vmem>>, vector<16x64xbf16>,
    %c0_51 = arith.constant 0 : index
    %c0_52 = arith.constant 0 : index
    %48 = vector.load %arg3[%c0_51, %c0_52] : memref<16x8xf32, #tpu.memory_space<vmem>>, vector<16x8xf32>
    %c3 = arith.constant 3 : index
    %c0_53 = arith.constant 0 : index
    %c0_54 = arith.constant 0 : index
    %49 = vector.load %arg1[%c3, %c0_53, %c0_54] : memref<8x8x64xf32, #tpu.memory_space<vmem>>, vector<1x8x64xf32>
    %50 = vector.shape_cast %49 : vector<1x8x64xf32> to vector<8x64xf32>
    %cst_55 = arith.constant dense<0.000000e+00> : vector<16x64xf32>
    %51 = tpu.matmul %48, %50, %cst_55 {dimension_numbers = #tpu.dot_dimension_numbers<[1], [0], [0], [1], [0, 0, 1, 1], [], []>} : vector<16x8xf32>, vector<8x64xf32>, vector<16x64xf32> -> vector<16x64xf32>
    %c3_56 = arith.constant 3 : index
    %c0_57 = arith.constant 0 : index
    %c0_58 = arith.constant 0 : index
    %52 = vector.load %arg2[%c3_56, %c0_57, %c0_58] : memref<8x16x64xf32, #tpu.memory_space<vmem>>, vector<1x16x64xf32>
    %53 = vector.shape_cast %52 : vector<1x16x64xf32> to vector<16x64xf32>
    %54 = arith.truncf %53 : vector<16x64xf32> to vector<16x64xbf16>
    %c62 = arith.constant 62 : index
    %c0_59 = arith.constant 0 : index
    %55 = vector.load %arg11[%c62, %c0_59] : memref<160x128xbf16, #tpu.memory_space<vmem>>, vector<16x64xbf16>
    tpu.vector_store %arg11[%c62, %c0_59], %54 {strides = array<i32>} : memref<160x128xbf16, #tpu.memory_space<vmem>>, vector<16x64xbf16>,
    %56 = arith.truncf %51 : vector<16x64xf32> to vector<16x64xbf16>
    %c62_60 = arith.constant 62 : index
    %c64_61 = arith.constant 64 : index
    %57 = vector.load %arg11[%c62_60, %c64_61] : memref<160x128xbf16, #tpu.memory_space<vmem>>, vector<16x64xbf16>
    tpu.vector_store %arg11[%c62_60, %c64_61], %56 {strides = array<i32>} : memref<160x128xbf16, #tpu.memory_space<vmem>>, vector<16x64xbf16>,
    %c0_62 = arith.constant 0 : index
    %c0_63 = arith.constant 0 : index
    %58 = vector.load %arg3[%c0_62, %c0_63] : memref<16x8xf32, #tpu.memory_space<vmem>>, vector<16x8xf32>
    %c4 = arith.constant 4 : index
    %c0_64 = arith.constant 0 : index
    %c0_65 = arith.constant 0 : index
    %59 = vector.load %arg1[%c4, %c0_64, %c0_65] : memref<8x8x64xf32, #tpu.memory_space<vmem>>, vector<1x8x64xf32>
    %60 = vector.shape_cast %59 : vector<1x8x64xf32> to vector<8x64xf32>
    %cst_66 = arith.constant dense<0.000000e+00> : vector<16x64xf32>
    %61 = tpu.matmul %58, %60, %cst_66 {dimension_numbers = #tpu.dot_dimension_numbers<[1], [0], [0], [1], [0, 0, 1, 1], [], []>} : vector<16x8xf32>, vector<8x64xf32>, vector<16x64xf32> -> vector<16x64xf32>
    %c4_67 = arith.constant 4 : index
    %c0_68 = arith.constant 0 : index
    %c0_69 = arith.constant 0 : index
    %62 = vector.load %arg2[%c4_67, %c0_68, %c0_69] : memref<8x16x64xf32, #tpu.memory_space<vmem>>, vector<1x16x64xf32>
    %63 = vector.shape_cast %62 : vector<1x16x64xf32> to vector<16x64xf32>
    %64 = arith.truncf %63 : vector<16x64xf32> to vector<16x64xbf16>
    %c82 = arith.constant 82 : index
    %c0_70 = arith.constant 0 : index
    %65 = vector.load %arg11[%c82, %c0_70] : memref<160x128xbf16, #tpu.memory_space<vmem>>, vector<16x64xbf16>
    tpu.vector_store %arg11[%c82, %c0_70], %64 {strides = array<i32>} : memref<160x128xbf16, #tpu.memory_space<vmem>>, vector<16x64xbf16>,
    %66 = arith.truncf %61 : vector<16x64xf32> to vector<16x64xbf16>
    %c82_71 = arith.constant 82 : index
    %c64_72 = arith.constant 64 : index
    %67 = vector.load %arg11[%c82_71, %c64_72] : memref<160x128xbf16, #tpu.memory_space<vmem>>, vector<16x64xbf16>
    tpu.vector_store %arg11[%c82_71, %c64_72], %66 {strides = array<i32>} : memref<160x128xbf16, #tpu.memory_space<vmem>>, vector<16x64xbf16>,
    %c0_73 = arith.constant 0 : index
    %c0_74 = arith.constant 0 : index
    %68 = vector.load %arg3[%c0_73, %c0_74] : memref<16x8xf32, #tpu.memory_space<vmem>>, vector<16x8xf32>
    %c5 = arith.constant 5 : index
    %c0_75 = arith.constant 0 : index
    %c0_76 = arith.constant 0 : index
    %69 = vector.load %arg1[%c5, %c0_75, %c0_76] : memref<8x8x64xf32, #tpu.memory_space<vmem>>, vector<1x8x64xf32>
    %70 = vector.shape_cast %69 : vector<1x8x64xf32> to vector<8x64xf32>
    %cst_77 = arith.constant dense<0.000000e+00> : vector<16x64xf32>
    %71 = tpu.matmul %68, %70, %cst_77 {dimension_numbers = #tpu.dot_dimension_numbers<[1], [0], [0], [1], [0, 0, 1, 1], [], []>} : vector<16x8xf32>, vector<8x64xf32>, vector<16x64xf32> -> vector<16x64xf32>
    %c5_78 = arith.constant 5 : index
    %c0_79 = arith.constant 0 : index
    %c0_80 = arith.constant 0 : index
    %72 = vector.load %arg2[%c5_78, %c0_79, %c0_80] : memref<8x16x64xf32, #tpu.memory_space<vmem>>, vector<1x16x64xf32>
    %73 = vector.shape_cast %72 : vector<1x16x64xf32> to vector<16x64xf32>
    %74 = arith.truncf %73 : vector<16x64xf32> to vector<16x64xbf16>
    %c102 = arith.constant 102 : index
    %c0_81 = arith.constant 0 : index
    %75 = vector.load %arg11[%c102, %c0_81] : memref<160x128xbf16, #tpu.memory_space<vmem>>, vector<16x64xbf16>
    tpu.vector_store %arg11[%c102, %c0_81], %74 {strides = array<i32>} : memref<160x128xbf16, #tpu.memory_space<vmem>>, vector<16x64xbf16>,
    %76 = arith.truncf %71 : vector<16x64xf32> to vector<16x64xbf16>
    %c102_82 = arith.constant 102 : index
    %c64_83 = arith.constant 64 : index
    %77 = vector.load %arg11[%c102_82, %c64_83] : memref<160x128xbf16, #tpu.memory_space<vmem>>, vector<16x64xbf16>
    tpu.vector_store %arg11[%c102_82, %c64_83], %76 {strides = array<i32>} : memref<160x128xbf16, #tpu.memory_space<vmem>>, vector<16x64xbf16>,
    %c0_84 = arith.constant 0 : index
    %c0_85 = arith.constant 0 : index
    %78 = vector.load %arg3[%c0_84, %c0_85] : memref<16x8xf32, #tpu.memory_space<vmem>>, vector<16x8xf32>
    %c6 = arith.constant 6 : index
    %c0_86 = arith.constant 0 : index
    %c0_87 = arith.constant 0 : index
    %79 = vector.load %arg1[%c6, %c0_86, %c0_87] : memref<8x8x64xf32, #tpu.memory_space<vmem>>, vector<1x8x64xf32>
    %80 = vector.shape_cast %79 : vector<1x8x64xf32> to vector<8x64xf32>
    %cst_88 = arith.constant dense<0.000000e+00> : vector<16x64xf32>
    %81 = tpu.matmul %78, %80, %cst_88 {dimension_numbers = #tpu.dot_dimension_numbers<[1], [0], [0], [1], [0, 0, 1, 1], [], []>} : vector<16x8xf32>, vector<8x64xf32>, vector<16x64xf32> -> vector<16x64xf32>
    %c6_89 = arith.constant 6 : index
    %c0_90 = arith.constant 0 : index
    %c0_91 = arith.constant 0 : index
    %82 = vector.load %arg2[%c6_89, %c0_90, %c0_91] : memref<8x16x64xf32, #tpu.memory_space<vmem>>, vector<1x16x64xf32>
    %83 = vector.shape_cast %82 : vector<1x16x64xf32> to vector<16x64xf32>
    %84 = arith.truncf %83 : vector<16x64xf32> to vector<16x64xbf16>
    %c122 = arith.constant 122 : index
    %c0_92 = arith.constant 0 : index
    %85 = vector.load %arg11[%c122, %c0_92] : memref<160x128xbf16, #tpu.memory_space<vmem>>, vector<16x64xbf16>
    tpu.vector_store %arg11[%c122, %c0_92], %84 {strides = array<i32>} : memref<160x128xbf16, #tpu.memory_space<vmem>>, vector<16x64xbf16>,
    %86 = arith.truncf %81 : vector<16x64xf32> to vector<16x64xbf16>
    %c122_93 = arith.constant 122 : index
    %c64_94 = arith.constant 64 : index
    %87 = vector.load %arg11[%c122_93, %c64_94] : memref<160x128xbf16, #tpu.memory_space<vmem>>, vector<16x64xbf16>
    tpu.vector_store %arg11[%c122_93, %c64_94], %86 {strides = array<i32>} : memref<160x128xbf16, #tpu.memory_space<vmem>>, vector<16x64xbf16>,
    %c0_95 = arith.constant 0 : index
    %c0_96 = arith.constant 0 : index
    %88 = vector.load %arg3[%c0_95, %c0_96] : memref<16x8xf32, #tpu.memory_space<vmem>>, vector<16x8xf32>
    %c7 = arith.constant 7 : index
    %c0_97 = arith.constant 0 : index
    %c0_98 = arith.constant 0 : index
    %89 = vector.load %arg1[%c7, %c0_97, %c0_98] : memref<8x8x64xf32, #tpu.memory_space<vmem>>, vector<1x8x64xf32>
    %90 = vector.shape_cast %89 : vector<1x8x64xf32> to vector<8x64xf32>
    %cst_99 = arith.constant dense<0.000000e+00> : vector<16x64xf32>
    %91 = tpu.matmul %88, %90, %cst_99 {dimension_numbers = #tpu.dot_dimension_numbers<[1], [0], [0], [1], [0, 0, 1, 1], [], []>} : vector<16x8xf32>, vector<8x64xf32>, vector<16x64xf32> -> vector<16x64xf32>
    %c7_100 = arith.constant 7 : index
    %c0_101 = arith.constant 0 : index
    %c0_102 = arith.constant 0 : index
    %92 = vector.load %arg2[%c7_100, %c0_101, %c0_102] : memref<8x16x64xf32, #tpu.memory_space<vmem>>, vector<1x16x64xf32>
    %93 = vector.shape_cast %92 : vector<1x16x64xf32> to vector<16x64xf32>
    %94 = arith.truncf %93 : vector<16x64xf32> to vector<16x64xbf16>
    %c142 = arith.constant 142 : index
    %c0_103 = arith.constant 0 : index
    %95 = vector.load %arg11[%c142, %c0_103] : memref<160x128xbf16, #tpu.memory_space<vmem>>, vector<16x64xbf16>
    tpu.vector_store %arg11[%c142, %c0_103], %94 {strides = array<i32>} : memref<160x128xbf16, #tpu.memory_space<vmem>>, vector<16x64xbf16>,
    %96 = arith.truncf %91 : vector<16x64xf32> to vector<16x64xbf16>
    %c142_104 = arith.constant 142 : index
    %c64_105 = arith.constant 64 : index
    %97 = vector.load %arg11[%c142_104, %c64_105] : memref<160x128xbf16, #tpu.memory_space<vmem>>, vector<16x64xbf16>
    tpu.vector_store %arg11[%c142_104, %c64_105], %96 {strides = array<i32>} : memref<160x128xbf16, #tpu.memory_space<vmem>>, vector<16x64xbf16>,
    %c0_106 = arith.constant 0 : index
    %c0_107 = arith.constant 0 : index
    %98 = vector.load %arg11[%c0_106, %c0_107] : memref<160x128xbf16, #tpu.memory_space<vmem>>, vector<156x128xbf16>
    %c0_108 = arith.constant 0 : index
    %c0_109 = arith.constant 0 : index
    %99 = vector.load %arg12[%c0_108, %c0_109] : memref<156x640xbf16, #tpu.memory_space<vmem>>, vector<156x128xbf16>
    tpu.vector_store %arg12[%c0_108, %c0_109], %98 {strides = array<i32>} : memref<156x640xbf16, #tpu.memory_space<vmem>>, vector<156x128xbf16>,
    %c1_110 = arith.constant 1 : index
    %c0_111 = arith.constant 0 : index
    %100 = vector.load %arg11[%c1_110, %c0_111] : memref<160x128xbf16, #tpu.memory_space<vmem>>, vector<156x128xbf16>
    %c0_112 = arith.constant 0 : index
    %c128 = arith.constant 128 : index
    %101 = vector.load %arg12[%c0_112, %c128] : memref<156x640xbf16, #tpu.memory_space<vmem>>, vector<156x128xbf16>
    tpu.vector_store %arg12[%c0_112, %c128], %100 {strides = array<i32>} : memref<156x640xbf16, #tpu.memory_space<vmem>>, vector<156x128xbf16>,
    %c2_113 = arith.constant 2 : index
    %c0_114 = arith.constant 0 : index
    %102 = vector.load %arg11[%c2_113, %c0_114] : memref<160x128xbf16, #tpu.memory_space<vmem>>, vector<156x128xbf16>
    %c0_115 = arith.constant 0 : index
    %c256 = arith.constant 256 : index
    %103 = vector.load %arg12[%c0_115, %c256] : memref<156x640xbf16, #tpu.memory_space<vmem>>, vector<156x128xbf16>
    tpu.vector_store %arg12[%c0_115, %c256], %102 {strides = array<i32>} : memref<156x640xbf16, #tpu.memory_space<vmem>>, vector<156x128xbf16>,
    %c3_116 = arith.constant 3 : index
    %c0_117 = arith.constant 0 : index
    %104 = vector.load %arg11[%c3_116, %c0_117] : memref<160x128xbf16, #tpu.memory_space<vmem>>, vector<156x128xbf16>
    %c0_118 = arith.constant 0 : index
    %c384 = arith.constant 384 : index
    %105 = vector.load %arg12[%c0_118, %c384] : memref<156x640xbf16, #tpu.memory_space<vmem>>, vector<156x128xbf16>
    tpu.vector_store %arg12[%c0_118, %c384], %104 {strides = array<i32>} : memref<156x640xbf16, #tpu.memory_space<vmem>>, vector<156x128xbf16>,
    %c4_119 = arith.constant 4 : index
    %c0_120 = arith.constant 0 : index
    %106 = vector.load %arg11[%c4_119, %c0_120] : memref<160x128xbf16, #tpu.memory_space<vmem>>, vector<156x128xbf16>
    %c0_121 = arith.constant 0 : index
    %c512 = arith.constant 512 : index
    %107 = vector.load %arg12[%c0_121, %c512] : memref<156x640xbf16, #tpu.memory_space<vmem>>, vector<156x128xbf16>
    tpu.vector_store %arg12[%c0_121, %c512], %106 {strides = array<i32>} : memref<156x640xbf16, #tpu.memory_space<vmem>>, vector<156x128xbf16>,
    %c0_122 = arith.constant 0 : index
    %c0_123 = arith.constant 0 : index
    %108 = vector.load %arg12[%c0_122, %c0_123] : memref<156x640xbf16, #tpu.memory_space<vmem>>, vector<156x640xbf16>
    %c0_124 = arith.constant 0 : index
    %c0_125 = arith.constant 0 : index
    %109 = vector.load %arg4[%c0_124, %c0_125] : memref<640x128xbf16, #tpu.memory_space<vmem>>, vector<640x128xbf16>
    %cst_126 = arith.constant dense<0.000000e+00> : vector<156x128xf32>
    %110 = tpu.matmul %108, %109, %cst_126 {dimension_numbers = #tpu.dot_dimension_numbers<[1], [0], [0], [1], [0, 0, 1, 1], [], []>} : vector<156x640xbf16>, vector<640x128xbf16>, vector<156x128xf32> -> vector<156x128xf32>
    %c0_127 = arith.constant 0 : index
    %c0_128 = arith.constant 0 : index
    %111 = vector.load %arg5[%c0_127, %c0_128] : memref<1x128xf32, #tpu.memory_space<vmem>>, vector<1x128xf32>
    %112 = vector.broadcast %111 : vector<1x128xf32> to vector<156x128xf32>
    %113 = arith.mulf %110, %112 : vector<156x128xf32>
    %c0_129 = arith.constant 0 : index
    %c0_130 = arith.constant 0 : index
    %114 = vector.load %arg6[%c0_129, %c0_130] : memref<1x128xf32, #tpu.memory_space<vmem>>, vector<1x128xf32>
    %115 = vector.broadcast %114 : vector<1x128xf32> to vector<156x128xf32>
    %116 = arith.addf %113, %115 : vector<156x128xf32>
    %cst_131 = arith.constant 0.000000e+00 : f32
    %117 = vector.broadcast %cst_131 : f32 to vector<156x128xf32>
    %118 = arith.maximumf %116, %117 : vector<156x128xf32>
    %119 = arith.truncf %118 : vector<156x128xf32> to vector<156x128xbf16>
    %c2_132 = arith.constant 2 : index
    %c0_133 = arith.constant 0 : index
    %120 = vector.load %arg13[%c2_132, %c0_133] : memref<160x128xbf16, #tpu.memory_space<vmem>>, vector<156x128xbf16>
    tpu.vector_store %arg13[%c2_132, %c0_133], %119 {strides = array<i32>} : memref<160x128xbf16, #tpu.memory_space<vmem>>, vector<156x128xbf16>,
    %cst_134 = arith.constant 0.000000e+00 : bf16
    %121 = vector.broadcast %cst_134 : bf16 to vector<2x128xbf16>
    %c0_135 = arith.constant 0 : index
    %c0_136 = arith.constant 0 : index
    %122 = vector.load %arg13[%c0_135, %c0_136] : memref<160x128xbf16, #tpu.memory_space<vmem>>, vector<2x128xbf16>
    tpu.vector_store %arg13[%c0_135, %c0_136], %121 {strides = array<i32>} : memref<160x128xbf16, #tpu.memory_space<vmem>>, vector<2x128xbf16>,
    %cst_137 = arith.constant 0.000000e+00 : bf16
    %123 = vector.broadcast %cst_137 : bf16 to vector<2x128xbf16>
    %c158_138 = arith.constant 158 : index
    %c0_139 = arith.constant 0 : index
    %124 = vector.load %arg13[%c158_138, %c0_139] : memref<160x128xbf16, #tpu.memory_space<vmem>>, vector<2x128xbf16>
    tpu.vector_store %arg13[%c158_138, %c0_139], %123 {strides = array<i32>} : memref<160x128xbf16, #tpu.memory_space<vmem>>, vector<2x128xbf16>,
    %cst_140 = arith.constant 0.000000e+00 : bf16
    %125 = vector.broadcast %cst_140 : bf16 to vector<4x128xbf16>
    %c18_141 = arith.constant 18 : index
    %c0_142 = arith.constant 0 : index
    %126 = vector.load %arg13[%c18_141, %c0_142] : memref<160x128xbf16, #tpu.memory_space<vmem>>, vector<4x128xbf16>
    tpu.vector_store %arg13[%c18_141, %c0_142], %125 {strides = array<i32>} : memref<160x128xbf16, #tpu.memory_space<vmem>>, vector<4x128xbf16>,
    %cst_143 = arith.constant 0.000000e+00 : bf16
    %127 = vector.broadcast %cst_143 : bf16 to vector<4x128xbf16>
    %c38_144 = arith.constant 38 : index
    %c0_145 = arith.constant 0 : index
    %128 = vector.load %arg13[%c38_144, %c0_145] : memref<160x128xbf16, #tpu.memory_space<vmem>>, vector<4x128xbf16>
    tpu.vector_store %arg13[%c38_144, %c0_145], %127 {strides = array<i32>} : memref<160x128xbf16, #tpu.memory_space<vmem>>, vector<4x128xbf16>,
    %cst_146 = arith.constant 0.000000e+00 : bf16
    %129 = vector.broadcast %cst_146 : bf16 to vector<4x128xbf16>
    %c58_147 = arith.constant 58 : index
    %c0_148 = arith.constant 0 : index
    %130 = vector.load %arg13[%c58_147, %c0_148] : memref<160x128xbf16, #tpu.memory_space<vmem>>, vector<4x128xbf16>
    tpu.vector_store %arg13[%c58_147, %c0_148], %129 {strides = array<i32>} : memref<160x128xbf16, #tpu.memory_space<vmem>>, vector<4x128xbf16>,
    %cst_149 = arith.constant 0.000000e+00 : bf16
    %131 = vector.broadcast %cst_149 : bf16 to vector<4x128xbf16>
    %c78_150 = arith.constant 78 : index
    %c0_151 = arith.constant 0 : index
    %132 = vector.load %arg13[%c78_150, %c0_151] : memref<160x128xbf16, #tpu.memory_space<vmem>>, vector<4x128xbf16>
    tpu.vector_store %arg13[%c78_150, %c0_151], %131 {strides = array<i32>} : memref<160x128xbf16, #tpu.memory_space<vmem>>, vector<4x128xbf16>,
    %cst_152 = arith.constant 0.000000e+00 : bf16
    %133 = vector.broadcast %cst_152 : bf16 to vector<4x128xbf16>
    %c98_153 = arith.constant 98 : index
    %c0_154 = arith.constant 0 : index
    %134 = vector.load %arg13[%c98_153, %c0_154] : memref<160x128xbf16, #tpu.memory_space<vmem>>, vector<4x128xbf16>
    tpu.vector_store %arg13[%c98_153, %c0_154], %133 {strides = array<i32>} : memref<160x128xbf16, #tpu.memory_space<vmem>>, vector<4x128xbf16>,
    %cst_155 = arith.constant 0.000000e+00 : bf16
    %135 = vector.broadcast %cst_155 : bf16 to vector<4x128xbf16>
    %c118_156 = arith.constant 118 : index
    %c0_157 = arith.constant 0 : index
    %136 = vector.load %arg13[%c118_156, %c0_157] : memref<160x128xbf16, #tpu.memory_space<vmem>>, vector<4x128xbf16>
    tpu.vector_store %arg13[%c118_156, %c0_157], %135 {strides = array<i32>} : memref<160x128xbf16, #tpu.memory_space<vmem>>, vector<4x128xbf16>,
    %cst_158 = arith.constant 0.000000e+00 : bf16
    %137 = vector.broadcast %cst_158 : bf16 to vector<4x128xbf16>
    %c138_159 = arith.constant 138 : index
    %c0_160 = arith.constant 0 : index
    %138 = vector.load %arg13[%c138_159, %c0_160] : memref<160x128xbf16, #tpu.memory_space<vmem>>, vector<4x128xbf16>
    tpu.vector_store %arg13[%c138_159, %c0_160], %137 {strides = array<i32>} : memref<160x128xbf16, #tpu.memory_space<vmem>>, vector<4x128xbf16>,
    %c0_161 = arith.constant 0 : index
    %c0_162 = arith.constant 0 : index
    %139 = vector.load %arg13[%c0_161, %c0_162] : memref<160x128xbf16, #tpu.memory_space<vmem>>, vector<156x128xbf16>
    %c0_163 = arith.constant 0 : index
    %c0_164 = arith.constant 0 : index
    %140 = vector.load %arg14[%c0_163, %c0_164] : memref<156x640xbf16, #tpu.memory_space<vmem>>, vector<156x128xbf16>
    tpu.vector_store %arg14[%c0_163, %c0_164], %139 {strides = array<i32>} : memref<156x640xbf16, #tpu.memory_space<vmem>>, vector<156x128xbf16>,
    %c1_165 = arith.constant 1 : index
    %c0_166 = arith.constant 0 : index
    %141 = vector.load %arg13[%c1_165, %c0_166] : memref<160x128xbf16, #tpu.memory_space<vmem>>, vector<156x128xbf16>
    %c0_167 = arith.constant 0 : index
    %c128_168 = arith.constant 128 : index
    %142 = vector.load %arg14[%c0_167, %c128_168] : memref<156x640xbf16, #tpu.memory_space<vmem>>, vector<156x128xbf16>
    tpu.vector_store %arg14[%c0_167, %c128_168], %141 {strides = array<i32>} : memref<156x640xbf16, #tpu.memory_space<vmem>>, vector<156x128xbf16>,
    %c2_169 = arith.constant 2 : index
    %c0_170 = arith.constant 0 : index
    %143 = vector.load %arg13[%c2_169, %c0_170] : memref<160x128xbf16, #tpu.memory_space<vmem>>, vector<156x128xbf16>
    %c0_171 = arith.constant 0 : index
    %c256_172 = arith.constant 256 : index
    %144 = vector.load %arg14[%c0_171, %c256_172] : memref<156x640xbf16, #tpu.memory_space<vmem>>, vector<156x128xbf16>
    tpu.vector_store %arg14[%c0_171, %c256_172], %143 {strides = array<i32>} : memref<156x640xbf16, #tpu.memory_space<vmem>>, vector<156x128xbf16>,
    %c3_173 = arith.constant 3 : index
    %c0_174 = arith.constant 0 : index
    %145 = vector.load %arg13[%c3_173, %c0_174] : memref<160x128xbf16, #tpu.memory_space<vmem>>, vector<156x128xbf16>
    %c0_175 = arith.constant 0 : index
    %c384_176 = arith.constant 384 : index
    %146 = vector.load %arg14[%c0_175, %c384_176] : memref<156x640xbf16, #tpu.memory_space<vmem>>, vector<156x128xbf16>
    tpu.vector_store %arg14[%c0_175, %c384_176], %145 {strides = array<i32>} : memref<156x640xbf16, #tpu.memory_space<vmem>>, vector<156x128xbf16>,
    %c4_177 = arith.constant 4 : index
    %c0_178 = arith.constant 0 : index
    %147 = vector.load %arg13[%c4_177, %c0_178] : memref<160x128xbf16, #tpu.memory_space<vmem>>, vector<156x128xbf16>
    %c0_179 = arith.constant 0 : index
    %c512_180 = arith.constant 512 : index
    %148 = vector.load %arg14[%c0_179, %c512_180] : memref<156x640xbf16, #tpu.memory_space<vmem>>, vector<156x128xbf16>
    tpu.vector_store %arg14[%c0_179, %c512_180], %147 {strides = array<i32>} : memref<156x640xbf16, #tpu.memory_space<vmem>>, vector<156x128xbf16>,
    %c0_181 = arith.constant 0 : index
    %c0_182 = arith.constant 0 : index
    %149 = vector.load %arg14[%c0_181, %c0_182] : memref<156x640xbf16, #tpu.memory_space<vmem>>, vector<156x640xbf16>
    %c0_183 = arith.constant 0 : index
    %c0_184 = arith.constant 0 : index
    %150 = vector.load %arg7[%c0_183, %c0_184] : memref<640x128xbf16, #tpu.memory_space<vmem>>, vector<640x128xbf16>
    %cst_185 = arith.constant dense<0.000000e+00> : vector<156x128xf32>
    %151 = tpu.matmul %149, %150, %cst_185 {dimension_numbers = #tpu.dot_dimension_numbers<[1], [0], [0], [1], [0, 0, 1, 1], [], []>} : vector<156x640xbf16>, vector<640x128xbf16>, vector<156x128xf32> -> vector<156x128xf32>
    %c0_186 = arith.constant 0 : index
    %c0_187 = arith.constant 0 : index
    %152 = vector.load %arg8[%c0_186, %c0_187] : memref<1x128xf32, #tpu.memory_space<vmem>>, vector<1x128xf32>
    %153 = vector.broadcast %152 : vector<1x128xf32> to vector<156x128xf32>
    %154 = arith.mulf %151, %153 : vector<156x128xf32>
    %c0_188 = arith.constant 0 : index
    %c0_189 = arith.constant 0 : index
    %155 = vector.load %arg9[%c0_188, %c0_189] : memref<1x128xf32, #tpu.memory_space<vmem>>, vector<1x128xf32>
    %156 = vector.broadcast %155 : vector<1x128xf32> to vector<156x128xf32>
    %157 = arith.addf %154, %156 : vector<156x128xf32>
    %cst_190 = arith.constant 0.000000e+00 : f32
    %158 = vector.broadcast %cst_190 : f32 to vector<156x128xf32>
    %159 = arith.maximumf %157, %158 : vector<156x128xf32>
    %160 = vector.extract_strided_slice %159 {offsets = [0, 0], sizes = [16, 128], strides = [1, 1]} : vector<156x128xf32> to vector<16x128xf32>
    %c0_191 = arith.constant 0 : index
    %c0_192 = arith.constant 0 : index
    %c0_193 = arith.constant 0 : index
    %161 = vector.load %arg10[%c0_191, %c0_192, %c0_193] : memref<8x16x128xf32, #tpu.memory_space<vmem>>, vector<1x16x128xf32>
    %162 = vector.shape_cast %161 : vector<1x16x128xf32> to vector<16x128xf32>
    %163 = vector.shape_cast %160 : vector<16x128xf32> to vector<1x16x128xf32>
    tpu.vector_store %arg10[%c0_191, %c0_192, %c0_193], %163 {strides = array<i32>} : memref<8x16x128xf32, #tpu.memory_space<vmem>>, vector<1x16x128xf32>,
    %164 = vector.extract_strided_slice %159 {offsets = [20, 0], sizes = [16, 128], strides = [1, 1]} : vector<156x128xf32> to vector<16x128xf32>
    %c1_194 = arith.constant 1 : index
    %c0_195 = arith.constant 0 : index
    %c0_196 = arith.constant 0 : index
    %165 = vector.load %arg10[%c1_194, %c0_195, %c0_196] : memref<8x16x128xf32, #tpu.memory_space<vmem>>, vector<1x16x128xf32>
    %166 = vector.shape_cast %165 : vector<1x16x128xf32> to vector<16x128xf32>
    %167 = vector.shape_cast %164 : vector<16x128xf32> to vector<1x16x128xf32>
    tpu.vector_store %arg10[%c1_194, %c0_195, %c0_196], %167 {strides = array<i32>} : memref<8x16x128xf32, #tpu.memory_space<vmem>>, vector<1x16x128xf32>,
    %168 = vector.extract_strided_slice %159 {offsets = [40, 0], sizes = [16, 128], strides = [1, 1]} : vector<156x128xf32> to vector<16x128xf32>
    %c2_197 = arith.constant 2 : index
    %c0_198 = arith.constant 0 : index
    %c0_199 = arith.constant 0 : index
    %169 = vector.load %arg10[%c2_197, %c0_198, %c0_199] : memref<8x16x128xf32, #tpu.memory_space<vmem>>, vector<1x16x128xf32>
    %170 = vector.shape_cast %169 : vector<1x16x128xf32> to vector<16x128xf32>
    %171 = vector.shape_cast %168 : vector<16x128xf32> to vector<1x16x128xf32>
    tpu.vector_store %arg10[%c2_197, %c0_198, %c0_199], %171 {strides = array<i32>} : memref<8x16x128xf32, #tpu.memory_space<vmem>>, vector<1x16x128xf32>,
    %172 = vector.extract_strided_slice %159 {offsets = [60, 0], sizes = [16, 128], strides = [1, 1]} : vector<156x128xf32> to vector<16x128xf32>
    %c3_200 = arith.constant 3 : index
    %c0_201 = arith.constant 0 : index
    %c0_202 = arith.constant 0 : index
    %173 = vector.load %arg10[%c3_200, %c0_201, %c0_202] : memref<8x16x128xf32, #tpu.memory_space<vmem>>, vector<1x16x128xf32>
    %174 = vector.shape_cast %173 : vector<1x16x128xf32> to vector<16x128xf32>
    %175 = vector.shape_cast %172 : vector<16x128xf32> to vector<1x16x128xf32>
    tpu.vector_store %arg10[%c3_200, %c0_201, %c0_202], %175 {strides = array<i32>} : memref<8x16x128xf32, #tpu.memory_space<vmem>>, vector<1x16x128xf32>,
    %176 = vector.extract_strided_slice %159 {offsets = [80, 0], sizes = [16, 128], strides = [1, 1]} : vector<156x128xf32> to vector<16x128xf32>
    %c4_203 = arith.constant 4 : index
    %c0_204 = arith.constant 0 : index
    %c0_205 = arith.constant 0 : index
    %177 = vector.load %arg10[%c4_203, %c0_204, %c0_205] : memref<8x16x128xf32, #tpu.memory_space<vmem>>, vector<1x16x128xf32>
    %178 = vector.shape_cast %177 : vector<1x16x128xf32> to vector<16x128xf32>
    %179 = vector.shape_cast %176 : vector<16x128xf32> to vector<1x16x128xf32>
    tpu.vector_store %arg10[%c4_203, %c0_204, %c0_205], %179 {strides = array<i32>} : memref<8x16x128xf32, #tpu.memory_space<vmem>>, vector<1x16x128xf32>,
    %180 = vector.extract_strided_slice %159 {offsets = [100, 0], sizes = [16, 128], strides = [1, 1]} : vector<156x128xf32> to vector<16x128xf32>
    %c5_206 = arith.constant 5 : index
    %c0_207 = arith.constant 0 : index
    %c0_208 = arith.constant 0 : index
    %181 = vector.load %arg10[%c5_206, %c0_207, %c0_208] : memref<8x16x128xf32, #tpu.memory_space<vmem>>, vector<1x16x128xf32>
    %182 = vector.shape_cast %181 : vector<1x16x128xf32> to vector<16x128xf32>
    %183 = vector.shape_cast %180 : vector<16x128xf32> to vector<1x16x128xf32>
    tpu.vector_store %arg10[%c5_206, %c0_207, %c0_208], %183 {strides = array<i32>} : memref<8x16x128xf32, #tpu.memory_space<vmem>>, vector<1x16x128xf32>,
    %184 = vector.extract_strided_slice %159 {offsets = [120, 0], sizes = [16, 128], strides = [1, 1]} : vector<156x128xf32> to vector<16x128xf32>
    %c6_209 = arith.constant 6 : index
    %c0_210 = arith.constant 0 : index
    %c0_211 = arith.constant 0 : index
    %185 = vector.load %arg10[%c6_209, %c0_210, %c0_211] : memref<8x16x128xf32, #tpu.memory_space<vmem>>, vector<1x16x128xf32>
    %186 = vector.shape_cast %185 : vector<1x16x128xf32> to vector<16x128xf32>
    %187 = vector.shape_cast %184 : vector<16x128xf32> to vector<1x16x128xf32>
    tpu.vector_store %arg10[%c6_209, %c0_210, %c0_211], %187 {strides = array<i32>} : memref<8x16x128xf32, #tpu.memory_space<vmem>>, vector<1x16x128xf32>,
    %188 = vector.extract_strided_slice %159 {offsets = [140, 0], sizes = [16, 128], strides = [1, 1]} : vector<156x128xf32> to vector<16x128xf32>
    %c7_212 = arith.constant 7 : index
    %c0_213 = arith.constant 0 : index
    %c0_214 = arith.constant 0 : index
    %189 = vector.load %arg10[%c7_212, %c0_213, %c0_214] : memref<8x16x128xf32, #tpu.memory_space<vmem>>, vector<1x16x128xf32>
    %190 = vector.shape_cast %189 : vector<1x16x128xf32> to vector<16x128xf32>
    %191 = vector.shape_cast %188 : vector<16x128xf32> to vector<1x16x128xf32>
    tpu.vector_store %arg10[%c7_212, %c0_213, %c0_214], %191 {strides = array<i32>} : memref<8x16x128xf32, #tpu.memory_space<vmem>>, vector<1x16x128xf32>,
    return
  }
  func.func @transform_0(%arg0: i32) -> (i32, i32, i32) {
    %c0_i32 = arith.constant 0 : i32
    %c0_i32_0 = arith.constant 0 : i32
    %c0_i32_1 = arith.constant 0 : i32
    return %arg0, %c0_i32, %c0_i32_0 : i32, i32, i32
  }
  func.func @transform_1(%arg0: i32) -> (i32, i32, i32) {
    %c0_i32 = arith.constant 0 : i32
    %c0_i32_0 = arith.constant 0 : i32
    %c0_i32_1 = arith.constant 0 : i32
    return %arg0, %c0_i32, %c0_i32_0 : i32, i32, i32
  }
  func.func @transform_2(%arg0: i32) -> (i32, i32) {
    %c0_i32 = arith.constant 0 : i32
    %c0_i32_0 = arith.constant 0 : i32
    %c0_i32_1 = arith.constant 0 : i32
    return %c0_i32, %c0_i32_0 : i32, i32
  }
  func.func @transform_3(%arg0: i32) -> (i32, i32) {
    %c0_i32 = arith.constant 0 : i32
    %c0_i32_0 = arith.constant 0 : i32
    %c0_i32_1 = arith.constant 0 : i32
    return %c0_i32, %c0_i32_0 : i32, i32
  }
  func.func @transform_4(%arg0: i32) -> (i32, i32) {
    %c0_i32 = arith.constant 0 : i32
    %c0_i32_0 = arith.constant 0 : i32
    %c0_i32_1 = arith.constant 0 : i32
    return %c0_i32, %c0_i32_0 : i32, i32
  }
  func.func @transform_5(%arg0: i32) -> (i32, i32) {
    %c0_i32 = arith.constant 0 : i32
    %c0_i32_0 = arith.constant 0 : i32
    %c0_i32_1 = arith.constant 0 : i32
    return %c0_i32, %c0_i32_0 : i32, i32
  }
  func.func @transform_6(%arg0: i32) -> (i32, i32) {
    %c0_i32 = arith.constant 0 : i32
    %c0_i32_0 = arith.constant 0 : i32
    %c0_i32_1 = arith.constant 0 : i32
    return %c0_i32, %c0_i32_0 : i32, i32
  }
  func.func @transform_7(%arg0: i32) -> (i32, i32) {
    %c0_i32 = arith.constant 0 : i32
    %c0_i32_0 = arith.constant 0 : i32
    %c0_i32_1 = arith.constant 0 : i32
    return %c0_i32, %c0_i32_0 : i32, i32
  }
  func.func @transform_8(%arg0: i32) -> (i32, i32) {
    %c0_i32 = arith.constant 0 : i32
    %c0_i32_0 = arith.constant 0 : i32
    %c0_i32_1 = arith.constant 0 : i32
    return %c0_i32, %c0_i32_0 : i32, i32
  }
  func.func @transform_9(%arg0: i32) -> (i32, i32, i32) {
    %c0_i32 = arith.constant 0 : i32
    %c0_i32_0 = arith.constant 0 : i32
    %c0_i32_1 = arith.constant 0 : i32
    return %arg0, %c0_i32, %c0_i32_0 : i32, i32, i32
  }
}

</mosaic_0001>

<bundles_post_ra>
// kernel: up_forward.1
= control target key start
LH: loop header
LB: loop body
LE: loop exit
PB: predicated region body
PF: predicated region fallthrough
CT: control target
= control target key end

     0   :  { %14 = vsyncpa [#allocation7], 0  ;;  %s9003_s0 = inlined_call_operand.vmem [shape: f32[16,8,64], index: 0, kind: input, shape index: {}]   ;;  %s9004_s1 = inlined_call_operand.vmem [shape: f32[16,16,64], index: 1, kind: input, shape index: {}]   ;;  %s9005_s2 = inlined_call_operand.vmem [shape: f32[16,8], index: 2, kind: input, shape index: {}]   ;;  %s9006_s3 = inlined_call_operand.vmem [shape: bf16[640,128], index: 3, kind: input, shape index: {}]   ;;  %s9007_s4 = inlined_call_operand.vmem [shape: f32[1,128], index: 4, kind: input, shape index: {}]   ;;  %s9008_s5 = inlined_call_operand.vmem [shape: f32[1,128], index: 5, kind: input, shape index: {}]   ;;  %s9009_s6 = inlined_call_operand.vmem [shape: bf16[640,128], index: 6, kind: input, shape index: {}]   ;;  %s9010_s7 = inlined_call_operand.vmem [shape: f32[1,128], index: 7, kind: input, shape index: {}]   ;;  %s9011_s8 = inlined_call_operand.vmem [shape: f32[1,128], index: 8, kind: input, shape index: {}]   ;;  %s9012_s9 = inlined_call_operand.hbm [shape: f32[16,16,128], index: 9, kind: output, shape index: {}]  }
   0x1   :  { %16 = vsyncpa [#allocation7 + $0x1], 0  ;;  %s6685_s30 = smov 0   ;;  %s6687_s10 = smov 0  }
   0x2   :  { %s6689_s11 = smov 0   ;;  %s6691_s12 = smov 0  }
   0x3 LB: > { %s6706_s13 = sadd.s32 4294967295, %s6628_s12   ;;  %s5484_s14 = sadd.s32 4294967294, %s6628_s12   ;;  %s6628_s12 = sphi %s6691_s12, %s9261_s12   ;;  %s6624_s11 = sphi %s6689_s11, %s9260_s11   ;;  %s6620_s10 = sphi %s6687_s10, %s9259_s10   ;;  %s6616_s30 = sphi %s6685_s30, %s9258_s30  }
   0x4   : > { %s6710_s15 = sadd.s32 1, %s6628_s12   ;;  %s228_s16 = sadd.s32 1, %s6624_s11 }
   0x5   : > { %s225_s17 = ssub.s32 %s6628_s12, %s6710_s15  ;;  %p238_p0 = scmp.ne.s32.totalorder %s6624_s11, %s6620_s10 }
   0x6   : > { %p226_p1 = scmp.eq.s32.totalorder %s225_s17, 0  ;;  %p239_p2 = scmp.eq.s32.totalorder %s6706_s13, 1 }
   0x7   : > { %p244_p3 = scmp.ne.s32.totalorder %s6620_s10, %s6616_s30  ;;  %p245_p4 = scmp.eq.s32.totalorder %s5484_s14, 1 }
   0x8   : > { %s6721_s18 = scalar_select %p226_p1, %s6624_s11, %s228_s16  }
   0x9   : > { %p6723_p5 = por %p239_p2, %p238_p0  ;;  %p6727_p6 = por %p245_p4, %p244_p3 }
   0xa   : > { %p5487_p7 = scmp.ge.s32.totalorder %s6628_s12, 1  ;;  %p303_p8 = scmp.lt.s32.totalorder %s6628_s12, 3 }
   0xc   : > { %p304_p9 = pnand %p5487_p7, %p303_p8 }
   0xe   : > { %307 = sbr.rel (%p304_p9) target bundleno = 1150 (0x47e), region = 56 }
  0x13   : > { %s5489_s21 = sshll.u32 %s6706_s13, 3  ;;  %v372_v0 = vld [vmem:[%s9005_s2] sm:$0xff]  ;;  %vm375_vm0 = vcmask 64512   ;;  %v373_v2 = vld [vmem:[%s9005_s2 + $0x8] sm:$0xff]  ;;  %v6369_v10 = vld [vmem:[%s9006_s3 + $0x78] sm:$0xff]   ;;  %vm480_vm1 = vcmask 516096  }
  0x14   : > { %p346_p10 = scmp.lt.s32.totalorder %s5489_s21, 15  ;;  %6216 = vmatprep.mubr.msk.f32.mxu0 %vm375_vm0, %v372_v0  ;;  %6221 = vmatprep.mubr.msk.f32.mxu1 %vm375_vm0, %v372_v0  ;;  %vm476_vm2 = vcmask 519169   ;;  %v6371_v18 = vld [vmem:[%s9006_s3 + $0xf8] sm:$0xff]   ;;  %vm465_vm3 = vcmask 1040384   ;;  %vm466_vm4 = vcmask 1044484   ;;  %v9013_v19 = vmov 0  }
  0x15   : > { %360 = vst [vmem:[#allocation2] sm:$0x1] %v9013_v19  ;;  %361 = vst [vmem:[#allocation2 + $0x4c] sm:$0x8] %v9013_v19  ;;  %v6370_v21 = vld [vmem:[%s9006_s3 + $0x38] sm:$0xff]   ;;  %v9074_v25 = vmov 0 }
  0x16   : > { %s9263_s21 = smov (!%p346_p10, %s5489_s21), 15  ;;  %362 = vst [vmem:[#allocation2 + $0x8] sm:$0x6] %v9013_v19  ;;  %363 = vst [vmem:[#allocation2 + $0x10] sm:$0x8] %v9013_v19  ;;  %v6372_v22 = vld [vmem:[%s9006_s3 + $0xb8] sm:$0xff]  }
  0x17   : > { %s5490_s24 = sshll.u32 %s9263_s21, 3  ;;  %s5795_s14 = sshll.u32 %s9263_s21, 4  ;;  %364 = vst [vmem:[#allocation2 + $0x14] sm:$0x1] %v9013_v19  ;;  %365 = vst [vmem:[#allocation2 + $0x1c] sm:$0x6] %v9013_v19 }
  0x18   : > { %s349_s27 = scalar_lea.vmem %s9003_s0, %s5490_s24  ;;  %s6766_s22 = scalar_lea.vmem %s9004_s1, %s5795_s14  ;;  %366 = vst [vmem:[#allocation2 + $0x24] sm:$0x8] %v9013_v19  ;;  %367 = vst [vmem:[#allocation2 + $0x28] sm:$0x1] %v9013_v19  ;;  %v6373_v26 = vld [vmem:[%s9006_s3 + $0x70] sm:$0xff]   ;;  %vm613_vm6 = vcmask 519171  }
  0x19   : > { %v374_v1 = vld [vmem:[%s349_s27] sm:$0xff]  ;;  %v5500_v3 = vld [vmem:[%s349_s27 + $0x8] sm:$0xff]  ;;  %v5509_v4 = vld [vmem:[%s349_s27 + $0x10] sm:$0xff]  ;;  %368 = vst [vmem:[#allocation2 + $0x30] sm:$0x6] %v9013_v19  ;;  %vm478_vm7 = vcmask 519168  }
  0x1a   : > { %6214 = vmatprep.subr.mxu0 %v374_v1  ;;  %6219 = vmatprep.subr.mxu1 %v5500_v3  ;;  %v5518_v5 = vld [vmem:[%s349_s27 + $0x18] sm:$0xff]  ;;  %v5527_v6 = vld [vmem:[%s349_s27 + $0x20] sm:$0xff]  ;;  %v5536_v7 = vld [vmem:[%s349_s27 + $0x28] sm:$0xff]  ;;  %369 = vst [vmem:[#allocation2 + $0x38] sm:$0x8] %v9013_v19  ;;  %vm602_vm8 = vcmask 1042432  }
  0x1b   : > { %6215 = vmatpush3.msra.mxu0 %v374_v1  ;;  %6220 = vmatpush3.msra.mxu1 %v5500_v3  ;;  %v5545_v8 = vld [vmem:[%s349_s27 + $0x30] sm:$0xff]  ;;  %v5554_v9 = vld [vmem:[%s349_s27 + $0x38] sm:$0xff]  ;;  %v458_v11 = vld [vmem:[%s6766_s22 + $0x8] sm:$0xff]  ;;  %370 = vst [vmem:[#allocation2 + $0x3c] sm:$0x1] %v9013_v19  ;;  %vm603_vm9 = vcmask 1046532  }
  0x1c   : > { %6217 = vmatmul.mubr.msk.f32.vlgmr.msra.gmra.mxu0 %vm375_vm0, %v373_v2  ;;  %6222 = vmatmul.mubr.msk.f32.vlgmr.msra.gmra.mxu1 %vm375_vm0, %v373_v2  ;;  %v5797_v12 = vpack.c.bf16 %v458_v11, %v458_v11  ;;  %v457_v15 = vld [vmem:[%s6766_s22] sm:$0xff]  ;;  %371 = vst [vmem:[#allocation2 + $0x44] sm:$0x6] %v9013_v19  ;;  %3467 = vst [vmem:[#allocation4] sm:$0x1] %v9013_v19  ;;  %v5503_v23 = vld [vmem:[%s6766_s22 + $0x10] sm:$0xff] }
  0x1d   : > { %6224 = vmatprep.subr.mxu0 %v5509_v4  ;;  %6226 = vmatprep.mubr.msk.f32.mxu0 %vm375_vm0, %v372_v0  ;;  %v5796_v16 = vpack.c.bf16 %v457_v15, %v457_v15  ;;  %3468 = vst [vmem:[#allocation4 + $0x4c] sm:$0x8] %v9013_v19  ;;  %v5800_v24 = vpack.c.bf16 %v5503_v23, %v5503_v23  ;;  %vm6801_vm5 = vmor %vm465_vm3, %vm466_vm4  ;;  %v5504_v32 = vld [vmem:[%s6766_s22 + $0x18] sm:$0xff]  ;;  %v6375_v35 = vld [vmem:[%s9006_s3 + $0xf0] sm:$0xff]   ;;  %s6631_s29 = smov 64   ;;  %vm616_vm10 = vcmask 518144  }
  0x1e   : > { %6225 = vmatpush3.msra.mxu0 %v5509_v4  ;;  %6229 = vmatprep.subr.mxu1 %v5518_v5  ;;  %v470_v13 = vrot.slane %v5797_v12, 7  ;;  %v9075_v25 = vsel %vm6801_vm5, 4294967295, %v9074_v25  ;;  %v5801_v36 = vpack.c.bf16 %v5504_v32, %v5504_v32  ;;  %v6374_v41 = vld [vmem:[%s9006_s3 + $0x30] sm:$0xff]   ;;  %v6377_v50 = vld [vmem:[%s9006_s3 + $0x68] sm:$0xff]   ;;  %vm6835_vm11 = vmor %vm602_vm8, %vm603_vm9  ;;  %v9077_v61 = vmov 0  ;;  %s342_s27 = sand.u32 1, %s6620_s10  }
  0x1f   : > { %6230 = vmatpush3.msra.mxu1 %v5518_v5  ;;  %6231 = vmatprep.mubr.msk.f32.mxu1 %vm375_vm0, %v372_v0  ;;  %v468_v17 = vrot.slane %v5796_v16, 7  ;;  %9076 = vst [vmem:[#allocation9_spill] sm:$0xff] %v9075_v25  ;;  %v6808_v27 = vrot.slane %v5800_v24, 5  ;;  %v6376_v42 = vld [vmem:[%s9006_s3 + $0xb0] sm:$0xff]   ;;  %v9078_v61 = vsel %vm6835_vm11, 4294967295, %v9077_v61  ;;  %v6379_v63 = vld [vmem:[%s9006_s3 + $0xe8] sm:$0xff]  }
  0x20   : > { %6227 = vmatmul.mubr.msk.f32.vlgmr.msra.gmra.mxu0 %vm375_vm0, %v373_v2  ;;  %6232 = vmatmul.mubr.msk.f32.vlgmr.msra.gmra.mxu1 %vm375_vm0, %v373_v2  ;;  %v472_v14 = vrot.slane %v470_v13, 4  ;;  %v607_v45 = vrot.slane %v5801_v36, 5  ;;  %9079 = vst [vmem:[#allocation10_spill] sm:$0xff] %v9078_v61  ;;  %v6378_v3 = vld [vmem:[%s9006_s3 + $0x28] sm:$0xff]   ;;  %v6382_v32 = vld [vmem:[%s9006_s3 + $0x20] sm:$0xff]   ;;  %vm506_vm12 = vcmask 1040896  }
  0x21   : > { %6234 = vmatprep.subr.mxu0 %v5527_v6  ;;  %6236 = vmatprep.mubr.msk.f32.mxu0 %vm375_vm0, %v372_v0  ;;  %477 = vst.msk [vmem:[#allocation2] sm:$0xe] %vm476_vm2, %v468_v17  ;;  %v469_v20 = vrot.slane %v468_v17, 4  ;;  %v606_v58 = vrot.slane %v6808_v27, 4  ;;  %v6380_v4 = vld [vmem:[%s9006_s3 + $0xa8] sm:$0xff]   ;;  %vm502_vm13 = vcmask 1043969  }
  0x22   : > { %6235 = vmatpush3.msra.mxu0 %v5527_v6  ;;  %6239 = vmatprep.subr.mxu1 %v5536_v7  ;;  %481 = vst.msk [vmem:[#allocation2 + $0x8] sm:$0x1] %vm480_vm1, %v472_v14  ;;  %v609_v51 = vrot.slane %v607_v45, 4  ;;  %v5513_v14 = vld [vmem:[%s6766_s22 + $0x28] sm:$0xff]  ;;  %vm638_vm14 = vcmask 1043971   ;;  %vm504_vm15 = vcmask 1043968  }
  0x23   : > { %6240 = vmatpush3.msra.mxu1 %v5536_v7  ;;  %6241 = vmatprep.mubr.msk.f32.mxu1 %vm375_vm0, %v372_v0  ;;  %v471_v28 = vsel %vm6801_vm5, %v469_v20, %v470_v13  ;;  %614 = vst.msk [vmem:[#allocation2 + $0x8] sm:$0x8] %vm613_vm6, %v6808_v27  ;;  %vm2154_vm3 = vcmask 1041408   ;;  %vm2155_vm4 = vcmask 1045508   ;;  %vm1873_vm8 = vsmask.f32 6416 }
  0x24   : > { %6237 = vmatmul.mubr.msk.f32.vlgmr.msra.gmra.mxu0 %vm375_vm0, %v373_v2  ;;  %6242 = vmatmul.mubr.msk.f32.vlgmr.msra.gmra.mxu1 %vm375_vm0, %v373_v2  ;;  %479 = vst.msk [vmem:[#allocation2 + $0x4] sm:$0xf] %vm478_vm7, %v471_v28  ;;  %vm7105_vm9 = vmor %vm2154_vm3, %vm2155_vm4  ;;  %s5488_s23 = sshll.u32 %s342_s27, 7  ;;  %s5849_s21 = sshll.u32 %s6706_s13, 11 }
  0x25   : > { %6244 = vmatprep.subr.mxu0 %v5545_v8  ;;  %6246 = vmatprep.mubr.msk.f32.mxu0 %vm375_vm0, %v372_v0  ;;  %617 = vst.msk [vmem:[#allocation2 + $0x10] sm:$0x7] %vm616_vm10, %v609_v51  ;;  %s8848_s24 = scalar_lea.vmem [#allocation6], %s5488_s23  ;;  %s8963_s13 = scalar_lea.sflag [#allocation7], %s342_s27 }
  0x26   : > { %6245 = vmatpush3.msra.mxu0 %v5545_v8  ;;  %6249 = vmatprep.subr.mxu1 %v5554_v9  ;;  %v608_v8 = vsel %vm6835_vm11, %v606_v58, %v607_v45  ;;  %v6389_v58 = vld [vmem:[%s9006_s3 + $0x50] sm:$0xff]   ;;  %s5410_s25 = sshll.u32 %s8848_s24, 4  ;;  %s6632_s14 = smov [#allocation6]   ;;  %s8957_s25 = int_to_ptr.vmem [resolvable:$true] %s5410_s25 }
  0x27   : > { %6250 = vmatpush3.msra.mxu1 %v5554_v9  ;;  %6251 = vmatprep.mubr.msk.f32.mxu1 %vm375_vm0, %v372_v0  ;;  %v5512_v0 = vld [vmem:[%s6766_s22 + $0x20] sm:$0xff]  ;;  %615 = vst.msk [vmem:[#allocation2 + $0xc] sm:$0xf] %vm478_vm7, %v608_v8  ;;  %s6568_s28 = scalar_lea.vmem %s8957_s25, 2048  ;;  %s6572_s16 = sshll.u32 %s6632_s14, 4  ;;  %s6573_s16 = int_to_ptr.vmem [resolvable:$false] %s6572_s16 }
  0x28   : > { %6247 = vmatmul.mubr.msk.f32.vlgmr.msra.gmra.mxu0 %vm375_vm0, %v373_v2  ;;  %6252 = vmatmul.mubr.msk.f32.vlgmr.msra.gmra.mxu1 %vm375_vm0, %v373_v2  ;;  %v5804_v11 = vpack.c.bf16 %v5512_v0, %v5512_v0  ;;  %vm641_vm0 = vcmask 1042944   ;;  %p6569_p11 = scmp.ne.s32.totalorder %s8957_s25, %s6568_s28  ;;  %s6574_s17 = scalar_lea.vmem %s6573_s16, 4096 }
  0x29   : > { %5874 = vmatprep.subr.bf16.mxu0 %v6369_v10  ;;  %5950 = vmatprep.subr.bf16.mxu1 %v6371_v18  ;;  %v6381_v10 = vld [vmem:[%s9006_s3 + $0x60] sm:$0xff]   ;;  %v5805_v18 = vpack.c.bf16 %v5513_v14, %v5513_v14  ;;  %v6393_v14 = vld [vmem:[%s9006_s3 + $0x48] sm:$0xff]   ;;  %p6575_p0 = scmp.lt.s32.totalorder %s8957_s25, %s6573_s16  ;;  %p6576_p1 = scmp.lt.s32.totalorder %s6574_s17, %s6568_s28 }
  0x2a   : > { %5875 = vmatpush3.bf16.msra.mxu0 %v6370_v21  ;;  %5951 = vmatpush3.bf16.msra.mxu1 %v6372_v22  ;;  %v737_v20 = vrot.slane %v5804_v11, 7  ;;  %p6570_p12 = pnand %p6569_p11, %p6723_p5 }
  0x2b   : > { %5876 = vmatprep.subr.bf16.mxu0 %v6373_v26  ;;  %5952 = vmatprep.subr.bf16.mxu1 %v6375_v35  ;;  %p6577_p2 = por %p6576_p1, %p6575_p0 }
  0x2c   : > { %v738_v28 = vrot.slane %v737_v20, 4  ;;  %745 = vst.msk [vmem:[#allocation2 + $0x14] sm:$0xe] %vm476_vm2, %v737_v20  ;;  %v5531_v20 = vld [vmem:[%s6766_s22 + $0x48] sm:$0xff]  ;;  %p6571_p13 = pneg %p6570_p12 }
  0x2e   : > { %5877 = vmatpush3.bf16.msra.mxu0 %v6374_v41  ;;  %5953 = vmatpush3.bf16.msra.mxu1 %v6376_v42  ;;  %v5522_v41 = vld [vmem:[%s6766_s22 + $0x38] sm:$0xff]  ;;  %p6578_p3 = pnand %p6577_p2, %p6571_p13 }
  0x2f   : > { %5878 = vmatprep.subr.bf16.mxu0 %v6377_v50  ;;  %5954 = vmatprep.subr.bf16.mxu1 %v6379_v63  ;;  %v6388_v50 = vld [vmem:[%s9006_s3 + $0x98] sm:$0xff]  }
  0x32   : > { %5879 = vmatpush3.bf16.msra.mxu0 %v6378_v3  ;;  %5955 = vmatpush3.bf16.msra.mxu1 %v6380_v4  ;;  %v6391_v4 = vld [vmem:[%s9006_s3 + $0xd0] sm:$0xff]  }
  0x33   : > { %5880 = vmatprep.subr.bf16.mxu0 %v6381_v10 }
  0x36   : > { %5881 = vmatpush3.bf16.msra.mxu0 %v6382_v32  ;;  %v6398_v32 = vld [vmem:[%s9006_s3] sm:$0xff]  }
  0xdc   : > { %v6218_v29 = vpop.f32.mrf.mxu0  ;;  %v6223_v30 = vpop.f32.mrf.mxu1 }
  0xdd   : > { %v5799_v31 = vpack.c.bf16 %v6218_v29, %v6218_v29  ;;  %v5803_v39 = vpack.c.bf16 %v6223_v30, %v6223_v30  ;;  %v739_v29 = vrot.slane %v5805_v18, 7  ;;  %v6383_v30 = vld [vmem:[%s9006_s3 + $0xe0] sm:$0xff]   ;;  %v6396_v18 = vld [vmem:[%s9006_s3 + $0x88] sm:$0xff]  }
  0xde   : > { %v448_v33 = vpop.f32.mrf.mxu0  ;;  %v584_v34 = vpop.f32.mrf.mxu1  ;;  %5956 = vmatprep.subr.bf16.mxu1 %v6383_v30  ;;  %v6397_v30 = vld [vmem:[%s9006_s3 + $0x40] sm:$0xff]  }
  0xdf   : > { %v490_v37 = vrot.slane %v5799_v31, 7  ;;  %v5798_v38 = vpack.c.bf16 %v448_v33, %v448_v33  ;;  %v5802_v40 = vpack.c.bf16 %v584_v34, %v584_v34  ;;  %v626_v53 = vrot.slane %v5803_v39, 5  ;;  %v6384_v33 = vld [vmem:[%s9006_s3 + $0xa0] sm:$0xff]   ;;  %v5521_v34 = vld [vmem:[%s6766_s22 + $0x30] sm:$0xff] }
  0xe0   : > { %v6228_v43 = vpop.f32.mrf.mxu0  ;;  %v6233_v44 = vpop.f32.mrf.mxu1  ;;  %v740_v35 = vsel %vm6801_vm5, %v738_v28, %v739_v29  ;;  %v5808_v36 = vpack.c.bf16 %v5521_v34, %v5521_v34  ;;  %5957 = vmatpush3.bf16.msra.mxu1 %v6384_v33  ;;  %v741_v45 = vrot.slane %v739_v29, 4  ;;  %v6400_v33 = vld [vmem:[%s9006_s3 + $0x80] sm:$0xff]  }
  0xe1   : > { %v488_v46 = vrot.slane %v5798_v38, 7  ;;  %v624_v47 = vrot.slane %v5802_v40, 5  ;;  %v492_v48 = vrot.slane %v490_v37, 4  ;;  %v5807_v56 = vpack.c.bf16 %v6228_v43, %v6228_v43  ;;  %746 = vst.msk [vmem:[#allocation2 + $0x18] sm:$0xf] %vm478_vm7, %v740_v35  ;;  %v6385_v43 = vld [vmem:[%s9006_s3 + $0x58] sm:$0xff]  }
  0xe2   : > { %v719_v49 = vpop.f32.mrf.mxu0  ;;  %v847_v57 = vpop.f32.mrf.mxu1  ;;  %v628_v1 = vrot.slane %v626_v53, 4  ;;  %v5811_v12 = vpack.c.bf16 %v6233_v44, %v6233_v44  ;;  %v865_v44 = vrot.slane %v5808_v36, 5  ;;  %5882 = vmatprep.subr.bf16.mxu0 %v6385_v43  ;;  %747 = vst.msk [vmem:[#allocation2 + $0x1c] sm:$0x1] %vm480_vm1, %v741_v45 }
  0xe3   : > { %v489_v52 = vrot.slane %v488_v46, 4  ;;  %497 = vrot.lane.b32.xlu1 %v492_v48, %s6631_s29  ;;  %493 = vrot.lane.b32.xlu0 %v488_v46, %s6631_s29  ;;  %v5806_v54 = vpack.c.bf16 %v719_v49, %v719_v49  ;;  %v625_v55 = vrot.slane %v624_v47, 4  ;;  %v5810_v2 = vpack.c.bf16 %v847_v57, %v847_v57  ;;  %v6387_v46 = vld [vmem:[%s9006_s3 + $0xd8] sm:$0xff]  }
  0xe4   : > { %v6238_v62 = vpop.f32.mrf.mxu0  ;;  %v756_v5 = vrot.slane %v5807_v56, 7  ;;  %v6865_v17 = vpop.f32.mrf.mxu1  ;;  %v884_v22 = vrot.slane %v5811_v12, 5  ;;  %v6386_v49 = vld [vmem:[%s9006_s3 + $0x18] sm:$0xff]   ;;  %873 = vst.msk [vmem:[#allocation2 + $0x1c] sm:$0x8] %vm613_vm6, %v865_v44  ;;  %5958 = vmatprep.subr.bf16.mxu1 %v6387_v46 }
  0xe5   : > { %v754_v59 = vrot.slane %v5806_v54, 7  ;;  %v491_v60 = vsel %vm6801_vm5, %v489_v52, %v490_v37  ;;  %v627_v7 = vsel %vm6835_vm11, %v625_v55, %v626_v53  ;;  %v882_v13 = vrot.slane %v5810_v2, 5  ;;  %5883 = vmatpush3.bf16.msra.mxu0 %v6386_v49  ;;  %5959 = vmatpush3.bf16.msra.mxu1 %v6388_v50  ;;  %v5548_v49 = vld [vmem:[%s6766_s22 + $0x60] sm:$0xff] }
  0xe6   : > { %v975_v9 = vpop.f32.mrf.mxu0  ;;  %v758_v21 = vrot.slane %v756_v5, 4  ;;  %v5815_v24 = vpack.c.bf16 %v6238_v62, %v6238_v62  ;;  %v1103_v27 = vpop.f32.mrf.mxu1  ;;  %v886_v37 = vrot.slane %v884_v22, 4  ;;  %v5819_v52 = vpack.c.bf16 %v6865_v17, %v6865_v17  ;;  %5884 = vmatprep.subr.bf16.mxu0 %v6389_v58  ;;  %5960 = vmatprep.subr.bf16.mxu1 %v6391_v4  ;;  %v6394_v17 = vld [vmem:[%s9006_s3 + $0x8] sm:$0xff]  }
  0xe7   : > { %629 = vrot.lane.b32.xlu1 %v624_v47, %s6631_s29  ;;  %495 = vrot.lane.b32.xlu0 %v491_v60, %s6631_s29  ;;  %v755_v6 = vrot.slane %v754_v59, 4  ;;  %v5814_v16 = vpack.c.bf16 %v975_v9, %v975_v9  ;;  %v883_v23 = vrot.slane %v882_v13, 4  ;;  %v5818_v40 = vpack.c.bf16 %v1103_v27, %v1103_v27 }
  0xe8   : > { %v6873_v31 = vpop.f32.mrf.mxu0  ;;  %v1012_v38 = vrot.slane %v5815_v24, 7  ;;  %v5809_v47 = vpack.c.bf16 %v5522_v41, %v5522_v41  ;;  %v866_v53 = vrot.slane %v865_v44, 4  ;;  %v6910_v57 = vpop.f32.mrf.mxu1  ;;  %v1140_v63 = vrot.slane %v5819_v52, 5  ;;  %v5549_v52 = vld [vmem:[%s6766_s22 + $0x68] sm:$0xff] }
  0xe9   : > { %v757_v15 = vsel %vm6801_vm5, %v755_v6, %v756_v5  ;;  %v1010_v26 = vrot.slane %v5814_v16, 7  ;;  %v885_v39 = vsel %vm6835_vm11, %v883_v23, %v884_v22  ;;  %v1138_v54 = vrot.slane %v5818_v40, 5  ;;  %v6390_v5 = vld [vmem:[%s9006_s3 + $0x10] sm:$0xff]   ;;  %v6395_v16 = vld [vmem:[%s9006_s3 + $0xc8] sm:$0xff]  }
  0xea   : > { %v1231_v48 = vpop.f32.mrf.mxu0  ;;  %v867_v51 = vrot.slane %v5809_v47, 5  ;;  %v1014_v62 = vrot.slane %v1012_v38, 4  ;;  %v1359_v3 = vpop.f32.mrf.mxu1  ;;  %v6392_v6 = vld [vmem:[%s9006_s3 + $0x90] sm:$0xff]   ;;  %v1142_v9 = vrot.slane %v1140_v63, 4  ;;  %5885 = vmatpush3.bf16.msra.mxu0 %v6390_v5  ;;  %v5827_v23 = vpack.c.bf16 %v6910_v57, %v6910_v57  ;;  %v6989_v47 = vld [vmem:[%s9006_s3 + $0x138] sm:$0xff]  }
  0xeb   : > { %633 = vrot.lane.b32.xlu1 %v628_v1, %s6631_s29  ;;  %631 = vrot.lane.b32.xlu0 %v627_v7, %s6631_s29  ;;  %v1011_v42 = vrot.slane %v1010_v26, 4  ;;  %v5822_v56 = vpack.c.bf16 %v1231_v48, %v1231_v48  ;;  %v1139_v0 = vrot.slane %v1138_v54, 4  ;;  %v5823_v1 = vpack.c.bf16 %v6873_v31, %v6873_v31  ;;  %v5530_v7 = vld [vmem:[%s6766_s22 + $0x40] sm:$0xff]  ;;  %v5539_v22 = vld [vmem:[%s6766_s22 + $0x50] sm:$0xff] }
  0xec   : > { %v868_v60 = vsel %vm6835_vm11, %v866_v53, %v867_v51  ;;  %v5812_v8 = vpack.c.bf16 %v5530_v7, %v5530_v7  ;;  %v5826_v10 = vpack.c.bf16 %v1359_v3, %v1359_v3  ;;  %5961 = vmatpush3.bf16.msra.mxu1 %v6392_v6  ;;  %5886 = vmatprep.subr.bf16.mxu0 %v6393_v14  ;;  %v6399_v31 = vld [vmem:[%s9006_s3 + $0xc0] sm:$0xff]   ;;  %v5557_v57 = vld [vmem:[%s6766_s22 + $0x70] sm:$0xff] }
  0xed   : > { %v1013_v55 = vsel %vm6801_vm5, %v1011_v42, %v1012_v38  ;;  %874 = vst.msk [vmem:[#allocation2 + $0x20] sm:$0xf] %vm478_vm7, %v868_v60  ;;  %v1266_v2 = vrot.slane %v5822_v56, 7  ;;  %v1268_v11 = vrot.slane %v5823_v1, 7  ;;  %v1141_v12 = vsel %vm6835_vm11, %v1139_v0, %v1140_v63  ;;  %5962 = vmatprep.subr.bf16.mxu1 %v6395_v16  ;;  %v5540_v42 = vld [vmem:[%s6766_s22 + $0x58] sm:$0xff] }
  0xee   : > { %v5816_v24 = vpack.c.bf16 %v5539_v22, %v5539_v22  ;;  %v1394_v27 = vrot.slane %v5826_v10, 5  ;;  %5887 = vmatpush3.bf16.msra.mxu0 %v6394_v17  ;;  %v1396_v38 = vrot.slane %v5827_v23, 5  ;;  %v5817_v44 = vpack.c.bf16 %v5540_v42, %v5540_v42 }
  0xef   : > { %761 = vrot.lane.b32.xlu1 %v757_v15, %s6631_s29  ;;  %759 = vrot.lane.b32.xlu0 %v754_v59, %s6631_s29  ;;  %v869_v59 = vrot.slane %v867_v51, 4  ;;  %v993_v15 = vrot.slane %v5812_v8, 7  ;;  %v1270_v36 = vrot.slane %v1268_v11, 4  ;;  %v5820_v50 = vpack.c.bf16 %v5548_v49, %v5548_v49 }
  0xf0   : > { %5963 = vmatpush3.bf16.msra.mxu1 %v6396_v18  ;;  %v1121_v34 = vrot.slane %v5816_v24, 5  ;;  %5888 = vmatprep.subr.bf16.mxu0 %v6397_v30  ;;  %v1398_v40 = vrot.slane %v1396_v38, 4  ;;  %v1123_v45 = vrot.slane %v5817_v44, 5  ;;  %v5824_v58 = vpack.c.bf16 %v5557_v57, %v5557_v57 }
  0xf1   : > { %875 = vst.msk [vmem:[#allocation2 + $0x24] sm:$0x7] %vm616_vm10, %v869_v59  ;;  %v994_v28 = vrot.slane %v993_v15, 4  ;;  %5964 = vmatprep.subr.bf16.mxu1 %v6399_v31  ;;  %v1249_v51 = vrot.slane %v5820_v50, 7 }
  0xf2   : > { %1001 = vst.msk [vmem:[#allocation2 + $0x28] sm:$0xe] %vm476_vm2, %v993_v15  ;;  %5889 = vmatpush3.bf16.msra.mxu0 %v6398_v32  ;;  %v1122_v43 = vrot.slane %v1121_v34, 4  ;;  %v1125_v48 = vrot.slane %v1123_v45, 4  ;;  %v1377_v59 = vrot.slane %v5824_v58, 5 }
  0xf3   : > { %887 = vrot.lane.b32.xlu1 %v882_v13, %s6631_s29  ;;  %763 = vrot.lane.b32.xlu0 %v758_v21, %s6631_s29  ;;  %v1267_v13 = vrot.slane %v1266_v2, 4  ;;  %v5813_v21 = vpack.c.bf16 %v5531_v20, %v5531_v20  ;;  %1129 = vst.msk [vmem:[#allocation2 + $0x30] sm:$0x8] %vm613_vm6, %v1121_v34  ;;  %v1250_v53 = vrot.slane %v1249_v51, 4 }
  0xf4   : > { %5965 = vmatpush3.bf16.msra.mxu1 %v6400_v33  ;;  %v1124_v46 = vsel %vm6835_vm11, %v1122_v43, %v1123_v45  ;;  %6254 = vmatprep.subr.bf16.mxu0 %v6989_v47  ;;  %1131 = vst.msk [vmem:[#allocation2 + $0x38] sm:$0x7] %vm616_vm10, %v1125_v48  ;;  %v1378_v63 = vrot.slane %v1377_v59, 4 }
  0xf5   : > { %v995_v29 = vrot.slane %v5813_v21, 7  ;;  %1130 = vst.msk [vmem:[#allocation2 + $0x34] sm:$0xf] %vm478_vm7, %v1124_v46 }
  0xf6   : > { %1257 = vst.msk [vmem:[#allocation2 + $0x3c] sm:$0xe] %vm476_vm2, %v1249_v51  ;;  %vm1472_vm2 = vsmask.f32 7440 }
  0xf7   : > { %891 = vrot.lane.b32.xlu1 %v886_v37, %s6631_s29  ;;  %889 = vrot.lane.b32.xlu0 %v885_v39, %s6631_s29  ;;  %v996_v35 = vsel %vm6801_vm5, %v994_v28, %v995_v29  ;;  %v997_v37 = vrot.slane %v995_v29, 4  ;;  %v1395_v39 = vrot.slane %v1394_v27, 4  ;;  %1385 = vst.msk [vmem:[#allocation2 + $0x44] sm:$0x8] %vm613_vm6, %v1377_v59 }
  0xf8   : > { %1002 = vst.msk [vmem:[#allocation2 + $0x2c] sm:$0xf] %vm478_vm7, %v996_v35 }
  0xf9   : > { %1003 = vst.msk [vmem:[#allocation2 + $0x30] sm:$0x1] %vm480_vm1, %v997_v37  ;;  %v1397_v41 = vsel %vm6835_vm11, %v1395_v39, %v1396_v38 }
  0xfb   : > { %1015 = vrot.lane.b32.xlu0 %v1010_v26, %s6631_s29  ;;  %1017 = vrot.lane.b32.xlu1 %v1013_v55, %s6631_s29  ;;  %v1269_v26 = vsel %vm6801_vm5, %v1267_v13, %v1268_v11 }
  0xff   : > { %1019 = vrot.lane.b32.xlu0 %v1014_v62, %s6631_s29  ;;  %1143 = vrot.lane.b32.xlu1 %v1138_v54, %s6631_s29  ;;  %v5821_v54 = vpack.c.bf16 %v5549_v52, %v5549_v52  ;;  %v5558_v62 = vld [vmem:[%s6766_s22 + $0x78] sm:$0xff] }
 0x100   : > { %v5825_v0 = vpack.c.bf16 %v5558_v62, %v5558_v62 }
 0x101   : > { %v1251_v55 = vrot.slane %v5821_v54, 7 }
 0x102   : > { %v1379_v1 = vrot.slane %v5825_v0, 5 }
 0x103   : > { %1145 = vrot.lane.b32.xlu0 %v1141_v12, %s6631_s29  ;;  %1147 = vrot.lane.b32.xlu1 %v1142_v9, %s6631_s29  ;;  %v1252_v56 = vsel %vm6801_vm5, %v1250_v53, %v1251_v55  ;;  %v1253_v60 = vrot.slane %v1251_v55, 4 }
 0x104   : > { %1258 = vst.msk [vmem:[#allocation2 + $0x40] sm:$0xf] %vm478_vm7, %v1252_v56  ;;  %v1381_v3 = vrot.slane %v1379_v1, 4 }
 0x105   : > { %1259 = vst.msk [vmem:[#allocation2 + $0x44] sm:$0x1] %vm480_vm1, %v1253_v60  ;;  %vm1471_vm1 = vsmask.f32 3328 }
 0x106   : > { %1387 = vst.msk [vmem:[#allocation2 + $0x4c] sm:$0x7] %vm616_vm10, %v1381_v3  ;;  %vm7051_vm6 = vmor %vm1471_vm1, %vm1472_vm2 }
 0x107   : > { %1271 = vrot.lane.b32.xlu0 %v1266_v2, %s6631_s29  ;;  %1273 = vrot.lane.b32.xlu1 %v1269_v26, %s6631_s29  ;;  %v1380_v2 = vsel %vm6835_vm11, %v1378_v63, %v1379_v1 }
 0x108   : > { %1386 = vst.msk [vmem:[#allocation2 + $0x48] sm:$0xf] %vm478_vm7, %v1380_v2  ;;  %vm1872_vm7 = vsmask.f32 2304 }
 0x109   : > { %vm7160_vm10 = vmor %vm1872_vm7, %vm1873_vm8 }
 0x10b   : > { %1399 = vrot.lane.b32.xlu1 %v1394_v27, %s6631_s29  ;;  %1275 = vrot.lane.b32.xlu0 %v1270_v36, %s6631_s29 }
 0x10f   : > { %1401 = vrot.lane.b32.xlu0 %v1397_v41, %s6631_s29  ;;  %1403 = vrot.lane.b32.xlu1 %v1398_v40, %s6631_s29  ;;  %s8955_s29 = scalar_lea.hbm %s9012_s9, %s5849_s21 }
 0x155   : > { %v498_v4 = vpop.permute.xlu1 %497  ;;  %v494_v5 = vpop.permute.xlu0 %493 }
 0x156   : > { %507 = vst.msk [vmem:[#allocation2 + $0x8] sm:$0x1] %vm506_vm12, %v498_v4 }
 0x157   : > { %503 = vst.msk [vmem:[#allocation2] sm:$0xe] %vm502_vm13, %v494_v5  ;;  %v9083_v5 = vmov 0 }
 0x158   : > { %v9084_v5 = vsel %vm7051_vm6, 4294967295, %v9083_v5 }
 0x159   : > { %v630_v6 = vpop.permute.xlu1 %629  ;;  %v496_v7 = vpop.permute.xlu0 %495  ;;  %9085 = vst [vmem:[#allocation14_spill] sm:$0xff] %v9084_v5 }
 0x15a   : > { %639 = vst.msk [vmem:[#allocation2 + $0x8] sm:$0x8] %vm638_vm14, %v630_v6 }
 0x15b   : > { %505 = vst.msk [vmem:[#allocation2 + $0x4] sm:$0xf] %vm504_vm15, %v496_v7 }
 0x15d   : > { %v634_v11 = vpop.permute.xlu1 %633  ;;  %v632_v12 = vpop.permute.xlu0 %631 }
 0x15e   : > { %v1411_v8 = vld [vmem:[#allocation2] sm:$0xf]  ;;  %642 = vst.msk [vmem:[#allocation2 + $0x10] sm:$0x7] %vm641_vm0, %v634_v11 }
 0x15f   : > { %v1451_v9 = vld [vmem:[#allocation2] sm:$0xf]  ;;  %1431 = vst [vmem:[#allocation3] sm:$0xf] %v1411_v8  ;;  %640 = vst.msk [vmem:[#allocation2 + $0xc] sm:$0xf] %vm504_vm15, %v632_v12 }
 0x160   : > { %v7012_v10 = vld [vmem:[#allocation2] sm:$0xe]  ;;  %v1475_v13 = vshrl.u32 %v1451_v9, 16  ;;  %v1478_v14 = vshll.u32 %v1451_v9, 16 }
 0x161   : > { %v1852_v15 = vld [vmem:[#allocation2] sm:$0xe]  ;;  %v5563_v21 = vrot.slane %v7012_v10, 9  ;;  %v1413_v26 = vld [vmem:[#allocation2 + $0x8] sm:$0xf]  ;;  %v762_v28 = vpop.permute.xlu1 %761  ;;  %v760_v29 = vpop.permute.xlu0 %759 }
 0x162   : > { %v1876_v16 = vshrl.u32 %v1852_v15, 16  ;;  %v1879_v17 = vshll.u32 %v1852_v15, 16  ;;  %v1477_v18 = vrot.slane %v1475_v13, 4  ;;  %v1480_v20 = vrot.slane %v1478_v14, 5  ;;  %v7017_v22 = vld [vmem:[#allocation2] sm:$0xc] }
 0x163   : > { %9080 = vst [vmem:[#allocation11_spill] sm:$0xff] %v7017_v22  ;;  %v1453_v27 = vld [vmem:[#allocation2 + $0x8] sm:$0xf]  ;;  %1433 = vst [vmem:[#allocation3 + $0x28] sm:$0xf] %v1413_v26 }
 0x164   : > { %v1878_v23 = vrot.slane %v1876_v16, 5  ;;  %v1881_v24 = vrot.slane %v1879_v17, 6  ;;  %v1481_v30 = vor.u32 %v1480_v20, %v1477_v18  ;;  %v1494_v31 = vshll.u32 %v1453_v27, 16  ;;  %v7019_v33 = vld [vmem:[#allocation2 + $0x8] sm:$0xf] }
 0x165   : > { %v1498_v32 = vshrl.u32 %v1453_v27, 16  ;;  %v1854_v34 = vld [vmem:[#allocation2 + $0x8] sm:$0xf]  ;;  %769 = vst.msk [vmem:[#allocation2 + $0x18] sm:$0xf] %vm504_vm15, %v762_v28  ;;  %v1758_v36 = vrot.slane %v7019_v33, 5  ;;  %v888_v51 = vpop.permute.xlu1 %887  ;;  %v764_v52 = vpop.permute.xlu0 %763 }
 0x166   : > { %768 = vst.msk [vmem:[#allocation2 + $0x14] sm:$0xe] %vm502_vm13, %v760_v29  ;;  %v1882_v35 = vor.u32 %v1881_v24, %v1878_v23  ;;  %v1895_v37 = vshrl.u32 %v1854_v34, 16  ;;  %v1898_v38 = vshll.u32 %v1854_v34, 16  ;;  %v7024_v39 = vld [vmem:[#allocation2 + $0x8] sm:$0xf] }
 0x167   : > { %9081 = vst [vmem:[#allocation12_spill] sm:$0xff] %v7024_v39  ;;  %v7027_v41 = vrot.slane %v1494_v31, 5  ;;  %v1500_v42 = vrot.slane %v1498_v32, 4  ;;  %v9016_v43 = vrot.slane %v7024_v39, 6  ;;  %v1412_v44 = vld [vmem:[#allocation2 + $0x4] sm:$0xf] }
 0x168   : > { %v1482_v45 = vrot.slane %v1481_v30, 4  ;;  %v7030_v46 = vrot.slane %v1882_v35, 4  ;;  %v1897_v48 = vrot.slane %v1895_v37, 5  ;;  %v1900_v49 = vrot.slane %v1898_v38, 6  ;;  %1432 = vst [vmem:[#allocation3 + $0x14] sm:$0xf] %v1412_v44 }
 0x169   : > { %v1452_v50 = vld [vmem:[#allocation2 + $0x4] sm:$0xf]  ;;  %v1501_v53 = vor.u32 %v1500_v42, %v7027_v41  ;;  %v7035_v54 = vrot.slane %v1758_v36, 4  ;;  %896 = vst.msk [vmem:[#allocation2 + $0x1c] sm:$0x8] %vm638_vm14, %v888_v51  ;;  %v7043_v59 = vrot.slane %v9016_v43, 4  ;;  %v892_v12 = vpop.permute.xlu1 %891  ;;  %v890_v13 = vpop.permute.xlu0 %889 }
 0x16a   : > { %v1484_v55 = vshll.u32 %v1452_v50, 16  ;;  %v1488_v56 = vshrl.u32 %v1452_v50, 16  ;;  %v1714_v57 = vld [vmem:[#allocation2 + $0x4] sm:$0xf]  ;;  %770 = vst.msk [vmem:[#allocation2 + $0x1c] sm:$0x1] %vm506_vm12, %v764_v52  ;;  %v7039_v58 = vor.u32 %v1900_v49, %v1897_v48 }
 0x16b   : > { %v1755_v60 = vrot.slane %v1714_v57, 5  ;;  %v1853_v62 = vld [vmem:[#allocation2 + $0x4] sm:$0xf]  ;;  %v7047_v0 = vrot.slane %v1501_v53, 4  ;;  %v1415_v4 = vld [vmem:[#allocation2 + $0x10] sm:$0xf] }
 0x16c   : > { %v7045_v63 = vld [vmem:[#allocation2 + $0x4] sm:$0xf]  ;;  %v1486_v1 = vrot.slane %v1484_v55, 5  ;;  %v1490_v2 = vrot.slane %v1488_v56, 4  ;;  %v1885_v3 = vshrl.u32 %v1853_v62, 16  ;;  %v1888_v8 = vshll.u32 %v1853_v62, 16 }
 0x16d   : > { %9082 = vst [vmem:[#allocation13_spill] sm:$0xff] %v7045_v63  ;;  %v7056_v7 = vrot.slane %v1755_v60, 4  ;;  %v9017_v9 = vrot.slane %v7045_v63, 6  ;;  %1435 = vst [vmem:[#allocation3 + $0x50] sm:$0xf] %v1415_v4  ;;  %v1016_v44 = vpop.permute.xlu0 %1015  ;;  %v1756_v53 = vsel %vm6835_vm11, %v5563_v21, %v1755_v60 }
 0x16e   : > { %v1455_v11 = vld [vmem:[#allocation2 + $0x10] sm:$0xf]  ;;  %v1491_v14 = vor.u32 %v1490_v2, %v1486_v1  ;;  %v1887_v15 = vrot.slane %v1885_v3, 5  ;;  %898 = vst.msk [vmem:[#allocation2 + $0x24] sm:$0x7] %vm641_vm0, %v892_v12  ;;  %v1890_v20 = vrot.slane %v1888_v8, 6  ;;  %v1487_v27 = vsel %vm7051_vm6, %v1482_v45, %v1486_v1  ;;  %v1018_v45 = vpop.permute.xlu1 %1017 }
 0x16f   : > { %v1514_v16 = vshll.u32 %v1455_v11, 16  ;;  %v1518_v17 = vshrl.u32 %v1455_v11, 16  ;;  %v7059_v18 = vld [vmem:[#allocation2 + $0x10] sm:$0xf]  ;;  %897 = vst.msk [vmem:[#allocation2 + $0x20] sm:$0xf] %vm504_vm15, %v890_v13 }
 0x170   : > { %v7065_v23 = vrot.slane %v9017_v9, 4  ;;  %v9023_v24 = vrot.slane %v7059_v18, 5  ;;  %v1856_v26 = vld [vmem:[#allocation2 + $0x10] sm:$0xf]  ;;  %v1492_v28 = vrot.slane %v1491_v14, 4  ;;  %v7074_v34 = vor.u32 %v1890_v20, %v1887_v15 }
 0x171   : > { %v7070_v29 = vrot.slane %v1514_v16, 5  ;;  %v1520_v30 = vrot.slane %v1518_v17, 4  ;;  %v1915_v31 = vshrl.u32 %v1856_v26, 16  ;;  %v7072_v32 = vld [vmem:[#allocation2 + $0x10] sm:$0xf]  ;;  %v1918_v37 = vshll.u32 %v1856_v26, 16  ;;  %v1020_v13 = vpop.permute.xlu0 %1019 }
 0x172   : > { %9086 = vst [vmem:[#allocation15_spill] sm:$0xff] %v7065_v23  ;;  %1693 = vst [vmem:[#allocation3 + $0x4] sm:$0xf] %v1487_v27  ;;  %v7078_v35 = vrot.slane %v9023_v24, 4  ;;  %v2168_v38 = vrot.slane %v7072_v32, 6  ;;  %v1497_v52 = vsel %vm7051_vm6, %v1492_v28, %v7027_v41  ;;  %v1893_v55 = vrot.slane %v7074_v34, 4  ;;  %v1144_v14 = vpop.permute.xlu1 %1143 }
 0x173   : > { %v1414_v42 = vld [vmem:[#allocation2 + $0xc] sm:$0xf]  ;;  %v1521_v48 = vor.u32 %v1520_v30, %v7070_v29  ;;  %v1917_v49 = vrot.slane %v1915_v31, 5  ;;  %1024 = vst.msk [vmem:[#allocation2 + $0x28] sm:$0xe] %vm502_vm13, %v1016_v44  ;;  %v1920_v56 = vrot.slane %v1918_v37, 6  ;;  %v1759_v27 = vsel %vm6835_vm11, %v7056_v7, %v1758_v36 }
 0x174   : > { %1434 = vst [vmem:[#allocation3 + $0x3c] sm:$0xf] %v1414_v42  ;;  %v1454_v50 = vld [vmem:[#allocation2 + $0xc] sm:$0xf]  ;;  %1025 = vst.msk [vmem:[#allocation2 + $0x2c] sm:$0xf] %vm504_vm15, %v1018_v45 }
 0x175   : > { %v7082_v51 = vld [vmem:[#allocation2 + $0xc] sm:$0xf]  ;;  %v7094_v57 = vrot.slane %v2168_v38, 4  ;;  %v1504_v62 = vshll.u32 %v1454_v50, 16  ;;  %1694 = vst [vmem:[#allocation3 + $0x18] sm:$0xf] %v1497_v52  ;;  %v7099_v8 = vor.u32 %v1920_v56, %v1917_v49 }
 0x176   : > { %v1855_v1 = vld [vmem:[#allocation2 + $0xc] sm:$0xf]  ;;  %1832 = vst [vmem:[#allocation3 + $0x8] sm:$0xf] %v1756_v53  ;;  %v7096_v2 = vrot.slane %v1521_v48, 4  ;;  %v1508_v3 = vshrl.u32 %v1454_v50, 16  ;;  %v1146_v53 = vpop.permute.xlu0 %1145  ;;  %v1148_v56 = vpop.permute.xlu1 %1147 }
 0x177   : > { %9087 = vst [vmem:[#allocation16_spill] sm:$0xff] %v7094_v57  ;;  %v9025_v41 = vrot.slane %v7082_v51, 5  ;;  %v1905_v10 = vshrl.u32 %v1855_v1, 16  ;;  %v2117_v4 = vld [vmem:[#allocation2 + $0xc] sm:$0xf]  ;;  %v7101_v21 = vrot.slane %v1504_v62, 5 }
 0x178   : > { %v1908_v60 = vshll.u32 %v1855_v1, 16  ;;  %v2165_v11 = vrot.slane %v2117_v4, 6  ;;  %v1417_v12 = vld [vmem:[#allocation2 + $0x18] sm:$0xf]  ;;  %v9088_v15 = vmov 0  ;;  %v1510_v16 = vrot.slane %v1508_v3, 4 }
 0x179   : > { %v9089_v15 = vsel %vm7105_vm9, 4294967295, %v9088_v15  ;;  %v7111_v17 = vrot.slane %v9025_v41, 4  ;;  %v1907_v20 = vrot.slane %v1905_v10, 5  ;;  %1437 = vst [vmem:[#allocation3 + $0x78] sm:$0xf] %v1417_v12 }
 0x17a   : > { %9090 = vst [vmem:[#allocation17_spill] sm:$0xff] %v9089_v15  ;;  %v1457_v26 = vld [vmem:[#allocation2 + $0x18] sm:$0xf]  ;;  %1026 = vst.msk [vmem:[#allocation2 + $0x30] sm:$0x1] %vm506_vm12, %v1020_v13  ;;  %v1910_v30 = vrot.slane %v1908_v60, 6  ;;  %v2166_v31 = vsel %vm7105_vm9, %v7043_v59, %v2165_v11  ;;  %v1511_v42 = vor.u32 %v1510_v16, %v7101_v21 }
 0x17b   : > { %1152 = vst.msk [vmem:[#allocation2 + $0x30] sm:$0x8] %vm638_vm14, %v1144_v14  ;;  %v2167_v32 = vrot.slane %v2165_v11, 4  ;;  %v7124_v37 = vld [vmem:[#allocation2 + $0x18] sm:$0xf]  ;;  %v1534_v44 = vshll.u32 %v1457_v26, 16 }
 0x17c   : > { %1833 = vst [vmem:[#allocation3 + $0x1c] sm:$0xf] %v1759_v27  ;;  %2238 = vst [vmem:[#allocation3 + $0x38] sm:$0xf] %v2166_v31  ;;  %v1538_v33 = vshrl.u32 %v1457_v26, 16  ;;  %v9019_v45 = vrot.slane %v7124_v37, 5  ;;  %v7128_v36 = vor.u32 %v1910_v30, %v1907_v20 }
 0x17d   : > { %v1858_v48 = vld [vmem:[#allocation2 + $0x18] sm:$0xf]  ;;  %v2169_v7 = vsel %vm7105_vm9, %v2167_v32, %v2168_v38  ;;  %v1416_v52 = vld [vmem:[#allocation2 + $0x14] sm:$0xf]  ;;  %v7134_v62 = vrot.slane %v1511_v42, 4  ;;  %v7136_v1 = vrot.slane %v1534_v44, 5 }
 0x17e   : > { %v1935_v49 = vshrl.u32 %v1858_v48, 16  ;;  %v1938_v50 = vshll.u32 %v1858_v48, 16  ;;  %v7132_v59 = vld [vmem:[#allocation2 + $0x18] sm:$0xf]  ;;  %2239 = vst [vmem:[#allocation3 + $0x4c] sm:$0xf] %v2169_v7  ;;  %v1272_v48 = vpop.permute.xlu0 %1271  ;;  %v1274_v7 = vpop.permute.xlu1 %1273 }
 0x17f   : > { %9091 = vst [vmem:[#allocation18_spill] sm:$0xff] %v7132_v59  ;;  %v1540_v3 = vrot.slane %v1538_v33, 4  ;;  %v7140_v10 = vrot.slane %v9019_v45, 4  ;;  %1436 = vst [vmem:[#allocation3 + $0x64] sm:$0xf] %v1416_v52  ;;  %v9015_v12 = vrot.slane %v7132_v59, 6 }
 0x180   : > { %v1456_v4 = vld [vmem:[#allocation2 + $0x14] sm:$0xf]  ;;  %1153 = vst.msk [vmem:[#allocation2 + $0x34] sm:$0xf] %vm504_vm15, %v1146_v53  ;;  %v1937_v60 = vrot.slane %v1935_v49, 5  ;;  %v1940_v11 = vrot.slane %v1938_v50, 6 }
 0x181   : > { %1154 = vst.msk [vmem:[#allocation2 + $0x38] sm:$0x7] %vm641_vm0, %v1148_v56  ;;  %v7146_v13 = vld [vmem:[#allocation2 + $0x14] sm:$0xf]  ;;  %v1541_v14 = vor.u32 %v1540_v3, %v7136_v1  ;;  %v1524_v16 = vshll.u32 %v1456_v4, 16  ;;  %v1528_v20 = vshrl.u32 %v1456_v4, 16 }
 0x182   : > { %v9020_v26 = vrot.slane %v7146_v13, 5  ;;  %v1857_v27 = vld [vmem:[#allocation2 + $0x14] sm:$0xf]  ;;  %v7150_v30 = vor.u32 %v1940_v11, %v1937_v60  ;;  %v7154_v31 = vrot.slane %v9015_v12, 4  ;;  %v9094_v33 = vmov 0  ;;  %v1276_v43 = vpop.permute.xlu0 %1275 }
 0x183   : > { %v1925_v32 = vshrl.u32 %v1857_v27, 16  ;;  %v1928_v42 = vshll.u32 %v1857_v27, 16  ;;  %v7156_v44 = vld [vmem:[#allocation2 + $0x14] sm:$0xf]  ;;  %v9095_v33 = vsel %vm7160_vm10, 4294967295, %v9094_v33  ;;  %v7164_v49 = vrot.slane %v1541_v14, 4 }
 0x184   : > { %9092 = vst [vmem:[#allocation19_spill] sm:$0xff] %v7154_v31  ;;  %9093 = vst [vmem:[#allocation20_spill] sm:$0xff] %v7156_v44  ;;  %v7166_v50 = vrot.slane %v1524_v16, 5  ;;  %v1530_v52 = vrot.slane %v1528_v20, 4  ;;  %v7170_v53 = vrot.slane %v9020_v26, 4  ;;  %v9018_v11 = vrot.slane %v7156_v44, 6 }
 0x185   : > { %9096 = vst [vmem:[#allocation21_spill] sm:$0xff] %v9095_v33  ;;  %v1418_v56 = vld [vmem:[#allocation2 + $0x1c] sm:$0xf]  ;;  %1280 = vst.msk [vmem:[#allocation2 + $0x3c] sm:$0xe] %vm502_vm13, %v1272_v48  ;;  %v1927_v4 = vrot.slane %v1925_v32, 5  ;;  %v1892_v48 = vsel %vm7160_vm10, %v7030_v46, %v7074_v34 }
 0x186   : > { %1281 = vst.msk [vmem:[#allocation2 + $0x40] sm:$0xf] %vm504_vm15, %v1274_v7  ;;  %v1930_v60 = vrot.slane %v1928_v42, 6  ;;  %1438 = vst [vmem:[#allocation3 + $0x8c] sm:$0xf] %v1418_v56  ;;  %v1531_v16 = vor.u32 %v1530_v52, %v7166_v50  ;;  %v7187_v32 = vrot.slane %v9018_v11, 4 }
 0x187   : > { %v1458_v14 = vld [vmem:[#allocation2 + $0x1c] sm:$0xf]  ;;  %2094 = vst [vmem:[#allocation3 + $0xc] sm:$0xf] %v1892_v48  ;;  %1282 = vst.msk [vmem:[#allocation2 + $0x44] sm:$0x1] %vm506_vm12, %v1276_v43 }
 0x188   : > { %v1544_v20 = vshll.u32 %v1458_v14, 16  ;;  %v1548_v27 = vshrl.u32 %v1458_v14, 16  ;;  %v7177_v19 = vld [vmem:[#allocation2 + $0x1c] sm:$0xf]  ;;  %v7183_v7 = vor.u32 %v1930_v60, %v1927_v4  ;;  %9097 = vst [vmem:[#allocation22_spill] sm:$0xff] %v7187_v32  ;;  %v1400_v14 = vpop.permute.xlu1 %1399  ;;  %v7192_v40 = vrot.slane %v1531_v16, 4 }
 0x189   : > { %v1859_v12 = vld [vmem:[#allocation2 + $0x1c] sm:$0xf]  ;;  %v9021_v42 = vrot.slane %v7177_v19, 5  ;;  %v1420_v4 = vld [vmem:[#allocation2 + $0x24] sm:$0xf]  ;;  %v9112_v15 = vrot.slane %v7128_v36, 4 }
 0x18a   : > { %v1945_v56 = vshrl.u32 %v1859_v12, 16  ;;  %v7190_v52 = vld [vmem:[#allocation2 + $0x1c] sm:$0xf]  ;;  %v7194_v9 = vrot.slane %v1544_v20, 5  ;;  %v1550_v3 = vrot.slane %v1548_v27, 4  ;;  %v1948_v46 = vshll.u32 %v1859_v12, 16 }
 0x18b   : > { %9098 = vst [vmem:[#allocation23_spill] sm:$0xff] %v7190_v52  ;;  %1408 = vst.msk [vmem:[#allocation2 + $0x44] sm:$0x8] %vm638_vm14, %v1400_v14  ;;  %v7201_v11 = vrot.slane %v9021_v42, 4  ;;  %v9022_v28 = vrot.slane %v7190_v52, 6 }
 0x18c   : > { %v1947_v48 = vrot.slane %v1945_v56, 5  ;;  %1440 = vst [vmem:[#allocation3 + $0xb4] sm:$0xf] %v1420_v4  ;;  %v1460_v16 = vld [vmem:[#allocation2 + $0x24] sm:$0xf]  ;;  %v1551_v20 = vor.u32 %v1550_v3, %v7194_v9  ;;  %v1950_v27 = vrot.slane %v1948_v46, 6  ;;  %v1902_v3 = vsel %vm7160_vm10, %v1893_v55, %v7039_v58  ;;  %v1402_v46 = vpop.permute.xlu0 %1401  ;;  %v1404_v4 = vpop.permute.xlu1 %1403 }
 0x18d   : > { %v1564_v12 = vshll.u32 %v1460_v16, 16  ;;  %v1568_v45 = vshrl.u32 %v1460_v16, 16  ;;  %v7205_v26 = vld [vmem:[#allocation2 + $0x24] sm:$0xf]  ;;  %v7209_v43 = vrot.slane %v9022_v28, 4  ;;  %v1507_v56 = vsel %vm7051_vm6, %v7047_v0, %v7101_v21 }
 0x18e   : > { %v9024_v14 = vrot.slane %v7205_v26, 5  ;;  %v1861_v42 = vld [vmem:[#allocation2 + $0x24] sm:$0xf]  ;;  %v7223_v16 = vrot.slane %v1551_v20, 4  ;;  %v7225_v28 = vor.u32 %v1950_v27, %v1947_v48  ;;  %v1419_v24 = vld [vmem:[#allocation2 + $0x20] sm:$0xf] }
 0x18f   : > { %9099 = vst [vmem:[#allocation24_spill] sm:$0xff] %v7209_v43  ;;  %v7212_v60 = vld [vmem:[#allocation2 + $0x24] sm:$0xf]  ;;  %v7227_v38 = vrot.slane %v1564_v12, 5  ;;  %v1570_v6 = vrot.slane %v1568_v45, 4  ;;  %v1965_v0 = vshrl.u32 %v1861_v42, 16 }
 0x190   : > { %9100 = vst [vmem:[#allocation25_spill] sm:$0xff] %v7212_v60  ;;  %2095 = vst [vmem:[#allocation3 + $0x20] sm:$0xf] %v1902_v3  ;;  %v7233_v34 = vrot.slane %v9024_v14, 4  ;;  %v1968_v55 = vshll.u32 %v1861_v42, 16  ;;  %v9028_v21 = vrot.slane %v7212_v60, 6 }
 0x191   : > { %1695 = vst [vmem:[#allocation3 + $0x2c] sm:$0xf] %v1507_v56  ;;  %1409 = vst.msk [vmem:[#allocation2 + $0x48] sm:$0xf] %vm504_vm15, %v1402_v46  ;;  %v1459_v48 = vld [vmem:[#allocation2 + $0x20] sm:$0xf]  ;;  %v1571_v45 = vor.u32 %v1570_v6, %v7227_v38 }
 0x192   : > { %1410 = vst.msk [vmem:[#allocation2 + $0x4c] sm:$0x7] %vm641_vm0, %v1404_v4  ;;  %1439 = vst [vmem:[#allocation3 + $0xa0] sm:$0xf] %v1419_v24  ;;  %v1554_v27 = vshll.u32 %v1459_v48, 16  ;;  %v1558_v12 = vshrl.u32 %v1459_v48, 16 }
 0x193   : > { %v7238_v3 = vld [vmem:[#allocation2 + $0x20] sm:$0xf]  ;;  %v1967_v56 = vrot.slane %v1965_v0, 5  ;;  %v1970_v46 = vrot.slane %v1968_v55, 6  ;;  %v7242_v4 = vrot.slane %v9028_v21, 4  ;;  %v7245_v41 = vrot.slane %v1571_v45, 4 }
 0x194   : > { %v9030_v42 = vrot.slane %v7238_v3, 5  ;;  %v1860_v14 = vld [vmem:[#allocation2 + $0x20] sm:$0xf]  ;;  %v7247_v24 = vrot.slane %v1554_v27, 5  ;;  %v1560_v20 = vrot.slane %v1558_v12, 4  ;;  %v1517_v12 = vsel %vm7051_vm6, %v7134_v62, %v7070_v29 }
 0x195   : > { %9101 = vst [vmem:[#allocation26_spill] sm:$0xff] %v7242_v4  ;;  %v1955_v25 = vshrl.u32 %v1860_v14, 16  ;;  %v7249_v6 = vld [vmem:[#allocation2 + $0x20] sm:$0xf]  ;;  %v7251_v48 = vor.u32 %v1970_v46, %v1967_v56  ;;  %v1958_v55 = vshll.u32 %v1860_v14, 16  ;;  %v9103_v56 = vrot.slane %v7082_v51, 5 }
 0x196   : > { %9102 = vst [vmem:[#allocation27_spill] sm:$0xff] %v7249_v6  ;;  %v7255_v0 = vrot.slane %v9030_v42, 4  ;;  %v9032_v21 = vrot.slane %v7249_v6, 6  ;;  %v1421_v4 = vld [vmem:[#allocation2 + $0x28] sm:$0xf]  ;;  %v1561_v60 = vor.u32 %v1560_v20, %v7247_v24 }
 0x197   : > { %v1957_v45 = vrot.slane %v1955_v25, 5  ;;  %1441 = vst [vmem:[#allocation3 + $0xc8] sm:$0xf] %v1421_v4  ;;  %v1461_v27 = vld [vmem:[#allocation2 + $0x28] sm:$0xf]  ;;  %v1762_v14 = vsel %vm6835_vm11, %v7035_v54, %v9103_v56  ;;  %v1960_v42 = vrot.slane %v1958_v55, 6 }
 0x198   : > { %v7259_v43 = vld [vmem:[#allocation2 + $0x28] sm:$0xf]  ;;  %v7273_v25 = vrot.slane %v9032_v21, 4  ;;  %v1574_v20 = vshll.u32 %v1461_v27, 16  ;;  %1696 = vst [vmem:[#allocation3 + $0x40] sm:$0xf] %v1517_v12 }
 0x199   : > { %v1862_v4 = vld [vmem:[#allocation2 + $0x28] sm:$0xf]  ;;  %1834 = vst [vmem:[#allocation3 + $0x30] sm:$0xf] %v1762_v14  ;;  %v7275_v31 = vrot.slane %v1561_v60, 4  ;;  %v1578_v29 = vshrl.u32 %v1461_v27, 16  ;;  %v7280_v54 = vor.u32 %v1960_v42, %v1957_v45 }
 0x19a   : > { %9104 = vst [vmem:[#allocation28_spill] sm:$0xff] %v7273_v25  ;;  %v9034_v51 = vrot.slane %v7259_v43, 5  ;;  %v1975_v62 = vshrl.u32 %v1862_v4, 16  ;;  %v7278_v52 = vld [vmem:[#allocation2 + $0x28] sm:$0xf]  ;;  %v7282_v56 = vrot.slane %v1574_v20, 5 }
 0x19b   : > { %9105 = vst [vmem:[#allocation29_spill] sm:$0xff] %v7278_v52  ;;  %v1978_v55 = vshll.u32 %v1862_v4, 16  ;;  %v9035_v21 = vrot.slane %v7278_v52, 6  ;;  %v1422_v46 = vld [vmem:[#allocation2 + $0x2c] sm:$0xf]  ;;  %v1580_v25 = vrot.slane %v1578_v29, 4 }
 0x19c   : > { %v7287_v12 = vrot.slane %v9034_v51, 4  ;;  %v1977_v60 = vrot.slane %v1975_v62, 5  ;;  %1442 = vst [vmem:[#allocation3 + $0xdc] sm:$0xf] %v1422_v46  ;;  %v1462_v27 = vld [vmem:[#allocation2 + $0x2c] sm:$0xf] }
 0x19d   : > { %v9106_v14 = vrot.slane %v7059_v18, 5  ;;  %v1980_v20 = vrot.slane %v1978_v55, 6  ;;  %v7297_v4 = vrot.slane %v9035_v21, 4  ;;  %v1584_v29 = vshll.u32 %v1462_v27, 16  ;;  %v7299_v6 = vld [vmem:[#allocation2 + $0x2c] sm:$0xf] }
 0x19e   : > { %v1581_v46 = vor.u32 %v1580_v25, %v7282_v56  ;;  %v1588_v62 = vshrl.u32 %v1462_v27, 16  ;;  %v9038_v18 = vrot.slane %v7299_v6, 5  ;;  %v1863_v51 = vld [vmem:[#allocation2 + $0x2c] sm:$0xf]  ;;  %v1463_v59 = vld [vmem:[#allocation2 + $0x30] sm:$0xf] }
 0x19f   : > { %v1765_v42 = vsel %vm6835_vm11, %v7111_v17, %v9106_v14  ;;  %9107 = vst [vmem:[#allocation30_spill] sm:$0xff] %v7297_v4  ;;  %v7303_v32 = vld [vmem:[#allocation2 + $0x2c] sm:$0xf]  ;;  %v9109_v17 = vrot.slane %v7039_v58, 4  ;;  %v7310_v14 = vor.u32 %v1980_v20, %v1977_v60  ;;  %v7312_v21 = vrot.slane %v1584_v29, 5 }
 0x1a0   : > { %1835 = vst [vmem:[#allocation3 + $0x44] sm:$0xf] %v1765_v42  ;;  %9108 = vst [vmem:[#allocation31_spill] sm:$0xff] %v7303_v32  ;;  %v1985_v45 = vshrl.u32 %v1863_v51, 16  ;;  %v1988_v42 = vshll.u32 %v1863_v51, 16  ;;  %v7314_v25 = vrot.slane %v1581_v46, 4 }
 0x1a1   : > { %v1912_v55 = vsel %vm7160_vm10, %v9109_v17, %v7128_v36  ;;  %v1423_v4 = vld [vmem:[#allocation2 + $0x30] sm:$0xf]  ;;  %v1590_v27 = vrot.slane %v1588_v62, 4  ;;  %v7318_v52 = vrot.slane %v9038_v18, 4  ;;  %v9041_v58 = vrot.slane %v7303_v32, 6 }
 0x1a2   : > { %2096 = vst [vmem:[#allocation3 + $0x34] sm:$0xf] %v1912_v55  ;;  %1443 = vst [vmem:[#allocation3 + $0xf0] sm:$0xf] %v1423_v4  ;;  %v1987_v20 = vrot.slane %v1985_v45, 5  ;;  %v1990_v29 = vrot.slane %v1988_v42, 6  ;;  %v1527_v36 = vsel %vm7051_vm6, %v7096_v2, %v7166_v50 }
 0x1a3   : > { %v1594_v17 = vshll.u32 %v1463_v59, 16  ;;  %v7322_v57 = vld [vmem:[#allocation2 + $0x30] sm:$0xf]  ;;  %v1591_v51 = vor.u32 %v1590_v27, %v7312_v21  ;;  %v7327_v46 = vrot.slane %v9041_v58, 4  ;;  %v1598_v62 = vshrl.u32 %v1463_v59, 16 }
 0x1a4   : > { %v9045_v55 = vrot.slane %v7322_v57, 5  ;;  %v1864_v18 = vld [vmem:[#allocation2 + $0x30] sm:$0xf]  ;;  %v7330_v44 = vor.u32 %v1990_v29, %v1987_v20  ;;  %v6403_v32 = vld [vmem:[#allocation3 + $0x4] ss:$20 sps:$4 sm:$0xff]   ;;  %v9115_v50 = vrot.slane %v7124_v37, 5 }
 0x1a5   : > { %9110 = vst [vmem:[#allocation32_spill] sm:$0xff] %v7327_v46  ;;  %v7332_v4 = vrot.slane %v1594_v17, 5  ;;  %v1995_v60 = vshrl.u32 %v1864_v18, 16  ;;  %v1998_v45 = vshll.u32 %v1864_v18, 16  ;;  %v7334_v42 = vld [vmem:[#allocation2 + $0x30] sm:$0xf]  ;;  %2928 = vmatprep.mubr.bf16.mxu0 %v6403_v32 }
 0x1a6   : > { %9111 = vst [vmem:[#allocation33_spill] sm:$0xff] %v7334_v42  ;;  %v7336_v23 = vld [vmem:[#allocation3 + $0x3c] sm:$0xff]  ;;  %v7338_v39 = vrot.slane %v1591_v51, 4  ;;  %v1600_v27 = vrot.slane %v1598_v62, 4  ;;  %v7342_v58 = vrot.slane %v9045_v55, 4  ;;  %v9048_v59 = vrot.slane %v7334_v42, 6 }
 0x1a7   : > { %v6401_v46 = vld [vmem:[#allocation3] ss:$20 sps:$4 sm:$0xff]   ;;  %v1997_v29 = vrot.slane %v1995_v60, 5  ;;  %v2000_v17 = vrot.slane %v1998_v45, 6  ;;  %v7346_v18 = vld [vmem:[#allocation3 + $0x28] sm:$0xff]  ;;  %v1922_v51 = vsel %vm7160_vm10, %v9112_v15, %v7099_v8  ;;  %v9114_v60 = vrot.slane %v7146_v13, 5 }
 0x1a8   : > { %v1601_v62 = vor.u32 %v1600_v27, %v7332_v4  ;;  %v7356_v55 = vrot.slane %v9048_v59, 4  ;;  %v6404_v22 = vld [vmem:[#allocation3 + $0x8] ss:$20 sps:$4 sm:$0xff]   ;;  %v6406_v63 = vld [vmem:[#allocation3 + $0xc] ss:$20 sps:$4 sm:$0xff]   ;;  %v1771_v32 = vsel %vm6835_vm11, %v7170_v53, %v9115_v50  ;;  %2929 = vmatmul.mubr.bf16.vlgmr.msra.gmra.mxu0 %v6401_v46  ;;  %v9118_v50 = vrot.slane %v7183_v7, 4 }
 0x1a9   : > { %2097 = vst [vmem:[#allocation3 + $0x48] sm:$0xf] %v1922_v51  ;;  %v6416_v15 = vld [vmem:[%s9006_s3 + $0x130] sm:$0xff]   ;;  %v7367_v45 = vor.u32 %v2000_v17, %v1997_v29  ;;  %v1537_v51 = vsel %vm7051_vm6, %v7192_v40, %v7136_v1  ;;  %1697 = vst [vmem:[#allocation3 + $0x54] sm:$0xf] %v1527_v36  ;;  %v1768_v2 = vsel %vm6835_vm11, %v7078_v35, %v9114_v60  ;;  %3041 = vmatprep.mubr.bf16.mxu1 %v6406_v63  ;;  %v7400_v46 = vld [vmem:[%s9006_s3 + $0x128] sm:$0xff]  }
 0x1aa   : > { %9113 = vst [vmem:[#allocation34_spill] sm:$0xff] %v7356_v55  ;;  %v1424_v27 = vld [vmem:[#allocation2 + $0x34] sm:$0xf]  ;;  %v7385_v29 = vrot.slane %v1601_v62, 4  ;;  %1698 = vst [vmem:[#allocation3 + $0x68] sm:$0xf] %v1537_v51  ;;  %3042 = vmatmul.mubr.bf16.vlgmr.msra.gmra.mxu1 %v6404_v22  ;;  %6255 = vmatpush3.bf16.msra.mxu0 %v6989_v47 }
 0x1ab   : > { %v1464_v59 = vld [vmem:[#allocation2 + $0x34] sm:$0xf]  ;;  %1444 = vst [vmem:[#allocation3 + $0x104] sm:$0xf] %v1424_v27  ;;  %1836 = vst [vmem:[#allocation3 + $0x58] sm:$0xf] %v1768_v2  ;;  %6256 = vmatprep.subr.bf16.mxu0 %v6416_v15 }
 0x1ac   : > { %v7369_v20 = vld [vmem:[#allocation2 + $0x34] sm:$0xf]  ;;  %v1604_v17 = vshll.u32 %v1464_v59, 16  ;;  %v1608_v55 = vshrl.u32 %v1464_v59, 16  ;;  %1837 = vst [vmem:[#allocation3 + $0x6c] sm:$0xf] %v1771_v32  ;;  %v1547_v32 = vsel %vm7051_vm6, %v7164_v49, %v7194_v9 }
 0x1ad   : > { %v9050_v40 = vrot.slane %v7369_v20, 5  ;;  %v1865_v1 = vld [vmem:[#allocation2 + $0x34] sm:$0xf]  ;;  %v9117_v63 = vrot.slane %v7099_v8, 4  ;;  %v1425_v22 = vld [vmem:[#allocation2 + $0x38] sm:$0xf] }
 0x1ae   : > { %v2005_v37 = vshrl.u32 %v1865_v1, 16  ;;  %v2008_v13 = vshll.u32 %v1865_v1, 16  ;;  %v7389_v60 = vld [vmem:[#allocation2 + $0x34] sm:$0xf]  ;;  %v7402_v59 = vrot.slane %v1604_v17, 5  ;;  %v1610_v62 = vrot.slane %v1608_v55, 4  ;;  %6257 = vmatpush3.bf16.msra.mxu0 %v6416_v15 }
 0x1af   : > { %9116 = vst [vmem:[#allocation35_spill] sm:$0xff] %v7389_v60  ;;  %v1932_v53 = vsel %vm7160_vm10, %v9117_v63, %v7183_v7  ;;  %v7406_v36 = vrot.slane %v9050_v40, 4  ;;  %v9049_v47 = vrot.slane %v7389_v60, 6  ;;  %1445 = vst [vmem:[#allocation3 + $0x118] sm:$0xf] %v1425_v22  ;;  %v1942_v55 = vsel %vm7160_vm10, %v9118_v50, %v7150_v30  ;;  %v2263_v9 = vld [vmem:[#allocation3 + $0x30] sm:$0xff]  ;;  %6258 = vmatprep.subr.bf16.mxu0 %v7400_v46 }
 0x1b0   : > { %2098 = vst [vmem:[#allocation3 + $0x5c] sm:$0xf] %v1932_v53  ;;  %v2007_v8 = vrot.slane %v2005_v37, 5  ;;  %v2010_v27 = vrot.slane %v2008_v13, 6  ;;  %v1465_v51 = vld [vmem:[#allocation2 + $0x38] sm:$0xf]  ;;  %v1611_v17 = vor.u32 %v1610_v62, %v7402_v59 }
 0x1b1   : > { %v7409_v2 = vld [vmem:[#allocation2 + $0x38] sm:$0xf]  ;;  %v7423_v1 = vrot.slane %v9049_v47, 4  ;;  %v1614_v37 = vshll.u32 %v1465_v51, 16  ;;  %v1618_v13 = vshrl.u32 %v1465_v51, 16  ;;  %v7433_v62 = vld [vmem:[%s9006_s3 + $0x120] sm:$0xff]  }
 0x1b2   : > { %v1866_v63 = vld [vmem:[#allocation2 + $0x38] sm:$0xf]  ;;  %2099 = vst [vmem:[#allocation3 + $0x70] sm:$0xf] %v1942_v55  ;;  %1699 = vst [vmem:[#allocation3 + $0x7c] sm:$0xf] %v1547_v32  ;;  %v7425_v7 = vor.u32 %v2010_v27, %v2007_v8  ;;  %6259 = vmatpush3.bf16.msra.mxu0 %v7400_v46 }
 0x1b3   : > { %9119 = vst [vmem:[#allocation36_spill] sm:$0xff] %v7423_v1  ;;  %v9053_v53 = vrot.slane %v7409_v2, 5  ;;  %v2015_v22 = vshrl.u32 %v1866_v63, 16  ;;  %v2018_v50 = vshll.u32 %v1866_v63, 16  ;;  %v7428_v35 = vld [vmem:[#allocation2 + $0x38] sm:$0xf]  ;;  %v1557_v63 = vsel %vm7051_vm6, %v7223_v16, %v7247_v24  ;;  %6260 = vmatprep.subr.bf16.mxu0 %v7433_v62 }
 0x1b4   : > { %9120 = vst [vmem:[#allocation37_spill] sm:$0xff] %v7428_v35  ;;  %v2266_v49 = vld [vmem:[#allocation3 + $0x44] sm:$0xff]  ;;  %v7435_v51 = vrot.slane %v1611_v17, 4  ;;  %v7437_v55 = vrot.slane %v1614_v37, 5  ;;  %v1620_v8 = vrot.slane %v1618_v13, 4  ;;  %v9055_v27 = vrot.slane %v7428_v35, 6 }
 0x1b5   : > { %v6408_v32 = vld [vmem:[#allocation3 + $0x2c] ss:$20 sps:$4 sm:$0xff]   ;;  %v7444_v15 = vrot.slane %v9053_v53, 4  ;;  %v2017_v47 = vrot.slane %v2015_v22, 5  ;;  %v2020_v40 = vrot.slane %v2018_v50, 6  ;;  %v5572_v42 = vcombine.low %v2263_v9, %v2266_v49 }
 0x1b6   : > { %v6410_v1 = vld [vmem:[#allocation3 + $0x34] ss:$20 sps:$4 sm:$0xff]   ;;  %v1621_v17 = vor.u32 %v1620_v8, %v7437_v55  ;;  %v7449_v37 = vrot.slane %v9055_v27, 4  ;;  %2936 = vmatprep.mubr.bf16.mxu0 %v6408_v32  ;;  %v1426_v13 = vld [vmem:[#allocation2 + $0x3c] sm:$0xf]  ;;  %v9122_v32 = vcombine.low %v7346_v18, %v7336_v23  ;;  %v9123_v9 = vrot.slane %v7177_v19, 5  ;;  %6261 = vmatpush3.bf16.msra.mxu0 %v7433_v62 }
 0x1b7   : > { %v1466_v60 = vld [vmem:[#allocation2 + $0x3c] sm:$0xf]  ;;  %v7455_v53 = vor.u32 %v2020_v40, %v2017_v47  ;;  %3049 = vmatprep.mubr.bf16.mxu1 %v6410_v1  ;;  %1446 = vst [vmem:[#allocation3 + $0x12c] sm:$0xf] %v1426_v13  ;;  %1700 = vst [vmem:[#allocation3 + $0x90] sm:$0xf] %v1557_v63 }
 0x1b8   : > { %9121 = vst [vmem:[#allocation38_spill] sm:$0xff] %v7449_v37  ;;  %v1624_v22 = vshll.u32 %v1466_v60, 16  ;;  %v1628_v50 = vshrl.u32 %v1466_v60, 16  ;;  %v7457_v8 = vld [vmem:[#allocation2 + $0x3c] sm:$0xf]  ;;  %2937 = vmatmul.mubr.bf16.gmra.mxu0 %v9122_v32  ;;  %v1774_v16 = vsel %vm6835_vm11, %v7140_v10, %v9123_v9  ;;  %v7467_v24 = vrot.slane %v1621_v17, 4  ;;  %3050 = vmatmul.mubr.bf16.gmra.mxu1 %v5572_v42 }
 0x1b9   : > { %v1867_v35 = vld [vmem:[#allocation2 + $0x3c] sm:$0xf]  ;;  %v9056_v40 = vrot.slane %v7457_v8, 5  ;;  %1838 = vst [vmem:[#allocation3 + $0x80] sm:$0xf] %v1774_v16  ;;  %v2268_v63 = vld [vmem:[#allocation3 + $0x50] sm:$0xff] }
 0x1ba   : > { %v2025_v47 = vshrl.u32 %v1867_v35, 16  ;;  %v2028_v60 = vshll.u32 %v1867_v35, 16  ;;  %v7470_v1 = vld [vmem:[#allocation2 + $0x3c] sm:$0xf]  ;;  %v7479_v10 = vrot.slane %v1624_v22, 5  ;;  %v1630_v18 = vrot.slane %v1628_v50, 4 }
 0x1bb   : > { %9124 = vst [vmem:[#allocation39_spill] sm:$0xff] %v7470_v1  ;;  %v7476_v19 = vld [vmem:[%s9006_s3 + $0x118] sm:$0xff]   ;;  %v9058_v49 = vrot.slane %v7470_v1, 6  ;;  %v7485_v42 = vrot.slane %v9056_v40, 4  ;;  %v2269_v50 = vld [vmem:[#allocation3 + $0x58] sm:$0xff]  ;;  %v9125_v37 = vrot.slane %v7238_v3, 5 }
 0x1bc   : > { %v2271_v35 = vld [vmem:[#allocation3 + $0x64] sm:$0xff]  ;;  %v2027_v46 = vrot.slane %v2025_v47, 5  ;;  %v2030_v17 = vrot.slane %v2028_v60, 6  ;;  %v2272_v32 = vld [vmem:[#allocation3 + $0x6c] sm:$0xff]  ;;  %v1631_v9 = vor.u32 %v1630_v18, %v7479_v10  ;;  %v9127_v3 = vrot.slane %v7225_v28, 4  ;;  %6262 = vmatprep.subr.bf16.mxu0 %v7476_v19 }
 0x1bd   : > { %v6412_v13 = vld [vmem:[#allocation3 + $0x54] ss:$20 sps:$4 sm:$0xff]   ;;  %v7490_v22 = vrot.slane %v9058_v49, 4  ;;  %v6414_v16 = vld [vmem:[#allocation3 + $0x5c] ss:$20 sps:$4 sm:$0xff]   ;;  %v5575_v23 = vcombine.low %v2268_v63, %v2271_v35  ;;  %v1777_v40 = vsel %vm6835_vm11, %v7201_v11, %v9125_v37  ;;  %v9126_v49 = vrot.slane %v7150_v30, 4  ;;  %6263 = vmatpush3.bf16.msra.mxu0 %v7476_v19 }
 0x1be   : > { %v1427_v27 = vld [vmem:[#allocation2 + $0x40] sm:$0xf]  ;;  %v7497_v47 = vor.u32 %v2030_v17, %v2027_v46  ;;  %2944 = vmatprep.mubr.bf16.mxu0 %v6412_v13  ;;  %1839 = vst [vmem:[#allocation3 + $0x94] sm:$0xf] %v1777_v40  ;;  %v1962_v11 = vsel %vm7160_vm10, %v9127_v3, %v7280_v54  ;;  %3057 = vmatprep.mubr.bf16.mxu1 %v6414_v16 }
 0x1bf   : > { %1447 = vst [vmem:[#allocation3 + $0x140] sm:$0xf] %v1427_v27  ;;  %v1467_v60 = vld [vmem:[#allocation2 + $0x40] sm:$0xf]  ;;  %v1952_v63 = vsel %vm7160_vm10, %v9126_v49, %v7225_v28  ;;  %v1567_v27 = vsel %vm7051_vm6, %v7275_v31, %v7227_v38  ;;  %v5577_v46 = vcombine.low %v2269_v50, %v2272_v32  ;;  %2101 = vst [vmem:[#allocation3 + $0x98] sm:$0xf] %v1962_v11 }
 0x1c0   : > { %v7499_v18 = vld [vmem:[#allocation2 + $0x40] sm:$0xf]  ;;  %v1634_v37 = vshll.u32 %v1467_v60, 16  ;;  %v1638_v40 = vshrl.u32 %v1467_v60, 16  ;;  %2100 = vst [vmem:[#allocation3 + $0x84] sm:$0xf] %v1952_v63  ;;  %2945 = vmatmul.mubr.bf16.gmra.mxu0 %v5575_v23  ;;  %v1577_v3 = vsel %vm7051_vm6, %v7245_v41, %v7282_v56 }
 0x1c1   : > { %v1868_v1 = vld [vmem:[#allocation2 + $0x40] sm:$0xf]  ;;  %v9060_v35 = vrot.slane %v7499_v18, 5  ;;  %1701 = vst [vmem:[#allocation3 + $0xa4] sm:$0xf] %v1567_v27  ;;  %v7519_v28 = vrot.slane %v1631_v9, 4  ;;  %3058 = vmatmul.mubr.bf16.gmra.mxu1 %v5577_v46 }
 0x1c2   : > { %v7516_v30 = vld [vmem:[#allocation2 + $0x40] sm:$0xf]  ;;  %v2035_v49 = vshrl.u32 %v1868_v1, 16  ;;  %v2038_v17 = vshll.u32 %v1868_v1, 16  ;;  %v6442_v38 = vld [vmem:[%s9006_s3 + $0x110] sm:$0xff]   ;;  %v7527_v32 = vrot.slane %v1634_v37, 5 }
 0x1c3   : > { %v9059_v13 = vrot.slane %v7516_v30, 6  ;;  %v1640_v50 = vrot.slane %v1638_v40, 4  ;;  %v7531_v62 = vrot.slane %v9060_v35, 4  ;;  %v6417_v9 = vld [vmem:[#allocation3 + $0x7c] ss:$20 sps:$4 sm:$0xff]   ;;  %v9129_v40 = vrot.slane %v7205_v26, 5  ;;  %6264 = vmatprep.subr.bf16.mxu0 %v6442_v38 }
 0x1c4   : > { %v2037_v1 = vrot.slane %v2035_v49, 5  ;;  %v2040_v16 = vrot.slane %v2038_v17, 6  ;;  %v1428_v63 = vld [vmem:[#allocation2 + $0x44] sm:$0xf]  ;;  %2952 = vmatprep.mubr.bf16.mxu0 %v6417_v9  ;;  %1702 = vst [vmem:[#allocation3 + $0xb8] sm:$0xf] %v1577_v3  ;;  %6265 = vmatpush3.bf16.msra.mxu0 %v6442_v38 }
 0x1c5   : > { %v7535_v60 = vrot.slane %v9059_v13, 4  ;;  %v1641_v11 = vor.u32 %v1640_v50, %v7527_v32  ;;  %1448 = vst [vmem:[#allocation3 + $0x154] sm:$0xf] %v1428_v63  ;;  %v1468_v27 = vld [vmem:[#allocation2 + $0x44] sm:$0xf]  ;;  %v1780_v46 = vsel %vm6835_vm11, %v7255_v0, %v9129_v40  ;;  %v9130_v49 = vrot.slane %v7259_v43, 5 }
 0x1c6   : > { %v7542_v23 = vld [vmem:[#allocation2 + $0x44] sm:$0xf]  ;;  %v9131_v56 = vrot.slane %v7280_v54, 4  ;;  %v7562_v26 = vld [vmem:[%s9006_s3 + $0x108] sm:$0xff]   ;;  %v7564_v50 = vor.u32 %v2040_v16, %v2037_v1  ;;  %v2277_v0 = vld [vmem:[#allocation3 + $0x8c] sm:$0xff]  ;;  %v1644_v9 = vshll.u32 %v1468_v27, 16 }
 0x1c7   : > { %9128 = vst [vmem:[#allocation40_spill] sm:$0xff] %v7535_v60  ;;  %v1869_v37 = vld [vmem:[#allocation2 + $0x44] sm:$0xf]  ;;  %v1783_v41 = vsel %vm6835_vm11, %v7233_v34, %v9130_v49  ;;  %v1648_v43 = vshrl.u32 %v1468_v27, 16  ;;  %v1803_v63 = vrot.slane %v7542_v23, 5  ;;  %v7570_v34 = vrot.slane %v1641_v11, 4  ;;  %6266 = vmatprep.subr.bf16.mxu0 %v7562_v26 }
 0x1c8   : > { %v1972_v17 = vsel %vm7160_vm10, %v9131_v56, %v7251_v48  ;;  %v7567_v3 = vld [vmem:[#allocation2 + $0x44] sm:$0xf]  ;;  %1840 = vst [vmem:[#allocation3 + $0xa8] sm:$0xf] %v1780_v46  ;;  %1841 = vst [vmem:[#allocation3 + $0xbc] sm:$0xf] %v1783_v41  ;;  %v1587_v11 = vsel %vm7051_vm6, %v7314_v25, %v7312_v21  ;;  %6267 = vmatpush3.bf16.msra.mxu0 %v7562_v26 }
 0x1c9   : > { %2102 = vst [vmem:[#allocation3 + $0xac] sm:$0xf] %v1972_v17  ;;  %v2045_v54 = vshrl.u32 %v1869_v37, 16  ;;  %v2048_v40 = vshll.u32 %v1869_v37, 16  ;;  %v1429_v1 = vld [vmem:[#allocation2 + $0x48] sm:$0xf] }
 0x1ca   : > { %v2274_v27 = vld [vmem:[#allocation3 + $0x78] sm:$0xff]  ;;  %v7574_v31 = vrot.slane %v1644_v9, 5  ;;  %1449 = vst [vmem:[#allocation3 + $0x168] sm:$0xf] %v1429_v1  ;;  %v9132_v46 = vrot.slane %v7251_v48, 4  ;;  %v2275_v37 = vld [vmem:[#allocation3 + $0x80] sm:$0xff] }
 0x1cb   : > { %v2278_v56 = vld [vmem:[#allocation3 + $0x94] sm:$0xff]  ;;  %v1650_v41 = vrot.slane %v1648_v43, 4  ;;  %v2047_v17 = vrot.slane %v2045_v54, 5  ;;  %v2050_v16 = vrot.slane %v2048_v40, 6  ;;  %v5580_v49 = vcombine.low %v2274_v27, %v2277_v0  ;;  %1703 = vst [vmem:[#allocation3 + $0xcc] sm:$0xf] %v1587_v11 }
 0x1cc   : > { %v6419_v13 = vld [vmem:[#allocation3 + $0x84] ss:$20 sps:$4 sm:$0xff]   ;;  %v1982_v19 = vsel %vm7160_vm10, %v9132_v46, %v7310_v14  ;;  %v7587_v48 = vrot.slane %v1803_v63, 4  ;;  %v5582_v60 = vcombine.low %v2275_v37, %v2278_v56  ;;  %v6454_v21 = vld [vmem:[%s9006_s3 + $0x100] sm:$0xff]   ;;  %v9133_v37 = vrot.slane %v7567_v3, 6 }
 0x1cd   : > { %v1469_v35 = vld [vmem:[#allocation2 + $0x48] sm:$0xf]  ;;  %2103 = vst [vmem:[#allocation3 + $0xc0] sm:$0xf] %v1982_v19  ;;  %3065 = vmatprep.mubr.bf16.mxu1 %v6419_v13  ;;  %v1651_v25 = vor.u32 %v1650_v41, %v7574_v31  ;;  %v7595_v0 = vor.u32 %v2050_v16, %v2047_v17  ;;  %2953 = vmatmul.mubr.bf16.gmra.mxu0 %v5580_v49  ;;  %v2280_v40 = vld [vmem:[#allocation3 + $0xa0] sm:$0xff]  ;;  %v9136_v26 = vrot.slane %v7310_v14, 4 }
 0x1ce   : > { %v1654_v9 = vshll.u32 %v1469_v35, 16  ;;  %v1658_v1 = vshrl.u32 %v1469_v35, 16  ;;  %v7589_v46 = vld [vmem:[#allocation2 + $0x48] sm:$0xf]  ;;  %v1597_v35 = vsel %vm7051_vm6, %v7338_v39, %v7332_v4  ;;  %3066 = vmatmul.mubr.bf16.gmra.mxu1 %v5582_v60  ;;  %v7612_v41 = vrot.slane %v9133_v37, 4  ;;  %6268 = vmatprep.subr.bf16.mxu0 %v6454_v21 }
 0x1cf   : > { %v9061_v13 = vrot.slane %v7589_v46, 5  ;;  %v1870_v43 = vld [vmem:[#allocation2 + $0x48] sm:$0xf]  ;;  %1704 = vst [vmem:[#allocation3 + $0xe0] sm:$0xf] %v1597_v35  ;;  %v7607_v11 = vrot.slane %v1651_v25, 4  ;;  %6269 = vmatpush3.bf16.msra.mxu0 %v6454_v21 }
 0x1d0   : > { %v7598_v54 = vld [vmem:[#allocation2 + $0x48] sm:$0xf]  ;;  %v7605_v38 = vrot.slane %v1654_v9, 5  ;;  %v1660_v27 = vrot.slane %v1658_v1, 4  ;;  %v2055_v56 = vshrl.u32 %v1870_v43, 16  ;;  %v2058_v16 = vshll.u32 %v1870_v43, 16 }
 0x1d1   : > { %v2283_v19 = vld [vmem:[#allocation3 + $0xb4] sm:$0xff]  ;;  %v7616_v39 = vrot.slane %v9061_v13, 4  ;;  %v2281_v60 = vld [vmem:[#allocation3 + $0xa8] sm:$0xff]  ;;  %v1430_v43 = vld [vmem:[#allocation2 + $0x4c] sm:$0x3]  ;;  %v9134_v13 = vrot.slane %v7299_v6, 5 }
 0x1d2   : > { %v6422_v4 = vld [vmem:[#allocation3 + $0xa4] ss:$20 sps:$4 sm:$0xff]   ;;  %v1661_v17 = vor.u32 %v1660_v27, %v7605_v38  ;;  %v2057_v9 = vrot.slane %v2055_v56, 5  ;;  %v2060_v1 = vrot.slane %v2058_v16, 6  ;;  %v5585_v35 = vcombine.low %v2280_v40, %v2283_v19  ;;  %1450 = vst [vmem:[#allocation3 + $0x17c] sm:$0x3] %v1430_v43 }
 0x1d3   : > { %2960 = vmatprep.mubr.bf16.mxu0 %v6422_v4  ;;  %v1470_v37 = vld [vmem:[#allocation2 + $0x4c] sm:$0x7]  ;;  %v1786_v27 = vsel %vm6835_vm11, %v7287_v12, %v9134_v13  ;;  %v9135_v56 = vrot.slane %v7322_v57, 5  ;;  %v1992_v16 = vsel %vm7160_vm10, %v9136_v26, %v7330_v44  ;;  %v7645_v25 = vld [vmem:[#allocation3 + $0xc8] sm:$0xff]  ;;  %v9138_v21 = vrot.slane %v7369_v20, 5 }
 0x1d4   : > { %v7621_v49 = vld [vmem:[#allocation2 + $0x4c] sm:$0x7]  ;;  %v7638_v19 = vrot.slane %v1661_v17, 4  ;;  %v7640_v6 = vor.u32 %v2060_v1, %v2057_v9  ;;  %v6424_v43 = vld [vmem:[#allocation3 + $0xac] ss:$20 sps:$4 sm:$0xff]   ;;  %v1664_v12 = vshll.u32 %v1470_v37, 16  ;;  %v1607_v1 = vsel %vm7051_vm6, %v7385_v29, %v7402_v59 }
 0x1d5   : > { %v1789_v40 = vsel %vm6835_vm11, %v7318_v52, %v9135_v56  ;;  %v2284_v4 = vld [vmem:[#allocation3 + $0xbc] sm:$0xff]  ;;  %v1668_v13 = vshrl.u32 %v1470_v37, 16  ;;  %1842 = vst [vmem:[#allocation3 + $0xd0] sm:$0xf] %v1786_v27  ;;  %2104 = vst [vmem:[#allocation3 + $0xd4] sm:$0xf] %v1992_v16  ;;  %3073 = vmatprep.mubr.bf16.mxu1 %v6424_v43  ;;  %2961 = vmatmul.mubr.bf16.gmra.mxu0 %v5585_v35  ;;  %v1617_v29 = vsel %vm7051_vm6, %v7435_v51, %v7437_v55 }
 0x1d6   : > { %1843 = vst [vmem:[#allocation3 + $0xe4] sm:$0xf] %v1789_v40  ;;  %v1809_v57 = vrot.slane %v7621_v49, 5  ;;  %v1871_v52 = vld [vmem:[#allocation2 + $0x4c] sm:$0xf]  ;;  %v5587_v14 = vcombine.low %v2281_v60, %v2284_v4  ;;  %v9137_v17 = vrot.slane %v7330_v44, 4 }
 0x1d7   : > { %v7643_v56 = vld [vmem:[#allocation2 + $0x4c] sm:$0xf]  ;;  %v2063_v37 = vrot.slane %v7640_v6, 4  ;;  %v1666_v27 = vrot.slane %v1664_v12, 5  ;;  %v1670_v40 = vrot.slane %v1668_v13, 4  ;;  %v2065_v26 = vshrl.u32 %v1871_v52, 16 }
 0x1d8   : > { %v2002_v9 = vsel %vm7160_vm10, %v9137_v17, %v7367_v45  ;;  %1705 = vst [vmem:[#allocation3 + $0xf4] sm:$0xf] %v1607_v1  ;;  %v1811_v44 = vrot.slane %v1809_v57, 4  ;;  %v2068_v60 = vshll.u32 %v1871_v52, 16  ;;  %v2213_v16 = vrot.slane %v7643_v56, 6  ;;  %v2289_v4 = vld [vmem:[#allocation3 + $0xdc] sm:$0xff]  ;;  %3074 = vmatmul.mubr.bf16.gmra.mxu1 %v5587_v14 }
 0x1d9   : > { %2105 = vst [vmem:[#allocation3 + $0xe8] sm:$0xf] %v2002_v9  ;;  %v6427_v17 = vld [vmem:[#allocation3 + $0xcc] ss:$20 sps:$4 sm:$0xff]   ;;  %v1671_v59 = vor.u32 %v1670_v40, %v1666_v27  ;;  %v2067_v43 = vrot.slane %v2065_v26, 5  ;;  %v5590_v12 = vcombine.low %v7645_v25, %v2289_v4  ;;  %v1792_v13 = vsel %vm6835_vm11, %v7342_v58, %v9138_v21 }
 0x1da   : > { %1706 = vst [vmem:[#allocation3 + $0x108] sm:$0xf] %v1617_v29  ;;  %1851 = vst [vmem:[#allocation3 + $0x184] sm:$0x3] %v1811_v44  ;;  %v2070_v35 = vrot.slane %v2068_v60, 6  ;;  %v2215_v52 = vrot.slane %v2213_v16, 4  ;;  %2968 = vmatprep.mubr.bf16.mxu0 %v6427_v17 }
 0x1db   : > { %v9139_v51 = vrot.slane %v7409_v2, 5  ;;  %1844 = vst [vmem:[#allocation3 + $0xf8] sm:$0xf] %v1792_v13  ;;  %v9140_v20 = vrot.slane %v7367_v45, 4  ;;  %v9141_v58 = vrot.slane %v7425_v7, 4  ;;  %v1637_v45 = vsel %vm7051_vm6, %v7519_v28, %v7527_v32  ;;  %v9158_v29 = vld [vmem:[#allocation20_spill] sm:$0xff] }
 0x1dc   : > { %v9142_v2 = vrot.slane %v7457_v8, 5  ;;  %v2071_v9 = vor.u32 %v2070_v35, %v2067_v43  ;;  %2255 = vst [vmem:[#allocation3 + $0x18c] sm:$0x3] %v2215_v52  ;;  %1708 = vst [vmem:[#allocation3 + $0x130] sm:$0xf] %v1637_v45  ;;  %v9143_v1 = vrot.slane %v7499_v18, 5 }
 0x1dd   : > { %v1795_v55 = vsel %vm6835_vm11, %v7406_v36, %v9139_v51  ;;  %v2012_v25 = vsel %vm7160_vm10, %v9140_v20, %v7425_v7  ;;  %v2022_v14 = vsel %vm7160_vm10, %v9141_v58, %v7455_v53  ;;  %v1627_v36 = vsel %vm7051_vm6, %v7467_v24, %v7479_v10  ;;  %2969 = vmatmul.mubr.bf16.gmra.mxu0 %v5590_v12  ;;  %v9160_v43 = vld [vmem:[#allocation16_spill] sm:$0xff]  ;;  %v9161_v13 = vld [vmem:[#allocation18_spill] sm:$0xff]  ;;  %v9164_v51 = vld [vmem:[#allocation23_spill] sm:$0xff] }
 0x1de   : > { %1845 = vst [vmem:[#allocation3 + $0x10c] sm:$0xf] %v1795_v55  ;;  %2106 = vst [vmem:[#allocation3 + $0xfc] sm:$0xf] %v2012_v25  ;;  %v1798_v7 = vsel %vm6835_vm11, %v7444_v15, %v9142_v2  ;;  %v1801_v24 = vsel %vm6835_vm11, %v7485_v42, %v9143_v1  ;;  %v9144_v10 = vrot.slane %v7455_v53, 4  ;;  %v9145_v15 = vrot.slane %v7497_v47, 4 }
 0x1df   : > { %2107 = vst [vmem:[#allocation3 + $0x110] sm:$0xf] %v2022_v14  ;;  %1707 = vst [vmem:[#allocation3 + $0x11c] sm:$0xf] %v1627_v36  ;;  %v1647_v42 = vsel %vm7051_vm6, %v7570_v34, %v7574_v31  ;;  %v1657_v53 = vsel %vm7051_vm6, %v7607_v11, %v7605_v38  ;;  %v9146_v18 = vrot.slane %v7589_v46, 5  ;;  %v9147_v31 = vrot.slane %v7564_v50, 4 }
 0x1e0   : > { %1846 = vst [vmem:[#allocation3 + $0x120] sm:$0xf] %v1798_v7  ;;  %v2032_v8 = vsel %vm7160_vm10, %v9144_v10, %v7497_v47  ;;  %v2042_v28 = vsel %vm7160_vm10, %v9145_v15, %v7564_v50  ;;  %1847 = vst [vmem:[#allocation3 + $0x134] sm:$0xf] %v1801_v24  ;;  %v1804_v47 = vsel %vm6835_vm11, %v7531_v62, %v1803_v63  ;;  %v6429_v40 = vld [vmem:[#allocation3 + $0xd4] ss:$20 sps:$4 sm:$0xff]  }
 0x1e1   : > { %2108 = vst [vmem:[#allocation3 + $0x124] sm:$0xf] %v2032_v8  ;;  %2109 = vst [vmem:[#allocation3 + $0x138] sm:$0xf] %v2042_v28  ;;  %v1807_v32 = vsel %vm6835_vm11, %v7587_v48, %v9146_v18  ;;  %v2052_v23 = vsel %vm7160_vm10, %v9147_v31, %v7595_v0  ;;  %v9148_v62 = vrot.slane %v7595_v0, 4  ;;  %v1667_v34 = vsel %vm7051_vm6, %v7638_v19, %v1666_v27  ;;  %v9149_v11 = vld [vmem:[#allocation13_spill] sm:$0xff] }
 0x1e2   : > { %1709 = vst [vmem:[#allocation3 + $0x144] sm:$0xf] %v1647_v42  ;;  %1710 = vst [vmem:[#allocation3 + $0x158] sm:$0xf] %v1657_v53  ;;  %v1672_v48 = vrot.slane %v1671_v59, 4  ;;  %v1810_v50 = vsel %vm6835_vm11, %v7616_v39, %v1809_v57  ;;  %v2072_v0 = vsel %vm7160_vm10, %v2063_v37, %v2071_v9  ;;  %v2073_v38 = vrot.slane %v2071_v9, 4  ;;  %3081 = vmatprep.mubr.bf16.mxu1 %v6429_v40 }
 0x1e3   : > { %1848 = vst [vmem:[#allocation3 + $0x148] sm:$0xf] %v1804_v47  ;;  %1849 = vst [vmem:[#allocation3 + $0x15c] sm:$0xf] %v1807_v32  ;;  %v2062_v63 = vsel %vm7160_vm10, %v9148_v62, %v7640_v6  ;;  %v6432_v46 = vld [vmem:[#allocation3 + $0xd0] ss:$20 sps:$4 sm:$0xff]  }
 0x1e4   : > { %2110 = vst [vmem:[#allocation3 + $0x14c] sm:$0xf] %v2052_v23  ;;  %2111 = vst [vmem:[#allocation3 + $0x160] sm:$0xf] %v2062_v63  ;;  %v9150_v26 = vrot.slane %v9149_v11, 6  ;;  %v9151_v19 = vld [vmem:[#allocation11_spill] sm:$0xff]  ;;  %3082 = vmatmul.mubr.bf16.gmra.mxu1 %v6432_v46 }
 0x1e5   : > { %1711 = vst [vmem:[#allocation3 + $0x16c] sm:$0xf] %v1667_v34  ;;  %v9152_v27 = vrot.slane %v9151_v19, 10  ;;  %v9154_v4 = vrot.slane %v7598_v54, 6  ;;  %v6433_v17 = vld [vmem:[#allocation3 + $0xf4] ss:$20 sps:$4 sm:$0xff]  }
 0x1e6   : > { %1712 = vst [vmem:[#allocation3 + $0x180] sm:$0x3] %v1672_v48  ;;  %1850 = vst [vmem:[#allocation3 + $0x170] sm:$0xf] %v1810_v50  ;;  %v9155_v39 = vld [vmem:[#allocation12_spill] sm:$0xff]  ;;  %v9157_v57 = vld [vmem:[#allocation15_spill] sm:$0xff]  ;;  %2976 = vmatprep.mubr.bf16.mxu0 %v6433_v17 }
 0x1e7   : > { %v2160_v60 = vsel %vm7105_vm9, %v9152_v27, %v9150_v26  ;;  %v2212_v49 = vrot.slane %v9154_v4, 4  ;;  %2112 = vst [vmem:[#allocation3 + $0x174] sm:$0xf] %v2072_v0  ;;  %v9156_v6 = vrot.slane %v9155_v39, 6  ;;  %v9159_v59 = vrot.slane %v9158_v29, 6  ;;  %v9163_v12 = vld [vmem:[#allocation22_spill] sm:$0xff] }
 0x1e8   : > { %2236 = vst [vmem:[#allocation3 + $0x10] sm:$0xf] %v2160_v60  ;;  %v9162_v35 = vrot.slane %v9161_v13, 6  ;;  %2113 = vst [vmem:[#allocation3 + $0x188] sm:$0x3] %v2073_v38  ;;  %v9165_v55 = vrot.slane %v9164_v51, 6 }
 0x1e9   : > { %v2163_v37 = vsel %vm7105_vm9, %v9157_v57, %v9156_v6  ;;  %v2172_v21 = vsel %vm7105_vm9, %v9160_v43, %v9159_v59  ;;  %v9166_v20 = vld [vmem:[#allocation19_spill] sm:$0xff]  ;;  %v9169_v36 = vld [vmem:[#allocation24_spill] sm:$0xff]  ;;  %v9170_v2 = vld [vmem:[#allocation25_spill] sm:$0xff]  ;;  %v9191_v17 = vrot.slane %v7516_v30, 6  ;;  %v9192_v6 = vrot.slane %v7567_v3, 6 }
 0x1ea   : > { %v2175_v52 = vsel %vm7105_vm9, %v9163_v12, %v9162_v35  ;;  %2237 = vst [vmem:[#allocation3 + $0x24] sm:$0xf] %v2163_v37  ;;  %2240 = vst [vmem:[#allocation3 + $0x60] sm:$0xf] %v2172_v21  ;;  %v2178_v25 = vsel %vm7105_vm9, %v9166_v20, %v9165_v55  ;;  %v9167_v58 = vld [vmem:[#allocation27_spill] sm:$0xff]  ;;  %v9171_v7 = vrot.slane %v9170_v2, 6 }
 0x1eb   : > { %2241 = vst [vmem:[#allocation3 + $0x74] sm:$0xf] %v2175_v52  ;;  %v9168_v14 = vrot.slane %v9167_v58, 6  ;;  %v9172_v9 = vld [vmem:[#allocation28_spill] sm:$0xff]  ;;  %v2292_v24 = vld [vmem:[#allocation3 + $0xf0] sm:$0xff]  ;;  %v9175_v15 = vld [vmem:[#allocation26_spill] sm:$0xff]  ;;  %v2205_v39 = vsel %vm7105_vm9, %v7490_v22, %v9191_v17  ;;  %v2214_v22 = vsel %vm7105_vm9, %v2212_v49, %v2213_v16 }
 0x1ec   : > { %v2184_v1 = vsel %vm7105_vm9, %v9172_v9, %v9171_v7  ;;  %2242 = vst [vmem:[#allocation3 + $0x88] sm:$0xf] %v2178_v25  ;;  %v9173_v10 = vld [vmem:[#allocation29_spill] sm:$0xff]  ;;  %v9176_v42 = vld [vmem:[#allocation31_spill] sm:$0xff]  ;;  %v9178_v47 = vld [vmem:[#allocation30_spill] sm:$0xff]  ;;  %v9194_v29 = vrot.slane %v7598_v54, 6 }
 0x1ed   : > { %v2181_v45 = vsel %vm7105_vm9, %v9169_v36, %v9168_v14  ;;  %v9174_v8 = vrot.slane %v9173_v10, 6  ;;  %2244 = vst [vmem:[#allocation3 + $0xb0] sm:$0xf] %v2184_v1  ;;  %v9177_v53 = vrot.slane %v9176_v42, 6  ;;  %v9179_v32 = vld [vmem:[#allocation33_spill] sm:$0xff]  ;;  %v9181_v31 = vld [vmem:[#allocation32_spill] sm:$0xff] }
 0x1ee   : > { %2243 = vst [vmem:[#allocation3 + $0x9c] sm:$0xf] %v2181_v45  ;;  %v9180_v40 = vrot.slane %v9179_v32, 6  ;;  %v9182_v62 = vld [vmem:[#allocation35_spill] sm:$0xff]  ;;  %v9184_v34 = vld [vmem:[#allocation34_spill] sm:$0xff]  ;;  %v9185_v0 = vld [vmem:[#allocation37_spill] sm:$0xff]  ;;  %v2211_v59 = vsel %vm7105_vm9, %v7612_v41, %v9194_v29 }
 0x1ef   : > { %v2187_v28 = vsel %vm7105_vm9, %v9175_v15, %v9174_v8  ;;  %v2190_v18 = vsel %vm7105_vm9, %v9178_v47, %v9177_v53  ;;  %v9183_v63 = vrot.slane %v9182_v62, 6  ;;  %v2295_v46 = vld [vmem:[#allocation3 + $0x104] sm:$0xff]  ;;  %v6435_v50 = vld [vmem:[#allocation3 + $0xfc] ss:$20 sps:$4 sm:$0xff]   ;;  %v9186_v38 = vrot.slane %v9185_v0, 6  ;;  %v2307_v49 = vld [vmem:[#allocation3 + $0x154] sm:$0xff] }
 0x1f0   : > { %v2193_v23 = vsel %vm7105_vm9, %v9181_v31, %v9180_v40  ;;  %2245 = vst [vmem:[#allocation3 + $0xc4] sm:$0xf] %v2187_v28  ;;  %2246 = vst [vmem:[#allocation3 + $0xd8] sm:$0xf] %v2190_v18  ;;  %v9187_v11 = vld [vmem:[#allocation36_spill] sm:$0xff]  ;;  %v9188_v19 = vld [vmem:[#allocation39_spill] sm:$0xff]  ;;  %3089 = vmatprep.mubr.bf16.mxu1 %v6435_v50  ;;  %v5595_v30 = vcombine.low %v2292_v24, %v2295_v46 }
 0x1f1   : > { %v2196_v48 = vsel %vm7105_vm9, %v9184_v34, %v9183_v63  ;;  %2247 = vst [vmem:[#allocation3 + $0xec] sm:$0xf] %v2193_v23  ;;  %v2199_v26 = vsel %vm7105_vm9, %v9187_v11, %v9186_v38  ;;  %v9189_v27 = vrot.slane %v9188_v19, 6  ;;  %v9190_v60 = vld [vmem:[#allocation38_spill] sm:$0xff]  ;;  %v9193_v57 = vld [vmem:[#allocation40_spill] sm:$0xff]  ;;  %v2304_v16 = vld [vmem:[#allocation3 + $0x140] sm:$0xff] }
 0x1f2   : > { %2248 = vst [vmem:[#allocation3 + $0x100] sm:$0xf] %v2196_v48  ;;  %v2208_v37 = vsel %vm7105_vm9, %v9193_v57, %v9192_v6  ;;  %2249 = vst [vmem:[#allocation3 + $0x114] sm:$0xf] %v2199_v26  ;;  %v6437_v3 = vld [vmem:[#allocation3 + $0xf8] ss:$20 sps:$4 sm:$0xff]   ;;  %2977 = vmatmul.mubr.bf16.gmra.mxu0 %v5595_v30  ;;  %v5605_v52 = vcombine.low %v2304_v16, %v2307_v49 }
 0x1f3   : > { %v2202_v4 = vsel %vm7105_vm9, %v9190_v60, %v9189_v27  ;;  %2251 = vst [vmem:[#allocation3 + $0x13c] sm:$0xf] %v2205_v39  ;;  %2252 = vst [vmem:[#allocation3 + $0x150] sm:$0xf] %v2208_v37  ;;  %v6438_v43 = vld [vmem:[#allocation3 + $0x11c] ss:$20 sps:$4 sm:$0xff]   ;;  %3090 = vmatmul.mubr.bf16.gmra.mxu1 %v6437_v3 }
 0x1f4   : > { %2250 = vst [vmem:[#allocation3 + $0x128] sm:$0xf] %v2202_v4  ;;  %2253 = vst [vmem:[#allocation3 + $0x164] sm:$0xf] %v2211_v59  ;;  %v6440_v21 = vld [vmem:[#allocation3 + $0x124] ss:$20 sps:$4 sm:$0xff]   ;;  %2984 = vmatprep.mubr.bf16.mxu0 %v6438_v43 }
 0x1f5   : > { %2254 = vst [vmem:[#allocation3 + $0x178] sm:$0xf] %v2214_v22  ;;  %3097 = vmatprep.mubr.bf16.mxu1 %v6440_v21  ;;  %v2298_v54 = vld [vmem:[#allocation3 + $0x118] sm:$0xff]  ;;  %v2301_v13 = vld [vmem:[#allocation3 + $0x12c] sm:$0xff]  ;;  %v6443_v35 = vld [vmem:[#allocation3 + $0x120] ss:$20 sps:$4 sm:$0xff]  }
 0x1f6   : > { %v5600_v41 = vcombine.low %v2298_v54, %v2301_v13  ;;  %v6444_v12 = vld [vmem:[#allocation3 + $0x144] ss:$20 sps:$4 sm:$0xff]   ;;  %v6446_v56 = vld [vmem:[#allocation3 + $0x14c] ss:$20 sps:$4 sm:$0xff]   ;;  %v6449_v51 = vld [vmem:[#allocation3 + $0x148] ss:$20 sps:$4 sm:$0xff]  }
 0x1f7   : > { %v6450_v55 = vld [vmem:[#allocation3 + $0x16c] ss:$20 sps:$4 sm:$0x3f]   ;;  %v6452_v20 = vld [vmem:[#allocation3 + $0x174] ss:$20 sps:$4 sm:$0x3f]  }
 0x1f8   : > { %v6455_v25 = vld [vmem:[#allocation3 + $0x168] ss:$20 sps:$4 sm:$0x3f]   ;;  %v6456_v58 = vld [vmem:[#allocation3 + $0x170] ss:$20 sps:$4 sm:$0x3f]  }
 0x1f9   : > { %v6457_v14 = vld [vmem:[#allocation3 + $0x10] ss:$20 sps:$4 sm:$0xff]   ;;  %v6458_v36 = vld [vmem:[#allocation3 + $0x38] ss:$20 sps:$4 sm:$0xff]   ;;  %v6459_v45 = vld [vmem:[#allocation3 + $0x60] ss:$20 sps:$4 sm:$0xff]  }
 0x1fa   : > { %2985 = vmatmul.mubr.bf16.gmra.mxu0 %v5600_v41  ;;  %v6460_v2 = vld [vmem:[#allocation3 + $0x88] ss:$20 sps:$4 sm:$0xff]   ;;  %v6461_v7 = vld [vmem:[#allocation3 + $0xb0] ss:$20 sps:$4 sm:$0xff]   ;;  %v6462_v9 = vld [vmem:[#allocation3 + $0xd8] ss:$20 sps:$4 sm:$0xff]  }
 0x1fb   : > { %3098 = vmatmul.mubr.bf16.gmra.mxu1 %v6443_v35  ;;  %2992 = vmatprep.mubr.bf16.mxu0 %v6444_v12  ;;  %v6463_v1 = vld [vmem:[#allocation3 + $0x100] ss:$20 sps:$4 sm:$0xff]   ;;  %v6464_v24 = vld [vmem:[#allocation3 + $0x128] ss:$20 sps:$4 sm:$0xff]   ;;  %v6465_v10 = vld [vmem:[#allocation3 + $0x150] ss:$20 sps:$4 sm:$0xff]  }
 0x1fc   : > { %3105 = vmatprep.mubr.bf16.mxu1 %v6446_v56  ;;  %v6466_v8 = vld [vmem:[#allocation3 + $0x178] ss:$20 sps:$4 sm:$0x3f]   ;;  %v6469_v42 = vld [vmem:[%s9009_s6 + $0x70] sm:$0xff]   ;;  %v6473_v32 = vld [vmem:[%s9009_s6 + $0x60] sm:$0xff]  }
 0x1fd   : > { %v6467_v15 = vld [vmem:[%s9009_s6 + $0x78] sm:$0xff]   ;;  %v6470_v53 = vld [vmem:[%s9009_s6 + $0x30] sm:$0xff]   ;;  %v6471_v47 = vld [vmem:[%s9009_s6 + $0x68] sm:$0xff]  }
 0x1fe   : > { %v6468_v28 = vld [vmem:[%s9009_s6 + $0x38] sm:$0xff]   ;;  %6044 = vmatprep.subr.bf16.mxu1 %v6467_v15  ;;  %v6472_v18 = vld [vmem:[%s9009_s6 + $0x28] sm:$0xff]   ;;  %v6474_v40 = vld [vmem:[%s9009_s6 + $0x20] sm:$0xff]  }
 0x1ff   : > { %6045 = vmatpush3.bf16.msra.mxu1 %v6468_v28  ;;  %v6475_v31 = vld [vmem:[%s9009_s6 + $0x58] sm:$0xff]   ;;  %v6477_v62 = vld [vmem:[%s9009_s6 + $0x50] sm:$0xff]   ;;  %v6483_v6 = vld [vmem:[%s9009_s6 + $0xe8] sm:$0xff]  }
 0x200   : > { %6046 = vmatprep.subr.bf16.mxu1 %v6469_v42  ;;  %v6476_v23 = vld [vmem:[%s9009_s6 + $0x18] sm:$0xff]   ;;  %v6479_v46 = vld [vmem:[%s9009_s6 + $0x10] sm:$0xff]   ;;  %v6484_v29 = vld [vmem:[%s9009_s6 + $0xa8] sm:$0xff]  }
 0x201   : > { %v6478_v63 = vld [vmem:[%s9009_s6 + $0xf8] sm:$0xff]   ;;  %v6481_v26 = vld [vmem:[%s9009_s6 + $0xf0] sm:$0xff]   ;;  %v6485_v59 = vld [vmem:[%s9009_s6 + $0x48] sm:$0xff]  }
 0x202   : > { %2993 = vmatmul.mubr.bf16.gmra.mxu0 %v5605_v52  ;;  %6120 = vmatprep.subr.bf16.mxu0 %v6478_v63  ;;  %v6480_v50 = vld [vmem:[%s9009_s6 + $0xb8] sm:$0xff]   ;;  %v6482_v39 = vld [vmem:[%s9009_s6 + $0xb0] sm:$0xff]   ;;  %v6486_v43 = vld [vmem:[%s9009_s6 + $0x8] sm:$0xff]  }
 0x203   : > { %3106 = vmatmul.mubr.bf16.gmra.mxu1 %v6449_v51  ;;  %3000 = vmatprep.mubr.bf16.mxu0 %v6450_v55  ;;  %v6487_v21 = vld [vmem:[%s9009_s6 + $0xe0] sm:$0xff]   ;;  %v6489_v12 = vld [vmem:[%s9009_s6 + $0xd8] sm:$0xff]   ;;  %v6494_v42 = vld [vmem:[%s9009_s6 + $0x90] sm:$0xff]  }
 0x204   : > { %3113 = vmatprep.mubr.bf16.mxu1 %v6452_v20  ;;  %6047 = vmatpush3.bf16.msra.mxu1 %v6470_v53  ;;  %v6488_v35 = vld [vmem:[%s9009_s6 + $0xa0] sm:$0xff]   ;;  %v6490_v51 = vld [vmem:[%s9009_s6 + $0x98] sm:$0xff]   ;;  %v6495_v53 = vld [vmem:[%s9009_s6 + $0xc8] sm:$0xff]  }
 0x205   : > { %6048 = vmatprep.subr.bf16.mxu1 %v6471_v47  ;;  %v6491_v55 = vld [vmem:[%s9009_s6 + $0x40] sm:$0xff]  }
 0x206   : > { %v6493_v28 = vld [vmem:[%s9009_s6] sm:$0xff]  }
 0x208   : > { %6049 = vmatpush3.bf16.msra.mxu1 %v6472_v18 }
 0x209   : > { %6050 = vmatprep.subr.bf16.mxu1 %v6473_v32  ;;  %v6496_v32 = vld [vmem:[%s9009_s6 + $0x88] sm:$0xff]  }
 0x20a   : > { %3001 = vmatmul.mubr.bf16.gmra.mxu0 %v6455_v25  ;;  %v6492_v25 = vld [vmem:[%s9009_s6 + $0xd0] sm:$0xff]  }
 0x20b   : > { %3114 = vmatmul.mubr.bf16.gmra.mxu1 %v6456_v58  ;;  %6270 = vmatprep.mubr.bf16.mxu0 %v6457_v14 }
 0x20c   : > { %6051 = vmatpush3.bf16.msra.mxu1 %v6474_v40  ;;  %v7985_v40 = vld [vmem:[%s9009_s6 + $0x138] sm:$0xff]  }
 0x20d   : > { %6052 = vmatprep.subr.bf16.mxu1 %v6475_v31  ;;  %9195 = vst [vmem:[#allocation13_spill] sm:$0xff] %v7985_v40 }
 0x210   : > { %6053 = vmatpush3.bf16.msra.mxu1 %v6476_v23  ;;  %v6497_v23 = vld [vmem:[%s9009_s6 + $0xc0] sm:$0xff]  }
 0x211   : > { %6054 = vmatprep.subr.bf16.mxu1 %v6477_v62 }
 0x212   : > { %6271 = vmatmul.mubr.bf16.vlgmr.msra.gmra.mxu0 %v6458_v36 }
 0x213   : > { %6274 = vmatprep.mubr.bf16.mxu0 %v6459_v45  ;;  %6121 = vmatpush3.bf16.msra.mxu0 %v6480_v50 }
 0x214   : > { %6055 = vmatpush3.bf16.msra.mxu1 %v6479_v46  ;;  %6122 = vmatprep.subr.bf16.mxu0 %v6481_v26  ;;  %v6498_v46 = vld [vmem:[%s9009_s6 + $0x80] sm:$0xff]  }
 0x215   : > { %6056 = vmatprep.subr.bf16.mxu1 %v6485_v59 }
 0x217   : > { %6123 = vmatpush3.bf16.msra.mxu0 %v6482_v39 }
 0x218   : > { %6124 = vmatprep.subr.bf16.mxu0 %v6483_v6  ;;  %6057 = vmatpush3.bf16.msra.mxu1 %v6486_v43 }
 0x219   : > { %6058 = vmatprep.subr.bf16.mxu1 %v6491_v55 }
 0x21a   : > { %6275 = vmatmul.mubr.bf16.gmra.mxu0 %v6460_v2 }
 0x21b   : > { %6278 = vmatprep.mubr.bf16.mxu0 %v6461_v7  ;;  %6125 = vmatpush3.bf16.msra.mxu0 %v6484_v29 }
 0x21c   : > { %6126 = vmatprep.subr.bf16.mxu0 %v6487_v21  ;;  %6059 = vmatpush3.bf16.msra.mxu1 %v6493_v28 }
 0x21d   : > { %6290 = vmatprep.subr.bf16.mxu1 %v7985_v40 }
 0x21f   : > { %6127 = vmatpush3.bf16.msra.mxu0 %v6488_v35 }
 0x220   : > { %6128 = vmatprep.subr.bf16.mxu0 %v6489_v12 }
 0x222   : > { %6279 = vmatmul.mubr.bf16.gmra.mxu0 %v6462_v9 }
 0x223   : > { %6282 = vmatprep.mubr.bf16.mxu0 %v6463_v1  ;;  %6129 = vmatpush3.bf16.msra.mxu0 %v6490_v51 }
 0x224   : > { %6130 = vmatprep.subr.bf16.mxu0 %v6492_v25 }
 0x227   : > { %6131 = vmatpush3.bf16.msra.mxu0 %v6494_v42 }
 0x228   : > { %6132 = vmatprep.subr.bf16.mxu0 %v6495_v53 }
 0x22a   : > { %6283 = vmatmul.mubr.bf16.gmra.mxu0 %v6464_v24 }
 0x22b   : > { %6286 = vmatprep.mubr.bf16.mxu0 %v6465_v10  ;;  %6133 = vmatpush3.bf16.msra.mxu0 %v6496_v32 }
 0x22c   : > { %6134 = vmatprep.subr.bf16.mxu0 %v6497_v23 }
 0x22f   : > { %6135 = vmatpush3.bf16.msra.mxu0 %v6498_v46 }
 0x232   : > { %6287 = vmatmul.mubr.bf16.gmra.mxu0 %v6466_v8 }
 0x268   : > { %v5890_v34 = vpop.f32.mrf.mxu0 }
 0x26a   : > { %v7878_v48 = vpop.f32.mrf.mxu1  ;;  %v5891_v0 = vpop.f32.mrf.mxu0 }
 0x26b   : > { %v7886_v38 = vadd.f32 %v5891_v0, %v5890_v34 }
 0x26c   : > { %v7888_v11 = vpop.f32.mrf.mxu1  ;;  %v5893_v19 = vpop.f32.mrf.mxu0 }
 0x26e   : > { %v7893_v27 = vpop.f32.mrf.mxu1  ;;  %v5894_v60 = vpop.f32.mrf.mxu0 }
 0x26f   : > { %v7895_v4 = vadd.f32 %v5894_v60, %v5893_v19 }
 0x270   : > { %v7897_v17 = vpop.f32.mrf.mxu1 }
 0x278   : > { %v5896_v57 = vpop.f32.mrf.mxu0  ;;  %v7905_v37 = vpop.f32.mrf.mxu1 }
 0x27a   : > { %v5897_v22 = vpop.f32.mrf.mxu0  ;;  %v7915_v3 = vpop.f32.mrf.mxu1 }
 0x27b   : > { %v7913_v30 = vadd.f32 %v5897_v22, %v5896_v57  ;;  %v5974_v61 = vadd.f32 %v7915_v3, %v7905_v37 }
 0x27c   : > { %v5899_v54 = vpop.f32.mrf.mxu0  ;;  %v7923_v13 = vpop.f32.mrf.mxu1 }
 0x27e   : > { %v5900_v41 = vpop.f32.mrf.mxu0  ;;  %v7933_v16 = vpop.f32.mrf.mxu1 }
 0x27f   : > { %v7931_v56 = vadd.f32 %v5900_v41, %v5899_v54 }
 0x280   : > { %v5902_v49 = vpop.f32.mrf.mxu0 }
 0x281   : > { %v7935_v52 = vpop.f32.mrf.mxu1 }
 0x282   : > { %v5903_v20 = vpop.f32.mrf.mxu0 }
 0x283   : > { %v7946_v58 = vadd.f32 %v5903_v20, %v5902_v49  ;;  %v7948_v14 = vpop.f32.mrf.mxu1 }
 0x284   : > { %v5905_v36 = vpop.f32.mrf.mxu0 }
 0x285   : > { %v7950_v45 = vpop.f32.mrf.mxu1 }
 0x286   : > { %v5906_v2 = vpop.f32.mrf.mxu0 }
 0x287   : > { %v7952_v7 = vadd.f32 %v5906_v2, %v5905_v36  ;;  %v7954_v9 = vpop.f32.mrf.mxu1 }
 0x288   : > { %v5983_v37 = vadd.f32 %v7954_v9, %v7950_v45 }
 0x28d   : > { %v7956_v1 = vpop.f32.mrf.mxu0 }
 0x28e   : > { %v7958_v24 = vpop.f32.mrf.mxu1 }
 0x28f   : > { %v7960_v10 = vpop.f32.mrf.mxu0 }
 0x290   : > { %v7962_v8 = vpop.f32.mrf.mxu1  ;;  %v5910_v3 = vadd.f32 %v7960_v10, %v7956_v1  ;;  %v8059_v1 = vld [vmem:[%s9007_s4] ss:$0 sm:$0xff] }
 0x291   : > { %v7964_v15 = vpop.f32.mrf.mxu0 }
 0x292   : > { %v7975_v47 = vpop.f32.mrf.mxu1 }
 0x293   : > { %v7977_v18 = vpop.f32.mrf.mxu0 }
 0x294   : > { %v5988_v31 = vpop.f32.mrf.mxu1 }
 0x295   : > { %v5914_v62 = vpop.f32.mrf.mxu0 }
 0x297   : > { %v5915_v34 = vpop.f32.mrf.mxu0 }
 0x298   : > { %v5990_v63 = vpop.f32.mrf.mxu1  ;;  %v7994_v50 = vadd.f32 %v5915_v34, %v5914_v62 }
 0x299   : > { %v5917_v26 = vpop.f32.mrf.mxu0 }
 0x29a   : > { %v5991_v0 = vpop.f32.mrf.mxu1 }
 0x29b   : > { %v5918_v60 = vpop.f32.mrf.mxu0 }
 0x29c   : > { %v5993_v19 = vpop.f32.mrf.mxu1  ;;  %v7996_v39 = vadd.f32 %v5918_v60, %v5917_v26 }
 0x29d   : > { %v5920_v57 = vpop.f32.mrf.mxu0 }
 0x29e   : > { %v5994_v6 = vpop.f32.mrf.mxu1 }
 0x29f   : > { %v5921_v59 = vpop.f32.mrf.mxu0 }
 0x2a1   : > { %v5923_v43 = vpop.f32.mrf.mxu0 }
 0x2a3   : > { %v5924_v54 = vpop.f32.mrf.mxu0 }
 0x2a4   : > { %v5996_v29 = vpop.f32.mrf.mxu1 }
 0x2a6   : > { %v5997_v22 = vpop.f32.mrf.mxu1 }
 0x2a8   : > { %v5999_v21 = vpop.f32.mrf.mxu1 }
 0x2aa   : > { %v6000_v41 = vpop.f32.mrf.mxu1 }
 0x2ab   : > { %v6001_v45 = vadd.f32 %v6000_v41, %v5999_v21 }
 0x2b2   : > { %v5926_v35 = vpop.f32.mrf.mxu0 }
 0x2b3   : > { %v6002_v12 = vpop.f32.mrf.mxu1 }
 0x2b4   : > { %v5927_v49 = vpop.f32.mrf.mxu0 }
 0x2b5   : > { %v6003_v51 = vpop.f32.mrf.mxu1 }
 0x2b6   : > { %v7998_v55 = vpop.f32.mrf.mxu0  ;;  %v6004_v10 = vadd.f32 %v6003_v51, %v6002_v12 }
 0x2b7   : > { %v8000_v20 = vpop.f32.mrf.mxu1 }
 0x2b8   : > { %v8002_v25 = vpop.f32.mrf.mxu0 }
 0x2b9   : > { %v8004_v36 = vpop.f32.mrf.mxu1  ;;  %v5931_v21 = vadd.f32 %v8002_v25, %v7998_v55 }
 0x2ba   : > { %v8006_v2 = vpop.f32.mrf.mxu0 }
 0x2bb   : > { %v8008_v28 = vpop.f32.mrf.mxu1 }
 0x2bc   : > { %v5933_v42 = vpop.f32.mrf.mxu0 }
 0x2bd   : > { %v6009_v53 = vpop.f32.mrf.mxu1 }
 0x2be   : > { %v8010_v32 = vpop.f32.mrf.mxu0  ;;  %v6010_v41 = vadd.f32 %v6009_v53, %v8008_v28 }
 0x2bf   : > { %v8014_v62 = vpop.f32.mrf.mxu1 }
 0x2c0   : > { %v8012_v23 = vpop.f32.mrf.mxu0  ;;  %9197 = vst [vmem:[#allocation12_spill] sm:$0xff] %v8014_v62 }
 0x2c1   : > { %9196 = vst [vmem:[#allocation11_spill] sm:$0xff] %v8012_v23  ;;  %v8020_v26 = vpop.f32.mrf.mxu1 }
 0x2c2   : > { %v8016_v34 = vpop.f32.mrf.mxu0 }
 0x2c3   : > { %v8026_v33 = vpop.f32.mrf.mxu1 }
 0x2c4   : > { %v8018_v46 = vpop.f32.mrf.mxu0  ;;  %9201 = vst [vmem:[#allocation18_spill] sm:$0xff] %v8026_v33  ;;  %v3052_v33 = vadd.f32 %v5974_v61, %v7913_v30  ;;  %v5992_v61 = vadd.f32 %v5991_v0, %v5990_v63  ;;  %v5995_v30 = vadd.f32 %v5994_v6, %v5993_v19  ;;  %v8071_v19 = vadd.f32 %v5983_v37, %v7952_v7 }
 0x2c5   : > { %9198 = vst [vmem:[#allocation15_spill] sm:$0xff] %v8018_v46  ;;  %v6015_v62 = vpop.f32.mrf.mxu1  ;;  %v5968_v46 = vadd.f32 %v7888_v11, %v7878_v48  ;;  %v5986_v48 = vadd.f32 %v7962_v8, %v7958_v24  ;;  %v5928_v24 = vadd.f32 %v5927_v49, %v5926_v35 }
 0x2c6   : > { %v8022_v60 = vpop.f32.mrf.mxu0 }
 0x2c7   : > { %9199 = vst [vmem:[#allocation20_spill] sm:$0xff] %v8022_v60  ;;  %v5971_v60 = vadd.f32 %v7897_v17, %v7893_v27  ;;  %v5913_v27 = vadd.f32 %v7977_v18, %v7964_v15  ;;  %v5989_v17 = vadd.f32 %v5988_v31, %v7975_v47  ;;  %v3044_v15 = vadd.f32 %v5968_v46, %v7886_v38  ;;  %v8065_v47 = vld [vmem:[%s9008_s5] ss:$0 sm:$0xff]  ;;  %v9204_v55 = vld [vmem:[#allocation12_spill] sm:$0xff] }
 0x2c8   : > { %v8024_v40 = vpop.f32.mrf.mxu0  ;;  %v3068_v38 = vadd.f32 %v5986_v48, %v5910_v3  ;;  %v6013_v25 = vadd.f32 %v8020_v26, %v9204_v55 }
 0x2c9   : > { %9200 = vst [vmem:[#allocation16_spill] sm:$0xff] %v8024_v40  ;;  %v5977_v40 = vadd.f32 %v7933_v16, %v7923_v13  ;;  %v6017_v13 = vpop.f32.mrf.mxu1  ;;  %v5922_v16 = vadd.f32 %v5921_v59, %v5920_v57  ;;  %v3047_v63 = vadd.f32 %v5971_v60, %v7895_v4  ;;  %v8082_v4 = vadd.f32 %v5995_v30, %v7996_v39  ;;  %v9203_v60 = vld [vmem:[#allocation11_spill] sm:$0xff] }
 0x2ca   : > { %v8028_v44 = vpop.f32.mrf.mxu0  ;;  %v5937_v37 = vadd.f32 %v9203_v60, %v8010_v32 }
 0x2cb   : > { %9202 = vst [vmem:[#allocation22_spill] sm:$0xff] %v8028_v44  ;;  %v5980_v44 = vadd.f32 %v7948_v14, %v7935_v52  ;;  %v5998_v52 = vadd.f32 %v5997_v22, %v5996_v29  ;;  %v5925_v14 = vadd.f32 %v5924_v54, %v5923_v43  ;;  %v3055_v31 = vadd.f32 %v5977_v40, %v7931_v56  ;;  %v6018_v6 = vpop.f32.mrf.mxu1 }
 0x2cc   : > { %v8032_v5 = vpop.f32.mrf.mxu0  ;;  %v3071_v29 = vadd.f32 %v5989_v17, %v5913_v27  ;;  %v8077_v43 = vadd.f32 %v5992_v61, %v7994_v50  ;;  %v8086_v40 = vadd.f32 %v6004_v10, %v5928_v24  ;;  %v6007_v54 = vadd.f32 %v8004_v36, %v8000_v20  ;;  %v9205_v20 = vld [vmem:[#allocation15_spill] sm:$0xff] }
 0x2cd   : > { %v3060_v0 = vadd.f32 %v5980_v44, %v7946_v58  ;;  %v8074_v22 = vadd.f32 %v5998_v52, %v5922_v16  ;;  %v8079_v56 = vadd.f32 %v6001_v45, %v5925_v14  ;;  %v5934_v50 = vadd.f32 %v5933_v42, %v8006_v2  ;;  %v8094_v39 = vpop.f32.mrf.mxu1  ;;  %v9206_v2 = vld [vmem:[#allocation18_spill] sm:$0xff] }
 0x2ce   : > { %v8034_v23 = vpop.f32.mrf.mxu0  ;;  %v5940_v36 = vadd.f32 %v9205_v20, %v8016_v34  ;;  %v6016_v28 = vadd.f32 %v6015_v62, %v9206_v2  ;;  %v9207_v17 = vld [vmem:[#allocation20_spill] sm:$0xff]  ;;  %v6019_v32 = vadd.f32 %v6018_v6, %v6017_v13  ;;  %v8111_v26 = vadd.f32 %v6007_v54, %v5931_v21 }
 0x2cf   : > { %v6021_v14 = vpop.f32.mrf.mxu1 }
 0x2d0   : > { %v8051_v11 = vpop.f32.mrf.mxu0  ;;  %v9208_v61 = vld [vmem:[#allocation16_spill] sm:$0xff]  ;;  %v8120_v6 = vadd.f32 %v6016_v28, %v5940_v36 }
 0x2d1   : > { %v5943_v30 = vadd.f32 %v9208_v61, %v9207_v17 }
 0x2d2   : > { %v6272_v9 = vpop.f32.mrf.mxu0 }
 0x2d3   : > { %v3165_v8 = vadd.f32 %v6272_v9, %v3052_v33 }
 0x2d4   : > { %v3156_v18 = vpop.f32.mrf.mxu0 }
 0x2d5   : > { %v3244_v33 = vmul.f32 %v8059_v1, %v3165_v8  ;;  %v3157_v57 = vadd.f32 %v3156_v18, %v3044_v15  ;;  %v8116_v15 = vadd.f32 %v6010_v41, %v5934_v50  ;;  %v8118_v18 = vadd.f32 %v6013_v25, %v5937_v37  ;;  %v9209_v50 = vld [vmem:[#allocation22_spill] sm:$0xff] }
 0x2d6   : > { %v6273_v59 = vpop.f32.mrf.mxu0  ;;  %v8129_v41 = vadd.f32 %v8032_v5, %v9209_v50 }
 0x2d7   : > { %v3271_v44 = vadd.f32 %v8065_v47, %v3244_v33  ;;  %v3242_v58 = vmul.f32 %v8059_v1, %v3157_v57  ;;  %v3168_v7 = vadd.f32 %v6273_v59, %v3055_v31 }
 0x2d8   : > { %v3159_v35 = vpop.f32.mrf.mxu0 }
 0x2d9   : > { %v3291_v12 = vmax.f32 %v3271_v44, 0.0  ;;  %v3269_v49 = vadd.f32 %v8065_v47, %v3242_v58  ;;  %v3245_v51 = vmul.f32 %v8059_v1, %v3168_v7  ;;  %v3160_v46 = vadd.f32 %v3159_v35, %v3047_v63  ;;  %v6023_v58 = vpop.f32.mrf.mxu1 }
 0x2da   : > { %v6276_v42 = vpop.f32.mrf.mxu0  ;;  %v8124_v44 = vadd.f32 %v6019_v32, %v5943_v30 }
 0x2db   : > { %v8105_v53 = vpack.c.bf16 %v3291_v12, %v3291_v12  ;;  %v3289_v3 = vmax.f32 %v3269_v49, 0.0  ;;  %v3272_v48 = vadd.f32 %v8065_v47, %v3245_v51  ;;  %v3243_v27 = vmul.f32 %v8059_v1, %v3160_v46  ;;  %v6024_v2 = vpop.f32.mrf.mxu1 }
 0x2dc   : > { %v3181_v16 = vadd.f32 %v6276_v42, %v3068_v38  ;;  %v3172_v52 = vpop.f32.mrf.mxu0 }
 0x2dd   : > { %v3374_v34 = vrot.slane %v8105_v53, 7  ;;  %v5828_v62 = vpack.c.bf16 %v3289_v3, %v3289_v3  ;;  %v3292_v45 = vmax.f32 %v3272_v48, 0.0  ;;  %v3270_v9 = vadd.f32 %v8065_v47, %v3243_v27 }
 0x2de   : > { %v3248_v24 = vmul.f32 %v8059_v1, %v3181_v16  ;;  %v3173_v10 = vadd.f32 %v3172_v52, %v3060_v0  ;;  %v6277_v8 = vpop.f32.mrf.mxu0  ;;  %v8145_v48 = vadd.f32 %v6021_v14, %v8094_v39 }
 0x2df   : > { %v3369_v13 = vrot.slane %v5828_v62, 7  ;;  %v5831_v31 = vpack.c.bf16 %v3292_v45, %v3292_v45  ;;  %v3290_v63 = vmax.f32 %v3270_v9, 0.0  ;;  %v3184_v38 = vadd.f32 %v6277_v8, %v3071_v29 }
 0x2e0   : > { %v3275_v33 = vadd.f32 %v8065_v47, %v3248_v24  ;;  %v3246_v57 = vmul.f32 %v8059_v1, %v3173_v10  ;;  %v3175_v59 = vpop.f32.mrf.mxu0  ;;  %v3376_v0 = vrot.slane %v3374_v34, 4  ;;  %v8153_v62 = vadd.f32 %v8051_v11, %v8034_v23 }
 0x2e1   : > { %3447 = vst [vmem:[#allocation4] sm:$0xe] %v3369_v13  ;;  %v3377_v7 = vrot.slane %v5831_v31, 7  ;;  %v5829_v21 = vpack.c.bf16 %v3290_v63, %v3290_v63  ;;  %v3176_v54 = vadd.f32 %v3175_v59, %v8071_v19  ;;  %v3249_v49 = vmul.f32 %v8059_v1, %v3184_v38 }
 0x2e2   : > { %v3295_v35 = vmax.f32 %v3275_v33, 0.0  ;;  %v3273_v12 = vadd.f32 %v8065_v47, %v3246_v57  ;;  %v6280_v29 = vpop.f32.mrf.mxu0  ;;  %v3370_v51 = vrot.slane %v3369_v13, 4  ;;  %v9211_v63 = vmov 0  }
 0x2e3   : > { %v3378_v60 = vsel %vm6801_vm5, %v3376_v0, %v3377_v7  ;;  %v3371_v37 = vrot.slane %v5829_v21, 7  ;;  %v3247_v55 = vmul.f32 %v8059_v1, %v3176_v54  ;;  %v3276_v5 = vadd.f32 %v8065_v47, %v3249_v49 }
 0x2e4   : > { %3450 = vst [vmem:[#allocation4 + $0xc] sm:$0xf] %v3378_v60  ;;  %v8136_v25 = vpack.c.bf16 %v3295_v35, %v3295_v35  ;;  %v3293_v19 = vmax.f32 %v3273_v12, 0.0  ;;  %v3197_v20 = vadd.f32 %v6280_v29, %v8074_v22  ;;  %v3188_v36 = vpop.f32.mrf.mxu0  ;;  %v3379_v22 = vrot.slane %v3377_v7, 4 }
 0x2e5   : > { %v3372_v28 = vsel %vm6801_vm5, %v3370_v51, %v3371_v37  ;;  %v3373_v42 = vrot.slane %v3371_v37, 4  ;;  %v3274_v53 = vadd.f32 %v8065_v47, %v3247_v55  ;;  %v3189_v3 = vadd.f32 %v3188_v36, %v8077_v43 }
 0x2e6   : > { %3448 = vst [vmem:[#allocation4 + $0x4] sm:$0xf] %v3372_v28  ;;  %v5832_v27 = vpack.c.bf16 %v3293_v19, %v3293_v19  ;;  %v3296_v17 = vmax.f32 %v3276_v5, 0.0  ;;  %v3252_v61 = vmul.f32 %v8059_v1, %v3197_v20  ;;  %v6281_v30 = vpop.f32.mrf.mxu0  ;;  %v3386_v16 = vrot.slane %v8136_v25, 7 }
 0x2e7   : > { %v3375_v32 = vsel %vm6801_vm5, %v3373_v42, %v3374_v34  ;;  %v3294_v52 = vmax.f32 %v3274_v53, 0.0  ;;  %v8155_v43 = vadd.f32 %v6024_v2, %v6023_v58  ;;  %v3250_v24 = vmul.f32 %v8059_v1, %v3189_v3 }
 0x2e8   : > { %v3519_v39 = vld [vmem:[#allocation4] sm:$0xf]  ;;  %3449 = vst [vmem:[#allocation4 + $0x8] sm:$0xf] %v3375_v32  ;;  %v5835_v9 = vpack.c.bf16 %v3296_v17, %v3296_v17  ;;  %v3191_v10 = vpop.f32.mrf.mxu0  ;;  %v3200_v23 = vadd.f32 %v6281_v30, %v8079_v56  ;;  %v3380_v57 = vrot.slane %v5832_v27, 7  ;;  %v3279_v38 = vadd.f32 %v8065_v47, %v3252_v61 }
 0x2e9   : > { %v8157_v14 = vld [vmem:[#allocation4] sm:$0xe]  ;;  %v3540_v8 = vshrl.u32 %v3519_v39, 16  ;;  %v3543_v34 = vshll.u32 %v3519_v39, 16  ;;  %3469 = vst [vmem:[#allocation4 + $0x8] sm:$0x6] %v9211_v63  ;;  %v5833_v51 = vpack.c.bf16 %v3294_v52, %v3294_v52  ;;  %v3277_v39 = vadd.f32 %v8065_v47, %v3250_v24 }
 0x2ea   : > { %v3917_v45 = vld [vmem:[#allocation4] sm:$0xe]  ;;  %v5677_v11 = vrot.slane %v8157_v14, 9  ;;  %v6284_v59 = vpop.f32.mrf.mxu0  ;;  %v3388_v54 = vrot.slane %v3386_v16, 4  ;;  %v3389_v50 = vrot.slane %v5835_v9, 7  ;;  %v3381_v29 = vsel %vm6801_vm5, %v3379_v22, %v3380_v57 }
 0x2eb   : > { %v3938_v13 = vshrl.u32 %v3917_v45, 16  ;;  %v8160_v31 = vld [vmem:[#allocation4] sm:$0xc]  ;;  %v3941_v33 = vshll.u32 %v3917_v45, 16  ;;  %v8166_v0 = vrot.slane %v3540_v8, 4  ;;  %v8173_v56 = vrot.slane %v3543_v34, 5 }
 0x2ec   : > { %v3479_v58 = vld [vmem:[#allocation4] sm:$0xf]  ;;  %v8169_v21 = vld [vmem:[#allocation4 + $0xc] sm:$0xf]  ;;  %v3204_v60 = vpop.f32.mrf.mxu0  ;;  %3451 = vst [vmem:[#allocation4 + $0x10] sm:$0xf] %v3381_v29  ;;  %v3390_v28 = vsel %vm6801_vm5, %v3388_v54, %v3389_v50  ;;  %v3253_v45 = vmul.f32 %v8059_v1, %v3200_v23  ;;  %v3192_v34 = vadd.f32 %v3191_v10, %v8082_v4 }
 0x2ed   : > { %3499 = vst [vmem:[#allocation5] sm:$0xf] %v3479_v58  ;;  %v8175_v35 = vrot.slane %v3938_v13, 5  ;;  %v8177_v12 = vld [vmem:[#allocation4 + $0xc] sm:$0xf]  ;;  %v8183_v37 = vrot.slane %v3941_v33, 6  ;;  %v3213_v13 = vadd.f32 %v6284_v59, %v8116_v15  ;;  %v3205_v33 = vadd.f32 %v3204_v60, %v8086_v40 }
 0x2ee   : > { %v8179_v49 = vld [vmem:[#allocation4 + $0xc] sm:$0xf]  ;;  %v3573_v55 = vshrl.u32 %v8169_v21, 16  ;;  %v3967_v19 = vshrl.u32 %v8177_v12, 16  ;;  %v8188_v20 = vld [vmem:[#allocation4 + $0x4] sm:$0xf]  ;;  %v6285_v53 = vpop.f32.mrf.mxu0  ;;  %v3280_v23 = vadd.f32 %v8065_v47, %v3253_v45  ;;  %v3251_v40 = vmul.f32 %v8059_v1, %v3192_v34 }
 0x2ef   : > { %v9070_v5 = vrot.slane %v8179_v49, 6  ;;  %v3970_v36 = vshll.u32 %v8177_v12, 16  ;;  %v3382_v2 = vrot.slane %v3380_v57, 4  ;;  %3470 = vst [vmem:[#allocation4 + $0x10] sm:$0x8] %v9211_v63  ;;  %v3383_v42 = vrot.slane %v5833_v51, 7 }
 0x2f0   : > { %v3553_v27 = vshrl.u32 %v8188_v20, 16  ;;  %v3391_v17 = vrot.slane %v3389_v50, 4  ;;  %3454 = vst [vmem:[#allocation4 + $0x1c] sm:$0xf] %v3390_v28  ;;  %v3299_v61 = vmax.f32 %v3279_v38, 0.0  ;;  %v3207_v9 = vpop.f32.mrf.mxu0  ;;  %v3297_v24 = vmax.f32 %v3277_v39, 0.0 }
 0x2f1   : > { %v8196_v3 = vrot.slane %v9070_v5, 4  ;;  %v3480_v30 = vld [vmem:[#allocation4 + $0x4] sm:$0xf]  ;;  %3472 = vst [vmem:[#allocation4 + $0x1c] sm:$0x6] %v9211_v63  ;;  %v3384_v32 = vsel %vm6801_vm5, %v3382_v2, %v3383_v42  ;;  %v3385_v52 = vrot.slane %v3383_v42, 4  ;;  %v3216_v58 = vadd.f32 %v6285_v53, %v8118_v18 }
 0x2f2   : > { %v8199_v22 = vld [vmem:[#allocation4 + $0x4] sm:$0xf]  ;;  %3500 = vst [vmem:[#allocation5 + $0x14] sm:$0xf] %v3480_v30  ;;  %3452 = vst [vmem:[#allocation4 + $0x14] sm:$0xf] %v3384_v32  ;;  %v8206_v8 = vpack.c.bf16 %v3299_v61, %v3299_v61  ;;  %v6288_v54 = vpop.f32.mrf.mxu0  ;;  %v3256_v15 = vmul.f32 %v8059_v1, %v3213_v13  ;;  %v3254_v25 = vmul.f32 %v8059_v1, %v3205_v33 }
 0x2f3   : > { %v3481_v57 = vld [vmem:[#allocation4 + $0x8] sm:$0xf]  ;;  %v3387_v38 = vsel %vm6801_vm5, %v3385_v52, %v3386_v16  ;;  %3471 = vst [vmem:[#allocation4 + $0x14] sm:$0x1] %v9211_v63  ;;  %v3482_v50 = vld [vmem:[#allocation4 + $0xc] sm:$0xf]  ;;  %v5836_v10 = vpack.c.bf16 %v3297_v24, %v3297_v24  ;;  %v3257_v29 = vmul.f32 %v8059_v1, %v3216_v58  ;;  %v3278_v2 = vadd.f32 %v8065_v47, %v3251_v40 }
 0x2f4   : > { %3501 = vst [vmem:[#allocation5 + $0x28] sm:$0xf] %v3481_v57  ;;  %v3947_v4 = vshrl.u32 %v8199_v22, 16  ;;  %3453 = vst [vmem:[#allocation4 + $0x18] sm:$0xf] %v3387_v38  ;;  %v3398_v16 = vrot.slane %v8206_v8, 7  ;;  %v3208_v28 = vadd.f32 %v3207_v9, %v8111_v26  ;;  %v3116_v42 = vadd.f32 %v8145_v48, %v8129_v41  ;;  %v3220_v39 = vpop.f32.mrf.mxu0 }
 0x2f5   : > { %3502 = vst [vmem:[#allocation5 + $0x3c] sm:$0xf] %v3482_v50  ;;  %v3300_v59 = vmax.f32 %v3280_v23, 0.0  ;;  %v3119_v53 = vadd.f32 %v8155_v43, %v8153_v62  ;;  %v3950_v61 = vshll.u32 %v8199_v22, 16  ;;  %v3283_v32 = vadd.f32 %v8065_v47, %v3256_v15 }
 0x2f6   : > { %v8224_v18 = vld [vmem:[#allocation4 + $0x10] sm:$0xf]  ;;  %v3281_v52 = vadd.f32 %v8065_v47, %v3254_v25  ;;  %v3392_v9 = vrot.slane %v5836_v10, 7  ;;  %v3229_v48 = vadd.f32 %v6288_v54, %v3116_v42  ;;  %v3298_v13 = vmax.f32 %v3278_v2, 0.0  ;;  %v6289_v25 = vpop.f32.mrf.mxu0 }
 0x2f7   : > { %v8226_v51 = vld [vmem:[#allocation4 + $0x10] sm:$0xf]  ;;  %v3583_v30 = vshrl.u32 %v8224_v18, 16  ;;  %v5839_v41 = vpack.c.bf16 %v3300_v59, %v3300_v59  ;;  %v3284_v33 = vadd.f32 %v8065_v47, %v3257_v29  ;;  %v3400_v38 = vrot.slane %v3398_v16, 4 }
 0x2f8   : > { %v8228_v60 = vld [vmem:[#allocation4 + $0x10] sm:$0xf]  ;;  %v3977_v45 = vshrl.u32 %v8226_v51, 16  ;;  %v8241_v34 = vld [vmem:[#allocation4 + $0x1c] sm:$0xf]  ;;  %v3980_v62 = vshll.u32 %v8226_v51, 16  ;;  %v3393_v24 = vsel %vm6801_vm5, %v3391_v17, %v3392_v9  ;;  %v3255_v58 = vmul.f32 %v8059_v1, %v3208_v28 }
 0x2f9   : > { %v8243_v26 = vld [vmem:[#allocation4 + $0x1c] sm:$0xf]  ;;  %v9071_v43 = vrot.slane %v8228_v60, 6  ;;  %v3483_v57 = vld [vmem:[#allocation4 + $0x10] sm:$0xf]  ;;  %v3401_v23 = vrot.slane %v5839_v41, 7  ;;  %v5837_v15 = vpack.c.bf16 %v3298_v13, %v3298_v13  ;;  %v3221_v13 = vadd.f32 %v3220_v39, %v8120_v6 }
 0x2fa   : > { %3503 = vst [vmem:[#allocation5 + $0x50] sm:$0xf] %v3483_v57  ;;  %v3613_v54 = vshrl.u32 %v8241_v34, 16  ;;  %v3394_v40 = vrot.slane %v3392_v9, 4  ;;  %3455 = vst [vmem:[#allocation4 + $0x20] sm:$0xf] %v3393_v24  ;;  %v3282_v28 = vadd.f32 %v8065_v47, %v3255_v58  ;;  %v3260_v57 = vmul.f32 %v8059_v1, %v3229_v48 }
 0x2fb   : > { %v3402_v10 = vsel %vm6801_vm5, %v3400_v38, %v3401_v23  ;;  %v3403_v59 = vrot.slane %v3401_v23, 4  ;;  %v3303_v29 = vmax.f32 %v3283_v32, 0.0  ;;  %v3301_v2 = vmax.f32 %v3281_v52, 0.0  ;;  %v3484_v42 = vld [vmem:[#allocation4 + $0x14] sm:$0xf] }
 0x2fc   : > { %3458 = vst [vmem:[#allocation4 + $0x2c] sm:$0xf] %v3402_v10  ;;  %v3395_v17 = vrot.slane %v5837_v15, 7  ;;  %v3304_v41 = vmax.f32 %v3284_v33, 0.0  ;;  %3504 = vst [vmem:[#allocation5 + $0x64] sm:$0xf] %v3484_v42  ;;  %v3232_v24 = vadd.f32 %v6289_v25, %v3119_v53  ;;  %v3287_v6 = vadd.f32 %v8065_v47, %v3260_v57 }
 0x2fd   : > { %v8259_v5 = vpack.c.bf16 %v3303_v29, %v3303_v29  ;;  %v5840_v9 = vpack.c.bf16 %v3301_v2, %v3301_v2  ;;  %v3485_v7 = vld [vmem:[#allocation4 + $0x18] sm:$0xf]  ;;  %v3486_v38 = vld [vmem:[#allocation4 + $0x1c] sm:$0xf]  ;;  %v3302_v15 = vmax.f32 %v3282_v28, 0.0  ;;  %v3258_v53 = vmul.f32 %v8059_v1, %v3221_v13 }
 0x2fe   : > { %v3396_v32 = vsel %vm6801_vm5, %v3394_v40, %v3395_v17  ;;  %v3397_v52 = vrot.slane %v3395_v17, 4  ;;  %v5843_v23 = vpack.c.bf16 %v3304_v41, %v3304_v41  ;;  %3505 = vst [vmem:[#allocation5 + $0x78] sm:$0xf] %v3485_v7  ;;  %3506 = vst [vmem:[#allocation5 + $0x8c] sm:$0xf] %v3486_v38  ;;  %v3261_v25 = vmul.f32 %v8059_v1, %v3232_v24  ;;  %v3223_v38 = vpop.f32.mrf.mxu0 }
 0x2ff   : > { %v8264_v33 = vld [vmem:[#allocation4 + $0x14] sm:$0xf]  ;;  %3456 = vst [vmem:[#allocation4 + $0x24] sm:$0xf] %v3396_v32  ;;  %v3410_v58 = vrot.slane %v8259_v5, 7  ;;  %v3404_v10 = vrot.slane %v5840_v9, 7  ;;  %v5841_v40 = vpack.c.bf16 %v3302_v15, %v3302_v15  ;;  %v3285_v17 = vadd.f32 %v8065_v47, %v3258_v53 }
 0x300   : > { %v8266_v48 = vld [vmem:[#allocation4 + $0x14] sm:$0xf]  ;;  %v3399_v39 = vsel %vm6801_vm5, %v3397_v52, %v3398_v16  ;;  %3473 = vst [vmem:[#allocation4 + $0x24] sm:$0x8] %v9211_v63  ;;  %v3413_v7 = vrot.slane %v5843_v23, 7  ;;  %v3593_v16 = vshrl.u32 %v8264_v33, 16  ;;  %v3224_v32 = vadd.f32 %v3223_v38, %v8124_v44 }
 0x301   : > { %v8278_v2 = vld [vmem:[#allocation4 + $0x20] sm:$0xf]  ;;  %3457 = vst [vmem:[#allocation4 + $0x28] sm:$0xf] %v3399_v39  ;;  %v3412_v42 = vrot.slane %v3410_v58, 4  ;;  %v3405_v8 = vsel %vm6801_vm5, %v3403_v59, %v3404_v10  ;;  %v3987_v41 = vshrl.u32 %v8266_v48, 16  ;;  %v3288_v59 = vadd.f32 %v8065_v47, %v3261_v25 }
 0x302   : > { %v8280_v5 = vld [vmem:[#allocation4 + $0x20] sm:$0xf]  ;;  %v3990_v28 = vshll.u32 %v8266_v48, 16  ;;  %3474 = vst [vmem:[#allocation4 + $0x28] sm:$0x1] %v9211_v63  ;;  %v3406_v57 = vrot.slane %v3404_v10, 4  ;;  %v4228_v14 = vsel %vm7105_vm9, %v8196_v3, %v9071_v43 }
 0x303   : > { %3459 = vst [vmem:[#allocation4 + $0x30] sm:$0xf] %v3405_v8  ;;  %v3414_v9 = vsel %vm6801_vm5, %v3412_v42, %v3413_v7  ;;  %v3407_v13 = vrot.slane %v5841_v40, 7  ;;  %v3307_v24 = vmax.f32 %v3287_v6, 0.0  ;;  %v3305_v15 = vmax.f32 %v3285_v17, 0.0 }
 0x304   : > { %3475 = vst [vmem:[#allocation4 + $0x30] sm:$0x6] %v9211_v63  ;;  %3462 = vst [vmem:[#allocation4 + $0x3c] sm:$0xf] %v3414_v9  ;;  %v3487_v10 = vld [vmem:[#allocation4 + $0x20] sm:$0xf]  ;;  %v3546_v17 = vor.u32 %v8173_v56, %v8166_v0 }
 0x305   : > { %3477 = vst [vmem:[#allocation4 + $0x3c] sm:$0x1] %v9211_v63  ;;  %v3408_v53 = vsel %vm6801_vm5, %v3406_v57, %v3407_v13  ;;  %v3409_v39 = vrot.slane %v3407_v13, 4  ;;  %v8299_v40 = vpack.c.bf16 %v3307_v24, %v3307_v24  ;;  %v3308_v6 = vmax.f32 %v3288_v59, 0.0  ;;  %3507 = vst [vmem:[#allocation5 + $0xa0] sm:$0xf] %v3487_v10 }
 0x306   : > { %v3490_v25 = vld [vmem:[#allocation4 + $0x2c] sm:$0xf]  ;;  %3460 = vst [vmem:[#allocation4 + $0x34] sm:$0xf] %v3408_v53  ;;  %v5844_v8 = vpack.c.bf16 %v3305_v15, %v3305_v15  ;;  %v3549_v9 = vshll.u32 %v8188_v20, 16  ;;  %v3415_v13 = vrot.slane %v3413_v7, 4  ;;  %v3259_v53 = vmul.f32 %v8059_v1, %v3224_v32 }
 0x307   : > { %v8301_v42 = vld [vmem:[#allocation4 + $0x2c] sm:$0xf]  ;;  %3510 = vst [vmem:[#allocation5 + $0xdc] sm:$0xf] %v3490_v25  ;;  %v8309_v57 = vld [vmem:[#allocation4 + $0x24] sm:$0xf]  ;;  %v3411_v24 = vsel %vm6801_vm5, %v3409_v39, %v3410_v58  ;;  %v5847_v10 = vpack.c.bf16 %v3308_v6, %v3308_v6 }
 0x308   : > { %v8307_v23 = vld [vmem:[#allocation4 + $0x2c] sm:$0xf]  ;;  %v3422_v59 = vrot.slane %v8299_v40, 7  ;;  %v8314_v15 = vld [vmem:[#allocation4 + $0x24] sm:$0xf]  ;;  %v3416_v44 = vrot.slane %v5844_v8, 7  ;;  %v3286_v25 = vadd.f32 %v8065_v47, %v3259_v53 }
 0x309   : > { %3461 = vst [vmem:[#allocation4 + $0x38] sm:$0xf] %v3411_v24  ;;  %v3555_v0 = vrot.slane %v3553_v27, 4  ;;  %v3488_v56 = vld [vmem:[#allocation4 + $0x24] sm:$0xf]  ;;  %v3425_v7 = vrot.slane %v5847_v10, 7 }
 0x30a   : > { %3476 = vst [vmem:[#allocation4 + $0x38] sm:$0x8] %v9211_v63  ;;  %v3424_v38 = vrot.slane %v3422_v59, 4  ;;  %v8322_v58 = vld [vmem:[#allocation4 + $0x8] sm:$0xf]  ;;  %v3547_v39 = vrot.slane %v3546_v17, 4  ;;  %v3417_v20 = vsel %vm6801_vm5, %v3415_v13, %v3416_v44 }
 0x30b   : > { %3508 = vst [vmem:[#allocation5 + $0xb4] sm:$0xf] %v3488_v56  ;;  %v8326_v8 = vld [vmem:[#allocation4 + $0x30] sm:$0xf]  ;;  %v3551_v27 = vrot.slane %v3549_v9, 5  ;;  %v3559_v52 = vshll.u32 %v8322_v58, 16 }
 0x30c   : > { %v3779_v24 = vld [vmem:[#allocation4 + $0x4] sm:$0xf]  ;;  %v8333_v32 = vld [vmem:[#allocation4 + $0x30] sm:$0xf]  ;;  %3463 = vst [vmem:[#allocation4 + $0x40] sm:$0xf] %v3417_v20  ;;  %v3426_v17 = vsel %vm6801_vm5, %v3424_v38, %v3425_v7  ;;  %v3944_v38 = vor.u32 %v8183_v37, %v8175_v35 }
 0x30d   : > { %v8337_v56 = vld [vmem:[#allocation4 + $0x3c] sm:$0xf]  ;;  %3466 = vst [vmem:[#allocation4 + $0x4c] sm:$0x7] %v3426_v17  ;;  %v3552_v9 = vsel %vm7051_vm6, %v3547_v39, %v3551_v27  ;;  %v3556_v6 = vor.u32 %v3555_v0, %v3551_v27  ;;  %v8343_v10 = vld [vmem:[#allocation4 + $0x8] sm:$0xf] }
 0x30e   : > { %v3418_v29 = vrot.slane %v3416_v44, 4  ;;  %3758 = vst [vmem:[#allocation5 + $0x4] sm:$0xf] %v3552_v9  ;;  %v3919_v7 = vld [vmem:[#allocation4 + $0x8] sm:$0xf]  ;;  %v4057_v47 = vshrl.u32 %v8333_v32, 16 }
 0x30f   : > { %v3306_v53 = vmax.f32 %v3286_v25, 0.0  ;;  %v3557_v17 = vrot.slane %v3556_v6, 4  ;;  %v3561_v39 = vrot.slane %v3559_v52, 5  ;;  %v8352_v50 = vld [vmem:[#allocation4 + $0x3c] sm:$0xf]  ;;  %v3820_v1 = vrot.slane %v3779_v24, 5 }
 0x310   : > { %v3823_v20 = vrot.slane %v8343_v10, 5  ;;  %v8355_v44 = vld [vmem:[#allocation4 + $0x34] sm:$0xf]  ;;  %v3563_v37 = vshrl.u32 %v8322_v58, 16  ;;  %v3949_v52 = vrot.slane %v3947_v4, 5  ;;  %v3952_v10 = vrot.slane %v3950_v61, 6 }
 0x311   : > { %v5845_v9 = vpack.c.bf16 %v3306_v53, %v3306_v53  ;;  %v3562_v35 = vsel %vm7051_vm6, %v3557_v17, %v3561_v39  ;;  %v3821_v25 = vsel %vm6835_vm11, %v5677_v11, %v3820_v1  ;;  %v3822_v24 = vrot.slane %v3820_v1, 4  ;;  %v3489_v53 = vld [vmem:[#allocation4 + $0x28] sm:$0xf]  ;;  %4298 = vst [vmem:[#allocation5 + $0x4c] sm:$0xf] %v4228_v14 }
 0x312   : > { %3759 = vst [vmem:[#allocation5 + $0x18] sm:$0xf] %v3562_v35  ;;  %v3957_v27 = vshrl.u32 %v3919_v7, 16  ;;  %3897 = vst [vmem:[#allocation5 + $0x8] sm:$0xf] %v3821_v25  ;;  %v3960_v58 = vshll.u32 %v3919_v7, 16  ;;  %v3953_v35 = vor.u32 %v3952_v10, %v3949_v52 }
 0x313   : > { %v3419_v17 = vrot.slane %v5845_v9, 7  ;;  %3509 = vst [vmem:[#allocation5 + $0xc8] sm:$0xf] %v3489_v53  ;;  %v3673_v1 = vshrl.u32 %v8355_v44, 16  ;;  %v3824_v22 = vsel %vm6835_vm11, %v3822_v24, %v3823_v20  ;;  %v3945_v61 = vrot.slane %v3944_v38, 4 }
 0x314   : > { %3898 = vst [vmem:[#allocation5 + $0x1c] sm:$0xf] %v3824_v22  ;;  %v3959_v25 = vrot.slane %v3957_v27, 5  ;;  %v3962_v53 = vrot.slane %v3960_v58, 6  ;;  %v3565_v0 = vrot.slane %v3563_v37, 4  ;;  %v3569_v3 = vshll.u32 %v8169_v21, 16 }
 0x315   : > { %v3420_v9 = vsel %vm6801_vm5, %v3418_v29, %v3419_v17  ;;  %v3421_v7 = vrot.slane %v3419_v17, 4  ;;  %v3575_v43 = vrot.slane %v3573_v55, 4  ;;  %v3491_v11 = vld [vmem:[#allocation4 + $0x30] sm:$0xf]  ;;  %v3954_v52 = vsel %vm7160_vm10, %v3945_v61, %v3953_v35  ;;  %v3781_v37 = vld [vmem:[#allocation4 + $0xc] sm:$0xf] }
 0x316   : > { %3464 = vst [vmem:[#allocation4 + $0x44] sm:$0xf] %v3420_v9  ;;  %v3955_v27 = vrot.slane %v3953_v35, 4  ;;  %v3579_v24 = vshll.u32 %v8224_v18, 16  ;;  %v3492_v10 = vld [vmem:[#allocation4 + $0x34] sm:$0xf]  ;;  %v3963_v21 = vor.u32 %v3962_v53, %v3959_v25  ;;  %v3566_v55 = vor.u32 %v3565_v0, %v3561_v39 }
 0x317   : > { %v3423_v38 = vsel %vm6801_vm5, %v3421_v7, %v3422_v59  ;;  %3478 = vst [vmem:[#allocation4 + $0x44] sm:$0x6] %v9211_v63  ;;  %3511 = vst [vmem:[#allocation5 + $0xf0] sm:$0xf] %v3491_v11  ;;  %v3571_v17 = vrot.slane %v3569_v3, 5  ;;  %v3825_v46 = vrot.slane %v3823_v20, 4 }
 0x318   : > { %3465 = vst [vmem:[#allocation4 + $0x48] sm:$0xf] %v3423_v38  ;;  %4156 = vst [vmem:[#allocation5 + $0xc] sm:$0xf] %v3954_v52  ;;  %v8391_v40 = vld [vmem:[#allocation4 + $0x10] sm:$0xf]  ;;  %v3964_v11 = vsel %vm7160_vm10, %v3955_v27, %v3963_v21 }
 0x319   : > { %v8396_v63 = vld [vmem:[%s9009_s6 + $0x130] sm:$0xff]   ;;  %3512 = vst [vmem:[#allocation5 + $0x104] sm:$0xf] %v3492_v10  ;;  %v8398_v14 = vrot.slane %v3579_v24, 5  ;;  %v3567_v22 = vrot.slane %v3566_v55, 4  ;;  %v3576_v61 = vor.u32 %v3575_v43, %v3571_v17  ;;  %v3826_v39 = vrot.slane %v3781_v37, 5 }
 0x31a   : > { %v6499_v59 = vld [vmem:[#allocation5] ss:$20 sps:$4 sm:$0xff]   ;;  %v6501_v58 = vld [vmem:[#allocation5 + $0x4] ss:$20 sps:$4 sm:$0xff]   ;;  %v3493_v0 = vld [vmem:[#allocation4 + $0x38] sm:$0xf] }
 0x31b   : > { %v3494_v9 = vld [vmem:[#allocation4 + $0x3c] sm:$0xf]  ;;  %v8402_v7 = vld [vmem:[#allocation4 + $0x34] sm:$0xf]  ;;  %4987 = vmatprep.mubr.bf16.mxu1 %v6501_v58  ;;  %4157 = vst [vmem:[#allocation5 + $0x20] sm:$0xf] %v3964_v11  ;;  %v3572_v43 = vsel %vm7051_vm6, %v3567_v22, %v3571_v17  ;;  %v3827_v52 = vsel %vm6835_vm11, %v3825_v46, %v3826_v39 }
 0x31c   : > { %v3829_v20 = vrot.slane %v8391_v40, 5  ;;  %v3965_v35 = vrot.slane %v3963_v21, 4  ;;  %v3969_v25 = vrot.slane %v3967_v19, 5  ;;  %v3972_v53 = vrot.slane %v3970_v36, 6  ;;  %3513 = vst [vmem:[#allocation5 + $0x118] sm:$0xf] %v3493_v0  ;;  %4988 = vmatmul.mubr.bf16.vlgmr.msra.gmra.mxu1 %v6499_v59 }
 0x31d   : > { %3514 = vst [vmem:[#allocation5 + $0x12c] sm:$0xf] %v3494_v9  ;;  %v8409_v3 = vld [vmem:[#allocation4 + $0x40] sm:$0xf]  ;;  %v3577_v38 = vrot.slane %v3576_v61, 4  ;;  %v3828_v27 = vrot.slane %v3826_v39, 4 }
 0x31e   : > { %v3495_v24 = vld [vmem:[#allocation4 + $0x40] sm:$0xf]  ;;  %3760 = vst [vmem:[#allocation5 + $0x2c] sm:$0xf] %v3572_v43  ;;  %3899 = vst [vmem:[#allocation5 + $0x30] sm:$0xf] %v3827_v52  ;;  %v3973_v12 = vor.u32 %v3972_v53, %v3969_v25 }
 0x31f   : > { %v9216_v37 = vld [vmem:[#allocation13_spill] sm:$0xff]  ;;  %v3979_v19 = vrot.slane %v3977_v45, 5  ;;  %v3982_v36 = vrot.slane %v3980_v62, 6  ;;  %v3585_v10 = vrot.slane %v3583_v30, 4  ;;  %v6521_v21 = vld [vmem:[%s9009_s6 + $0x128] sm:$0xff]   ;;  %v3582_v17 = vsel %vm7051_vm6, %v3577_v38, %v8398_v14 }
 0x320   : > { %6291 = vmatpush3.bf16.msra.mxu1 %v9216_v37  ;;  %3515 = vst [vmem:[#allocation5 + $0x140] sm:$0xf] %v3495_v24  ;;  %v3498_v55 = vld [vmem:[#allocation4 + $0x4c] sm:$0x3]  ;;  %v3830_v40 = vsel %vm6835_vm11, %v3828_v27, %v3829_v20  ;;  %v3525_v45 = vld [vmem:[#allocation4 + $0x18] sm:$0xf]  ;;  %v3974_v58 = vsel %vm7160_vm10, %v3965_v35, %v3973_v12 }
 0x321   : > { %v3589_v51 = vshll.u32 %v8264_v33, 16  ;;  %v3595_v18 = vrot.slane %v3593_v16, 4  ;;  %6292 = vmatprep.subr.bf16.mxu1 %v8396_v63  ;;  %v3783_v30 = vld [vmem:[#allocation4 + $0x14] sm:$0xf]  ;;  %3518 = vst [vmem:[#allocation5 + $0x17c] sm:$0x3] %v3498_v55  ;;  %v8439_v22 = vor.u32 %v3982_v36, %v3979_v19  ;;  %v3586_v33 = vor.u32 %v3585_v10, %v8398_v14 }
 0x322   : > { %v4067_v62 = vshrl.u32 %v8402_v7, 16  ;;  %v4070_v46 = vshll.u32 %v8402_v7, 16  ;;  %v3703_v59 = vshrl.u32 %v8409_v3, 16  ;;  %3761 = vst [vmem:[#allocation5 + $0x40] sm:$0xf] %v3582_v17  ;;  %v3975_v11 = vrot.slane %v3973_v12, 4 }
 0x323   : > { %3900 = vst [vmem:[#allocation5 + $0x44] sm:$0xf] %v3830_v40  ;;  %4158 = vst [vmem:[#allocation5 + $0x34] sm:$0xf] %v3974_v58  ;;  %v3591_v16 = vrot.slane %v3589_v51, 5  ;;  %v8445_v39 = vld [vmem:[%s9009_s6 + $0x120] sm:$0xff]  }
 0x324   : > { %v3784_v61 = vld [vmem:[#allocation4 + $0x18] sm:$0xf]  ;;  %v3496_v0 = vld [vmem:[#allocation4 + $0x44] sm:$0xf]  ;;  %v3599_v25 = vshll.u32 %v3525_v45, 16  ;;  %v3603_v53 = vshrl.u32 %v3525_v45, 16  ;;  %6293 = vmatpush3.bf16.msra.mxu1 %v8396_v63  ;;  %v3984_v14 = vsel %vm7160_vm10, %v3975_v11, %v8439_v22 }
 0x325   : > { %v3923_v9 = vld [vmem:[#allocation4 + $0x18] sm:$0xf]  ;;  %v3831_v43 = vrot.slane %v3829_v20, 4  ;;  %v3832_v38 = vrot.slane %v3783_v30, 5  ;;  %3516 = vst [vmem:[#allocation5 + $0x154] sm:$0xf] %v3496_v0  ;;  %v3596_v24 = vor.u32 %v3595_v18, %v3591_v16  ;;  %6294 = vmatprep.subr.bf16.mxu1 %v6521_v21 }
 0x326   : > { %v6503_v35 = vld [vmem:[#allocation5 + $0x8] ss:$20 sps:$4 sm:$0xff]   ;;  %v6505_v52 = vld [vmem:[#allocation5 + $0xc] ss:$20 sps:$4 sm:$0xff]   ;;  %v3587_v27 = vrot.slane %v3586_v33, 4  ;;  %v3601_v37 = vrot.slane %v3599_v25, 5 }
 0x327   : > { %4159 = vst [vmem:[#allocation5 + $0x48] sm:$0xf] %v3984_v14  ;;  %v3833_v12 = vsel %vm6835_vm11, %v3831_v43, %v3832_v38  ;;  %v3834_v19 = vrot.slane %v3832_v38, 4  ;;  %v3835_v20 = vrot.slane %v3784_v61, 5  ;;  %5100 = vmatprep.mubr.bf16.mxu0 %v6505_v52  ;;  %v4321_v36 = vld [vmem:[#allocation5 + $0x28] sm:$0xff]  ;;  %v3597_v10 = vrot.slane %v3596_v24, 4 }
 0x328   : > { %v3592_v63 = vsel %vm7051_vm6, %v3587_v27, %v3591_v16  ;;  %3901 = vst [vmem:[#allocation5 + $0x58] sm:$0xf] %v3833_v12  ;;  %v3985_v55 = vrot.slane %v8439_v22, 4  ;;  %v3989_v17 = vrot.slane %v3987_v41, 5  ;;  %v3497_v40 = vld [vmem:[#allocation4 + $0x48] sm:$0xf]  ;;  %5101 = vmatmul.mubr.bf16.vlgmr.msra.gmra.mxu0 %v6503_v35  ;;  %6295 = vmatpush3.bf16.msra.mxu1 %v6521_v21 }
 0x329   : > { %3762 = vst [vmem:[#allocation5 + $0x54] sm:$0xf] %v3592_v63  ;;  %v3836_v45 = vsel %vm6835_vm11, %v3834_v19, %v3835_v20  ;;  %v3992_v51 = vrot.slane %v3990_v28, 6  ;;  %v3997_v18 = vshrl.u32 %v3923_v9, 16  ;;  %v4000_v30 = vshll.u32 %v3923_v9, 16  ;;  %v4324_v11 = vld [vmem:[#allocation5 + $0x3c] sm:$0xff]  ;;  %6296 = vmatprep.subr.bf16.mxu1 %v8445_v39 }
 0x32a   : > { %v3785_v58 = vld [vmem:[#allocation4 + $0x1c] sm:$0xf]  ;;  %3517 = vst [vmem:[#allocation5 + $0x168] sm:$0xf] %v3497_v40  ;;  %v3602_v22 = vsel %vm7051_vm6, %v3597_v10, %v3601_v37  ;;  %3902 = vst [vmem:[#allocation5 + $0x6c] sm:$0xf] %v3836_v45  ;;  %v5684_v28 = vcombine.low %v4321_v36, %v4324_v11 }
 0x32b   : > { %v6506_v33 = vld [vmem:[#allocation5 + $0x2c] ss:$20 sps:$4 sm:$0xff]   ;;  %v3605_v41 = vrot.slane %v3603_v53, 4  ;;  %v3609_v16 = vshll.u32 %v8241_v34, 16  ;;  %v3615_v61 = vrot.slane %v3613_v54, 4  ;;  %v3993_v21 = vor.u32 %v3992_v51, %v3989_v17 }
 0x32c   : > { %v8468_v48 = vld [vmem:[#allocation4 + $0x40] sm:$0xf]  ;;  %3763 = vst [vmem:[#allocation5 + $0x68] sm:$0xf] %v3602_v22  ;;  %v3999_v0 = vrot.slane %v3997_v18, 5  ;;  %v4002_v9 = vrot.slane %v4000_v30, 6  ;;  %4995 = vmatprep.mubr.bf16.mxu1 %v6506_v33  ;;  %6297 = vmatpush3.bf16.msra.mxu1 %v8445_v39 }
 0x32d   : > { %v6533_v25 = vld [vmem:[%s9009_s6 + $0x118] sm:$0xff]   ;;  %v3606_v53 = vor.u32 %v3605_v41, %v3601_v37  ;;  %v3611_v43 = vrot.slane %v3609_v16, 5  ;;  %v3619_v38 = vshll.u32 %v8278_v2, 16  ;;  %v3837_v34 = vrot.slane %v3835_v20, 4  ;;  %4996 = vmatmul.mubr.bf16.gmra.mxu1 %v5684_v28  ;;  %v3786_v14 = vld [vmem:[#allocation4 + $0x20] sm:$0xf] }
 0x32e   : > { %v3994_v54 = vsel %vm7160_vm10, %v3985_v55, %v3993_v21  ;;  %v3995_v35 = vrot.slane %v3993_v21, 4  ;;  %v4003_v52 = vor.u32 %v4002_v9, %v3999_v0  ;;  %v3838_v27 = vrot.slane %v3785_v58, 5  ;;  %v6542_v24 = vld [vmem:[%s9009_s6 + $0x110] sm:$0xff]   ;;  %v6508_v19 = vld [vmem:[#allocation5 + $0x34] ss:$20 sps:$4 sm:$0xff]   ;;  %6298 = vmatprep.subr.bf16.mxu1 %v6533_v25 }
 0x32f   : > { %v4097_v12 = vshrl.u32 %v8468_v48, 16  ;;  %v4100_v37 = vshll.u32 %v8468_v48, 16  ;;  %4160 = vst [vmem:[#allocation5 + $0x5c] sm:$0xf] %v3994_v54  ;;  %v3607_v36 = vrot.slane %v3606_v53, 4  ;;  %v3616_v20 = vor.u32 %v3615_v61, %v3611_v43  ;;  %5108 = vmatprep.mubr.bf16.mxu0 %v6508_v19 }
 0x330   : > { %v6512_v63 = vld [vmem:[#allocation5 + $0x30] ss:$20 sps:$4 sm:$0xff]   ;;  %v4004_v10 = vsel %vm7160_vm10, %v3995_v35, %v4003_v52  ;;  %v3621_v55 = vrot.slane %v3619_v38, 5  ;;  %v3839_v17 = vsel %vm6835_vm11, %v3837_v34, %v3838_v27  ;;  %v3840_v40 = vrot.slane %v3838_v27, 4  ;;  %v8486_v45 = vld [vmem:[#allocation4 + $0x28] sm:$0xf]  ;;  %6299 = vmatpush3.bf16.msra.mxu1 %v6533_v25 }
 0x331   : > { %4161 = vst [vmem:[#allocation5 + $0x70] sm:$0xf] %v4004_v10  ;;  %v3612_v51 = vsel %vm7051_vm6, %v3607_v36, %v3611_v43  ;;  %v3617_v18 = vrot.slane %v3616_v20, 4  ;;  %v3841_v30 = vrot.slane %v3786_v14, 5  ;;  %3903 = vst [vmem:[#allocation5 + $0x80] sm:$0xf] %v3839_v17  ;;  %5109 = vmatmul.mubr.bf16.gmra.mxu0 %v6512_v63  ;;  %6300 = vmatprep.subr.bf16.mxu1 %v6542_v24 }
 0x332   : > { %v4005_v39 = vrot.slane %v4003_v52, 4  ;;  %v3787_v58 = vld [vmem:[#allocation4 + $0x24] sm:$0xf]  ;;  %3764 = vst [vmem:[#allocation5 + $0x7c] sm:$0xf] %v3612_v51  ;;  %v9217_v33 = vshrl.u32 %v8243_v26, 16 }
 0x333   : > { %v8490_v11 = vld [vmem:[#allocation4 + $0x44] sm:$0xf]  ;;  %v9218_v41 = vshll.u32 %v8243_v26, 16  ;;  %v9219_v61 = vshrl.u32 %v8280_v5, 16  ;;  %v9220_v21 = vshll.u32 %v8280_v5, 16  ;;  %v4330_v53 = vld [vmem:[#allocation5 + $0x64] sm:$0xff]  ;;  %v3622_v38 = vsel %vm7051_vm6, %v3617_v18, %v3621_v55 }
 0x334   : > { %v4009_v22 = vrot.slane %v9217_v33, 5  ;;  %v4327_v9 = vld [vmem:[#allocation5 + $0x50] sm:$0xff]  ;;  %v3842_v34 = vsel %vm6835_vm11, %v3840_v40, %v3841_v30  ;;  %v9221_v54 = vshrl.u32 %v8278_v2, 16  ;;  %v3629_v26 = vshll.u32 %v8309_v57, 16  ;;  %3765 = vst [vmem:[#allocation5 + $0x90] sm:$0xf] %v3622_v38  ;;  %6301 = vmatpush3.bf16.msra.mxu1 %v6542_v24 }
 0x335   : > { %v4012_v16 = vrot.slane %v9218_v41, 6  ;;  %v4019_v28 = vrot.slane %v9219_v61, 5  ;;  %v4022_v0 = vrot.slane %v9220_v21, 6  ;;  %v6510_v43 = vld [vmem:[#allocation5 + $0x54] ss:$20 sps:$4 sm:$0xff]   ;;  %v5689_v52 = vcombine.low %v4327_v9, %v4330_v53  ;;  %v6550_v2 = vld [vmem:[%s9009_s6 + $0x108] sm:$0xff]  }
 0x336   : > { %v3625_v35 = vrot.slane %v9221_v54, 4  ;;  %3904 = vst [vmem:[#allocation5 + $0x94] sm:$0xf] %v3842_v34  ;;  %v9222_v27 = vshrl.u32 %v8309_v57, 16  ;;  %v8511_v36 = vld [vmem:[#allocation4 + $0x28] sm:$0xf]  ;;  %5003 = vmatprep.mubr.bf16.mxu1 %v6510_v43  ;;  %6302 = vmatprep.subr.bf16.mxu1 %v6550_v2 }
 0x337   : > { %v4013_v5 = vor.u32 %v4012_v16, %v4009_v22  ;;  %v8507_v14 = vor.u32 %v4022_v0, %v4019_v28  ;;  %v3713_v20 = vshrl.u32 %v8490_v11, 16  ;;  %v3631_v63 = vrot.slane %v3629_v26, 5  ;;  %5004 = vmatmul.mubr.bf16.gmra.mxu1 %v5689_v52  ;;  %v3927_v18 = vld [vmem:[#allocation4 + $0x28] sm:$0xf]  ;;  %v3789_v52 = vld [vmem:[#allocation4 + $0x2c] sm:$0xf] }
 0x338   : > { %v3635_v19 = vrot.slane %v9222_v27, 4  ;;  %v3626_v25 = vor.u32 %v3625_v35, %v3621_v55  ;;  %v3639_v10 = vshll.u32 %v8486_v45, 16  ;;  %v3843_v40 = vrot.slane %v3841_v30, 4  ;;  %v6514_v55 = vld [vmem:[#allocation5 + $0x5c] ss:$20 sps:$4 sm:$0xff]   ;;  %6303 = vmatpush3.bf16.msra.mxu1 %v6550_v2 }
 0x339   : > { %v4014_v17 = vsel %vm7160_vm10, %v4005_v39, %v4013_v5  ;;  %v4015_v57 = vrot.slane %v4013_v5, 4  ;;  %v3844_v51 = vrot.slane %v3787_v58, 5  ;;  %v3643_v41 = vshrl.u32 %v8486_v45, 16  ;;  %v6556_v58 = vld [vmem:[%s9009_s6 + $0x100] sm:$0xff]   ;;  %v4333_v21 = vld [vmem:[#allocation5 + $0x78] sm:$0xff]  ;;  %5116 = vmatprep.mubr.bf16.mxu0 %v6514_v55 }
 0x33a   : > { %4162 = vst [vmem:[#allocation5 + $0x84] sm:$0xf] %v4014_v17  ;;  %v3627_v33 = vrot.slane %v3626_v25, 4  ;;  %v3636_v22 = vor.u32 %v3635_v19, %v3631_v63  ;;  %v3847_v16 = vrot.slane %v8511_v36, 5  ;;  %v3641_v28 = vrot.slane %v3639_v10, 5  ;;  %6304 = vmatprep.subr.bf16.mxu1 %v6556_v58 }
 0x33b   : > { %v4024_v61 = vsel %vm7160_vm10, %v4015_v57, %v8507_v14  ;;  %v3845_v39 = vsel %vm6835_vm11, %v3843_v40, %v3844_v51  ;;  %v3846_v30 = vrot.slane %v3844_v51, 4  ;;  %v6518_v45 = vld [vmem:[#allocation5 + $0x58] ss:$20 sps:$4 sm:$0xff]   ;;  %v4025_v9 = vrot.slane %v8507_v14, 4  ;;  %v6516_v27 = vld [vmem:[#allocation5 + $0x7c] ss:$20 sps:$4 sm:$0xff]  }
 0x33c   : > { %4163 = vst [vmem:[#allocation5 + $0x98] sm:$0xf] %v4024_v61  ;;  %v3632_v24 = vsel %vm7051_vm6, %v3627_v33, %v3631_v63  ;;  %v3637_v0 = vrot.slane %v3636_v22, 4  ;;  %3905 = vst [vmem:[#allocation5 + $0xa8] sm:$0xf] %v3845_v39  ;;  %v9223_v53 = vshrl.u32 %v8314_v15, 16  ;;  %5117 = vmatmul.mubr.bf16.gmra.mxu0 %v6518_v45  ;;  %5011 = vmatprep.mubr.bf16.mxu1 %v6516_v27 }
 0x33d   : > { %3766 = vst [vmem:[#allocation5 + $0xa4] sm:$0xf] %v3632_v24  ;;  %v3848_v38 = vsel %vm6835_vm11, %v3846_v30, %v3847_v16  ;;  %v9224_v34 = vshll.u32 %v8314_v15, 16  ;;  %v4037_v35 = vshrl.u32 %v3927_v18, 16  ;;  %v4040_v26 = vshll.u32 %v3927_v18, 16  ;;  %v4336_v5 = vld [vmem:[#allocation5 + $0x8c] sm:$0xff]  ;;  %6305 = vmatpush3.bf16.msra.mxu1 %v6556_v58 }
 0x33e   : > { %v4029_v43 = vrot.slane %v9223_v53, 5  ;;  %v3642_v14 = vsel %vm7051_vm6, %v3637_v0, %v3641_v28  ;;  %3906 = vst [vmem:[#allocation5 + $0xbc] sm:$0xf] %v3848_v38  ;;  %v3645_v19 = vrot.slane %v3643_v41, 4  ;;  %v3649_v36 = vshll.u32 %v8301_v42, 16 }
 0x33f   : > { %v4032_v54 = vrot.slane %v9224_v34, 6  ;;  %v9225_v25 = vshrl.u32 %v8301_v42, 16  ;;  %v5694_v10 = vcombine.low %v4333_v21, %v4336_v5  ;;  %3767 = vst [vmem:[#allocation5 + $0xb8] sm:$0xf] %v3642_v14  ;;  %v4039_v17 = vrot.slane %v4037_v35, 5 }
 0x340   : > { %v4042_v57 = vrot.slane %v4040_v26, 6  ;;  %v3790_v40 = vld [vmem:[#allocation4 + $0x30] sm:$0xf]  ;;  %v8544_v51 = vld [vmem:[#allocation4 + $0x44] sm:$0xf]  ;;  %v3646_v18 = vor.u32 %v3645_v19, %v3641_v28  ;;  %v3651_v33 = vrot.slane %v3649_v36, 5 }
 0x341   : > { %v3655_v63 = vrot.slane %v9225_v25, 4  ;;  %v4033_v15 = vor.u32 %v4032_v54, %v4029_v43  ;;  %v3659_v22 = vshll.u32 %v8326_v8, 16  ;;  %v3849_v41 = vrot.slane %v3847_v16, 4  ;;  %5012 = vmatmul.mubr.bf16.gmra.mxu1 %v5694_v10  ;;  %v8549_v24 = vld [vmem:[#allocation4 + $0x38] sm:$0xf] }
 0x342   : > { %v4043_v55 = vor.u32 %v4042_v57, %v4039_v17  ;;  %v3850_v61 = vrot.slane %v3789_v52, 5  ;;  %v3647_v39 = vrot.slane %v3646_v18, 4  ;;  %v3853_v45 = vrot.slane %v3790_v40, 5  ;;  %v6524_v43 = vld [vmem:[#allocation5 + $0x80] ss:$20 sps:$4 sm:$0xff]  }
 0x343   : > { %v4034_v42 = vsel %vm7160_vm10, %v4025_v9, %v4033_v15  ;;  %v4035_v2 = vrot.slane %v4033_v15, 4  ;;  %v3656_v30 = vor.u32 %v3655_v63, %v3651_v33  ;;  %v3661_v21 = vrot.slane %v3659_v22, 5  ;;  %v6519_v0 = vld [vmem:[#allocation5 + $0x84] ss:$20 sps:$4 sm:$0xff]   ;;  %v3792_v22 = vld [vmem:[#allocation4 + $0x38] sm:$0xf] }
 0x344   : > { %4164 = vst [vmem:[#allocation5 + $0xac] sm:$0xf] %v4034_v42  ;;  %v4107_v28 = vshrl.u32 %v8544_v51, 16  ;;  %v3851_v9 = vsel %vm6835_vm11, %v3849_v41, %v3850_v61  ;;  %v3852_v53 = vrot.slane %v3850_v61, 4  ;;  %v3652_v38 = vsel %vm7051_vm6, %v3647_v39, %v3651_v33  ;;  %5124 = vmatprep.mubr.bf16.mxu0 %v6519_v0  ;;  %v4339_v26 = vld [vmem:[#allocation5 + $0xa0] sm:$0xff] }
 0x345   : > { %v4044_v16 = vsel %vm7160_vm10, %v4035_v2, %v4043_v55  ;;  %v3657_v34 = vrot.slane %v3656_v30, 4  ;;  %3907 = vst [vmem:[#allocation5 + $0xd0] sm:$0xf] %v3851_v9  ;;  %v4045_v54 = vrot.slane %v4043_v55, 4  ;;  %v9226_v58 = vshrl.u32 %v8307_v23, 16  ;;  %5125 = vmatmul.mubr.bf16.gmra.mxu0 %v6524_v43 }
 0x346   : > { %4165 = vst [vmem:[#allocation5 + $0xc0] sm:$0xf] %v4044_v16  ;;  %3768 = vst [vmem:[#allocation5 + $0xcc] sm:$0xf] %v3652_v38  ;;  %v3854_v52 = vsel %vm6835_vm11, %v3852_v53, %v3853_v45  ;;  %v9227_v5 = vshll.u32 %v8307_v23, 16  ;;  %v4059_v14 = vrot.slane %v4057_v47, 5 }
 0x347   : > { %v4049_v35 = vrot.slane %v9226_v58, 5  ;;  %v9228_v19 = vshll.u32 %v8333_v32, 16  ;;  %v3791_v25 = vld [vmem:[#allocation4 + $0x34] sm:$0xf]  ;;  %v4342_v63 = vld [vmem:[#allocation5 + $0xb4] sm:$0xff]  ;;  %v3662_v15 = vsel %vm7051_vm6, %v3657_v34, %v3661_v21  ;;  %v9229_v17 = vshrl.u32 %v8326_v8, 16 }
 0x348   : > { %v4052_v27 = vrot.slane %v9227_v5, 6  ;;  %v6522_v10 = vld [vmem:[#allocation5 + $0xa4] ss:$20 sps:$4 sm:$0xff]   ;;  %3908 = vst [vmem:[#allocation5 + $0xe4] sm:$0xf] %v3854_v52  ;;  %v3669_v23 = vshll.u32 %v8355_v44, 16  ;;  %v5699_v47 = vcombine.low %v4339_v26, %v4342_v63 }
 0x349   : > { %v4062_v36 = vrot.slane %v9228_v19, 6  ;;  %v3665_v57 = vrot.slane %v9229_v17, 4  ;;  %v3675_v40 = vrot.slane %v3673_v1, 4  ;;  %3769 = vst [vmem:[#allocation5 + $0xe0] sm:$0xf] %v3662_v15  ;;  %v3679_v33 = vshll.u32 %v8549_v24, 16  ;;  %5019 = vmatprep.mubr.bf16.mxu1 %v6522_v10 }
 0x34a   : > { %v4053_v32 = vor.u32 %v4052_v27, %v4049_v35  ;;  %v4110_v41 = vshll.u32 %v8544_v51, 16  ;;  %v3671_v2 = vrot.slane %v3669_v23, 5  ;;  %v3855_v55 = vrot.slane %v3853_v45, 4  ;;  %5020 = vmatmul.mubr.bf16.gmra.mxu1 %v5699_v47  ;;  %v3931_v39 = vld [vmem:[#allocation4 + $0x38] sm:$0xf] }
 0x34b   : > { %v4063_v18 = vor.u32 %v4062_v36, %v4059_v14  ;;  %v3666_v42 = vor.u32 %v3665_v57, %v3661_v21  ;;  %v3683_v44 = vshrl.u32 %v8549_v24, 16  ;;  %v3856_v1 = vrot.slane %v3791_v25, 5  ;;  %v3793_v19 = vld [vmem:[#allocation4 + $0x3c] sm:$0xf] }
 0x34c   : > { %v4054_v8 = vsel %vm7160_vm10, %v4045_v54, %v4053_v32  ;;  %v4055_v61 = vrot.slane %v4053_v32, 4  ;;  %v3676_v0 = vor.u32 %v3675_v40, %v3671_v2  ;;  %v3681_v16 = vrot.slane %v3679_v33, 5  ;;  %v6530_v54 = vld [vmem:[#allocation5 + $0xa8] ss:$20 sps:$4 sm:$0xff]   ;;  %v3794_v40 = vld [vmem:[#allocation4 + $0x40] sm:$0xf] }
 0x34d   : > { %4166 = vst [vmem:[#allocation5 + $0xd4] sm:$0xf] %v4054_v8  ;;  %v3667_v30 = vrot.slane %v3666_v42, 4  ;;  %v3859_v9 = vrot.slane %v3792_v22, 5  ;;  %v6525_v53 = vld [vmem:[#allocation5 + $0xac] ss:$20 sps:$4 sm:$0xff]   ;;  %v3857_v45 = vsel %vm6835_vm11, %v3855_v55, %v3856_v1 }
 0x34e   : > { %v4064_v21 = vsel %vm7160_vm10, %v4055_v61, %v4063_v18  ;;  %v3858_v43 = vrot.slane %v3856_v1, 4  ;;  %v4065_v38 = vrot.slane %v4063_v18, 4  ;;  %v4345_v34 = vld [vmem:[#allocation5 + $0xc8] sm:$0xff]  ;;  %v3677_v58 = vrot.slane %v3676_v0, 4  ;;  %3909 = vst [vmem:[#allocation5 + $0xf8] sm:$0xf] %v3857_v45  ;;  %5132 = vmatprep.mubr.bf16.mxu0 %v6525_v53 }
 0x34f   : > { %4167 = vst [vmem:[#allocation5 + $0xe8] sm:$0xf] %v4064_v21  ;;  %v3672_v24 = vsel %vm7051_vm6, %v3667_v30, %v3671_v2  ;;  %v4069_v35 = vrot.slane %v4067_v62, 5  ;;  %v4072_v26 = vrot.slane %v4070_v46, 6  ;;  %v4077_v5 = vshrl.u32 %v3931_v39, 16  ;;  %5133 = vmatmul.mubr.bf16.gmra.mxu0 %v6530_v54 }
 0x350   : > { %3770 = vst [vmem:[#allocation5 + $0xf4] sm:$0xf] %v3672_v24  ;;  %v3860_v52 = vsel %vm6835_vm11, %v3858_v43, %v3859_v9  ;;  %v4080_v27 = vshll.u32 %v3931_v39, 16  ;;  %v3685_v14 = vrot.slane %v3683_v44, 4  ;;  %v4348_v36 = vld [vmem:[#allocation5 + $0xdc] sm:$0xff]  ;;  %v3682_v63 = vsel %vm7051_vm6, %v3677_v58, %v3681_v16 }
 0x351   : > { %v6528_v25 = vld [vmem:[#allocation5 + $0xcc] ss:$20 sps:$4 sm:$0xff]   ;;  %3910 = vst [vmem:[#allocation5 + $0x10c] sm:$0xf] %v3860_v52  ;;  %v4073_v62 = vor.u32 %v4072_v26, %v4069_v35  ;;  %v3689_v7 = vshll.u32 %v8337_v56, 16  ;;  %v9230_v46 = vshrl.u32 %v8337_v56, 16  ;;  %v5704_v15 = vcombine.low %v4345_v34, %v4348_v36 }
 0x352   : > { %3771 = vst [vmem:[#allocation5 + $0x108] sm:$0xf] %v3682_v63  ;;  %v4079_v17 = vrot.slane %v4077_v5, 5  ;;  %v4082_v57 = vrot.slane %v4080_v27, 6  ;;  %v3686_v23 = vor.u32 %v3685_v14, %v3681_v16  ;;  %5027 = vmatprep.mubr.bf16.mxu1 %v6528_v25  ;;  %v3699_v33 = vshll.u32 %v8409_v3, 16 }
 0x353   : > { %v3695_v10 = vrot.slane %v9230_v46, 4  ;;  %v4074_v47 = vsel %vm7160_vm10, %v4065_v38, %v4073_v62  ;;  %v4075_v32 = vrot.slane %v4073_v62, 4  ;;  %v3691_v18 = vrot.slane %v3689_v7, 5  ;;  %5028 = vmatmul.mubr.bf16.gmra.mxu1 %v5704_v15  ;;  %v3537_v21 = vld [vmem:[#allocation4 + $0x48] sm:$0xf] }
 0x354   : > { %v4083_v22 = vor.u32 %v4082_v57, %v4079_v17  ;;  %4168 = vst [vmem:[#allocation5 + $0xfc] sm:$0xf] %v4074_v47  ;;  %v3687_v42 = vrot.slane %v3686_v23, 4  ;;  %v3861_v56 = vrot.slane %v3859_v9, 4  ;;  %v3862_v2 = vrot.slane %v3793_v19, 5 }
 0x355   : > { %v3696_v55 = vor.u32 %v3695_v10, %v3691_v18  ;;  %v3701_v8 = vrot.slane %v3699_v33, 5  ;;  %v3865_v61 = vrot.slane %v3794_v40, 5  ;;  %v9231_v44 = vshrl.u32 %v8352_v50, 16  ;;  %v6536_v9 = vld [vmem:[#allocation5 + $0xd0] ss:$20 sps:$4 sm:$0xff]  }
 0x356   : > { %v6531_v39 = vld [vmem:[#allocation5 + $0xd4] ss:$20 sps:$4 sm:$0xff]   ;;  %v4084_v30 = vsel %vm7160_vm10, %v4075_v32, %v4083_v22  ;;  %v3692_v0 = vsel %vm7051_vm6, %v3687_v42, %v3691_v18  ;;  %v3863_v16 = vsel %vm6835_vm11, %v3861_v56, %v3862_v2  ;;  %v3864_v53 = vrot.slane %v3862_v2, 4  ;;  %v3796_v25 = vld [vmem:[#allocation4 + $0x48] sm:$0xf] }
 0x357   : > { %v4089_v1 = vrot.slane %v9231_v44, 5  ;;  %4169 = vst [vmem:[#allocation5 + $0x110] sm:$0xf] %v4084_v30  ;;  %v3697_v45 = vrot.slane %v3696_v55, 4  ;;  %3772 = vst [vmem:[#allocation5 + $0x11c] sm:$0xf] %v3692_v0  ;;  %5140 = vmatprep.mubr.bf16.mxu0 %v6531_v39 }
 0x358   : > { %3911 = vst [vmem:[#allocation5 + $0x120] sm:$0xf] %v3863_v16  ;;  %v4085_v43 = vrot.slane %v4083_v22, 4  ;;  %v9232_v38 = vshll.u32 %v8352_v50, 16  ;;  %v4099_v54 = vrot.slane %v4097_v12, 5  ;;  %v3866_v24 = vsel %vm6835_vm11, %v3864_v53, %v3865_v61  ;;  %v4351_v5 = vld [vmem:[#allocation5 + $0xf0] sm:$0xff]  ;;  %5141 = vmatmul.mubr.bf16.gmra.mxu0 %v6536_v9 }
 0x359   : > { %v4102_v58 = vrot.slane %v4100_v37, 6  ;;  %v3705_v35 = vrot.slane %v3703_v59, 4  ;;  %v3709_v26 = vshll.u32 %v8490_v11, 16  ;;  %v3795_v52 = vld [vmem:[#allocation4 + $0x44] sm:$0xf]  ;;  %v4354_v27 = vld [vmem:[#allocation5 + $0x104] sm:$0xff]  ;;  %v3702_v12 = vsel %vm7051_vm6, %v3697_v45, %v3701_v8 }
 0x35a   : > { %v4092_v34 = vrot.slane %v9232_v38, 6  ;;  %v6534_v50 = vld [vmem:[#allocation5 + $0xf4] ss:$20 sps:$4 sm:$0xff]   ;;  %3912 = vst [vmem:[#allocation5 + $0x134] sm:$0xf] %v3866_v24  ;;  %v3715_v19 = vrot.slane %v3713_v20, 4  ;;  %v5709_v37 = vcombine.low %v4351_v5, %v4354_v27 }
 0x35b   : > { %v3719_v48 = vshll.u32 %v3537_v21, 16  ;;  %3773 = vst [vmem:[#allocation5 + $0x130] sm:$0xf] %v3702_v12  ;;  %v4103_v3 = vor.u32 %v4102_v58, %v4099_v54  ;;  %v3706_v59 = vor.u32 %v3705_v35, %v3701_v8  ;;  %v3711_v36 = vrot.slane %v3709_v26, 5  ;;  %5035 = vmatprep.mubr.bf16.mxu1 %v6534_v50  ;;  %v3935_v10 = vld [vmem:[#allocation4 + $0x48] sm:$0xf] }
 0x35c   : > { %v4093_v14 = vor.u32 %v4092_v34, %v4089_v1  ;;  %v3723_v46 = vshrl.u32 %v3537_v21, 16  ;;  %5036 = vmatmul.mubr.bf16.gmra.mxu1 %v5709_v37  ;;  %v3867_v20 = vrot.slane %v3865_v61, 4  ;;  %v3868_v17 = vrot.slane %v3795_v52, 5  ;;  %v3538_v32 = vld [vmem:[#allocation4 + $0x4c] sm:$0x7] }
 0x35d   : > { %v3721_v7 = vrot.slane %v3719_v48, 5  ;;  %v3707_v15 = vrot.slane %v3706_v59, 4  ;;  %v3716_v11 = vor.u32 %v3715_v19, %v3711_v36  ;;  %v3871_v23 = vrot.slane %v3796_v25, 5  ;;  %v6541_v55 = vld [vmem:[#allocation5 + $0xf8] ss:$20 sps:$4 sm:$0xff]  }
 0x35e   : > { %v4094_v63 = vsel %vm7160_vm10, %v4085_v43, %v4093_v14  ;;  %v4095_v62 = vrot.slane %v4093_v14, 4  ;;  %v4105_v40 = vrot.slane %v4103_v3, 4  ;;  %v4109_v47 = vrot.slane %v4107_v28, 5  ;;  %v6537_v18 = vld [vmem:[#allocation5 + $0xfc] ss:$20 sps:$4 sm:$0xff]  }
 0x35f   : > { %4170 = vst [vmem:[#allocation5 + $0x124] sm:$0xf] %v4094_v63  ;;  %v4357_v33 = vld [vmem:[#allocation5 + $0x118] sm:$0xff]  ;;  %v3712_v22 = vsel %vm7051_vm6, %v3707_v15, %v3711_v36  ;;  %v3717_v42 = vrot.slane %v3716_v11, 4  ;;  %v3869_v56 = vsel %vm6835_vm11, %v3867_v20, %v3868_v17  ;;  %v3870_v2 = vrot.slane %v3868_v17, 4  ;;  %5148 = vmatprep.mubr.bf16.mxu0 %v6537_v18 }
 0x360   : > { %v4104_v57 = vsel %vm7160_vm10, %v4095_v62, %v4103_v3  ;;  %3774 = vst [vmem:[#allocation5 + $0x144] sm:$0xf] %v3712_v22  ;;  %3913 = vst [vmem:[#allocation5 + $0x148] sm:$0xf] %v3869_v56  ;;  %v4112_v8 = vrot.slane %v4110_v41, 6  ;;  %v4117_v61 = vshrl.u32 %v3935_v10, 16  ;;  %5149 = vmatmul.mubr.bf16.gmra.mxu0 %v6541_v55 }
 0x361   : > { %4171 = vst [vmem:[#allocation5 + $0x138] sm:$0xf] %v4104_v57  ;;  %v4120_v28 = vshll.u32 %v3935_v10, 16  ;;  %v3725_v44 = vrot.slane %v3723_v46, 4  ;;  %v3936_v1 = vld [vmem:[#allocation4 + $0x4c] sm:$0xf]  ;;  %v3722_v39 = vsel %vm7051_vm6, %v3717_v42, %v3721_v7  ;;  %v3872_v30 = vsel %vm6835_vm11, %v3870_v2, %v3871_v23 }
 0x362   : > { %v3729_v0 = vshll.u32 %v3538_v32, 16  ;;  %v3733_v16 = vshrl.u32 %v3538_v32, 16  ;;  %v3797_v53 = vld [vmem:[#allocation4 + $0x4c] sm:$0x7]  ;;  %v4360_v21 = vld [vmem:[#allocation5 + $0x12c] sm:$0xff]  ;;  %v4113_v51 = vor.u32 %v4112_v8, %v4109_v47  ;;  %v4119_v41 = vrot.slane %v4117_v61, 5 }
 0x363   : > { %v6539_v9 = vld [vmem:[#allocation5 + $0x11c] ss:$20 sps:$4 sm:$0xff]   ;;  %3775 = vst [vmem:[#allocation5 + $0x158] sm:$0xf] %v3722_v39  ;;  %3914 = vst [vmem:[#allocation5 + $0x15c] sm:$0xf] %v3872_v30  ;;  %v3726_v43 = vor.u32 %v3725_v44, %v3721_v7  ;;  %v5714_v38 = vcombine.low %v4357_v33, %v4360_v21 }
 0x364   : > { %v4122_v45 = vrot.slane %v4120_v28, 6  ;;  %v3731_v34 = vrot.slane %v3729_v0, 5  ;;  %v3735_v54 = vrot.slane %v3733_v16, 4  ;;  %v3873_v24 = vrot.slane %v3871_v23, 4  ;;  %v4177_v58 = vld [vmem:[#allocation4 + $0x4] sm:$0xf]  ;;  %5043 = vmatprep.mubr.bf16.mxu1 %v6539_v9 }
 0x365   : > { %v4178_v35 = vld [vmem:[#allocation4 + $0x8] sm:$0xf]  ;;  %v4114_v26 = vsel %vm7160_vm10, %v4105_v40, %v4113_v51  ;;  %v4115_v52 = vrot.slane %v4113_v51, 4  ;;  %v3727_v27 = vrot.slane %v3726_v43, 4  ;;  %v4181_v50 = vld [vmem:[#allocation4 + $0x14] sm:$0xf]  ;;  %5044 = vmatmul.mubr.bf16.gmra.mxu1 %v5714_v38 }
 0x366   : > { %v4123_v5 = vor.u32 %v4122_v45, %v4119_v41  ;;  %4172 = vst [vmem:[#allocation5 + $0x14c] sm:$0xf] %v4114_v26  ;;  %v3736_v12 = vor.u32 %v3735_v54, %v3731_v34  ;;  %v3874_v14 = vrot.slane %v3797_v53, 5  ;;  %v4127_v19 = vshrl.u32 %v3936_v1, 16  ;;  %v4182_v37 = vld [vmem:[#allocation4 + $0x18] sm:$0xf] }
 0x367   : > { %v4130_v48 = vshll.u32 %v3936_v1, 16  ;;  %v3732_v36 = vsel %vm7051_vm6, %v3727_v27, %v3731_v34  ;;  %v4183_v63 = vld [vmem:[#allocation4 + $0x1c] sm:$0xf]  ;;  %v6547_v62 = vld [vmem:[#allocation5 + $0x120] ss:$20 sps:$4 sm:$0xff]   ;;  %v4218_v17 = vrot.slane %v4177_v58, 6 }
 0x368   : > { %v6543_v3 = vld [vmem:[#allocation5 + $0x124] ss:$20 sps:$4 sm:$0xff]   ;;  %v4124_v59 = vsel %vm7160_vm10, %v4115_v52, %v4123_v5  ;;  %v4125_v25 = vrot.slane %v4123_v5, 4  ;;  %v3737_v7 = vrot.slane %v3736_v12, 4  ;;  %3776 = vst [vmem:[#allocation5 + $0x16c] sm:$0xf] %v3732_v36  ;;  %v3875_v46 = vsel %vm6835_vm11, %v3873_v24, %v3874_v14 }
 0x369   : > { %4173 = vst [vmem:[#allocation5 + $0x160] sm:$0xf] %v4124_v59  ;;  %v3876_v10 = vrot.slane %v3874_v14, 4  ;;  %v4129_v15 = vrot.slane %v4127_v19, 5  ;;  %5156 = vmatprep.mubr.bf16.mxu0 %v6543_v3  ;;  %v4363_v11 = vld [vmem:[#allocation5 + $0x140] sm:$0xff]  ;;  %v4132_v20 = vrot.slane %v4130_v48, 6 }
 0x36a   : > { %3915 = vst [vmem:[#allocation5 + $0x170] sm:$0xf] %v3875_v46  ;;  %v4221_v57 = vrot.slane %v4178_v35, 6  ;;  %v9233_v13 = vrot.slane %v8228_v60, 6  ;;  %v4184_v40 = vld [vmem:[#allocation4 + $0x20] sm:$0xf]  ;;  %5157 = vmatmul.mubr.bf16.gmra.mxu0 %v6547_v62 }
 0x36b   : > { %v4366_v47 = vld [vmem:[#allocation5 + $0x154] sm:$0xff]  ;;  %3777 = vst [vmem:[#allocation5 + $0x180] sm:$0x3] %v3737_v7  ;;  %3916 = vst [vmem:[#allocation5 + $0x184] sm:$0x3] %v3876_v10  ;;  %v4230_v18 = vrot.slane %v4181_v50, 6  ;;  %v4133_v42 = vor.u32 %v4132_v20, %v4129_v15 }
 0x36c   : > { %v4229_v23 = vrot.slane %v9233_v13, 4  ;;  %v6545_v32 = vld [vmem:[#allocation5 + $0x144] ss:$20 sps:$4 sm:$0xff]   ;;  %v4233_v33 = vrot.slane %v4182_v37, 6  ;;  %v4236_v6 = vrot.slane %v4183_v63, 6  ;;  %v5719_v22 = vcombine.low %v4363_v11, %v4366_v47 }
 0x36d   : > { %v9234_v56 = vrot.slane %v8160_v31, 10  ;;  %v4220_v55 = vrot.slane %v4218_v17, 4  ;;  %v4185_v8 = vld [vmem:[#allocation4 + $0x24] sm:$0xf]  ;;  %v4187_v60 = vld [vmem:[#allocation4 + $0x2c] sm:$0xf]  ;;  %5051 = vmatprep.mubr.bf16.mxu1 %v6545_v32  ;;  %v4134_v30 = vsel %vm7160_vm10, %v4125_v25, %v4133_v42 }
 0x36e   : > { %v4223_v61 = vrot.slane %v4221_v57, 4  ;;  %v4231_v28 = vsel %vm7105_vm9, %v4229_v23, %v4230_v18  ;;  %v4232_v44 = vrot.slane %v4230_v18, 4  ;;  %v4235_v1 = vrot.slane %v4233_v33, 4  ;;  %v4186_v39 = vld [vmem:[#allocation4 + $0x28] sm:$0xf]  ;;  %5052 = vmatmul.mubr.bf16.gmra.mxu1 %v5719_v22 }
 0x36f   : > { %v4219_v2 = vsel %vm7105_vm9, %v9234_v56, %v4218_v17  ;;  %v4135_v0 = vrot.slane %v4133_v42, 4  ;;  %v4222_v31 = vsel %vm7105_vm9, %v4220_v55, %v4221_v57  ;;  %4299 = vst [vmem:[#allocation5 + $0x60] sm:$0xf] %v4231_v28  ;;  %v4238_v16 = vrot.slane %v4236_v6, 4  ;;  %v4188_v53 = vld [vmem:[#allocation4 + $0x30] sm:$0xf] }
 0x370   : > { %4295 = vst [vmem:[#allocation5 + $0x10] sm:$0xf] %v4219_v2  ;;  %4174 = vst [vmem:[#allocation5 + $0x174] sm:$0xf] %v4134_v30  ;;  %v9235_v21 = vrot.slane %v8179_v49, 6  ;;  %v4234_v51 = vsel %vm7105_vm9, %v4232_v44, %v4233_v33  ;;  %v4237_v29 = vsel %vm7105_vm9, %v4235_v1, %v4236_v6  ;;  %v4239_v41 = vrot.slane %v4184_v40, 6 }
 0x371   : > { %4296 = vst [vmem:[#allocation5 + $0x24] sm:$0xf] %v4222_v31  ;;  %v4189_v45 = vld [vmem:[#allocation4 + $0x34] sm:$0xf]  ;;  %v4190_v43 = vld [vmem:[#allocation4 + $0x38] sm:$0xf] }
 0x372   : > { %v4225_v9 = vsel %vm7105_vm9, %v4223_v61, %v9235_v21  ;;  %v6548_v38 = vld [vmem:[#allocation5 + $0x14c] ss:$20 sps:$4 sm:$0xff]   ;;  %4175 = vst [vmem:[#allocation5 + $0x188] sm:$0x3] %v4135_v0  ;;  %4300 = vst [vmem:[#allocation5 + $0x74] sm:$0xf] %v4234_v51  ;;  %v4240_v26 = vsel %vm7105_vm9, %v4238_v16, %v4239_v41 }
 0x373   : > { %v4369_v34 = vld [vmem:[#allocation5 + $0x168] sm:$0xff]  ;;  %4297 = vst [vmem:[#allocation5 + $0x38] sm:$0xf] %v4225_v9  ;;  %4301 = vst [vmem:[#allocation5 + $0x88] sm:$0xf] %v4237_v29  ;;  %v4242_v54 = vrot.slane %v4185_v8, 6  ;;  %5164 = vmatprep.mubr.bf16.mxu0 %v6548_v38 }
 0x374   : > { %v4245_v49 = vrot.slane %v4186_v39, 6  ;;  %v4191_v24 = vld [vmem:[#allocation4 + $0x3c] sm:$0xf]  ;;  %v4192_v58 = vld [vmem:[#allocation4 + $0x40] sm:$0xf]  ;;  %v4241_v52 = vrot.slane %v4239_v41, 4 }
 0x375   : > { %v6553_v35 = vld [vmem:[#allocation5 + $0x148] ss:$20 sps:$4 sm:$0xff]   ;;  %v4248_v5 = vrot.slane %v4187_v60, 6  ;;  %v4251_v27 = vrot.slane %v4188_v53, 6  ;;  %4302 = vst [vmem:[#allocation5 + $0x9c] sm:$0xf] %v4240_v26 }
 0x376   : > { %v4372_v50 = vld [vmem:[#allocation5 + $0x17c] sm:$0x33]  ;;  %v4244_v14 = vrot.slane %v4242_v54, 4  ;;  %v4243_v48 = vsel %vm7105_vm9, %v4241_v52, %v4242_v54  ;;  %v4247_v37 = vrot.slane %v4245_v49, 4  ;;  %5165 = vmatmul.mubr.bf16.gmra.mxu0 %v6553_v35  ;;  %v4254_v25 = vrot.slane %v4189_v45, 6 }
 0x377   : > { %v6551_v12 = vld [vmem:[#allocation5 + $0x16c] ss:$20 sps:$4 sm:$0x3f]   ;;  %v5724_v19 = vcombine.low %v4369_v34, %v4372_v50  ;;  %v4250_v3 = vrot.slane %v4248_v5, 4  ;;  %4303 = vst [vmem:[#allocation5 + $0xb0] sm:$0xf] %v4243_v48 }
 0x378   : > { %5059 = vmatprep.mubr.bf16.mxu1 %v6551_v12  ;;  %v4246_v59 = vsel %vm7105_vm9, %v4244_v14, %v4245_v49  ;;  %v4253_v36 = vrot.slane %v4251_v27, 4  ;;  %v4257_v63 = vrot.slane %v4190_v43, 6  ;;  %v4249_v62 = vsel %vm7105_vm9, %v4247_v37, %v4248_v5  ;;  %v6558_v15 = vld [vmem:[#allocation5 + $0x10] ss:$20 sps:$4 sm:$0xff]   ;;  %v4193_v17 = vld [vmem:[#allocation4 + $0x44] sm:$0xf] }
 0x379   : > { %4304 = vst [vmem:[#allocation5 + $0xc4] sm:$0xf] %v4246_v59  ;;  %v4252_v7 = vsel %vm7105_vm9, %v4250_v3, %v4251_v27  ;;  %v4260_v46 = vrot.slane %v4191_v24, 6  ;;  %v4263_v10 = vrot.slane %v4192_v58, 6  ;;  %4305 = vst [vmem:[#allocation5 + $0xd8] sm:$0xf] %v4249_v62  ;;  %5060 = vmatmul.mubr.bf16.gmra.mxu1 %v5724_v19 }
 0x37a   : > { %4306 = vst [vmem:[#allocation5 + $0xec] sm:$0xf] %v4252_v7  ;;  %v4255_v11 = vsel %vm7105_vm9, %v4253_v36, %v4254_v25  ;;  %v4256_v20 = vrot.slane %v4254_v25, 4  ;;  %v4194_v57 = vld [vmem:[#allocation4 + $0x48] sm:$0xf]  ;;  %v4259_v23 = vrot.slane %v4257_v63, 4  ;;  %6306 = vmatprep.mubr.bf16.mxu1 %v6558_v15 }
 0x37b   : > { %v6554_v13 = vld [vmem:[#allocation5 + $0x174] ss:$20 sps:$4 sm:$0x3f]   ;;  %4307 = vst [vmem:[#allocation5 + $0x100] sm:$0xf] %v4255_v11  ;;  %v4262_v47 = vrot.slane %v4260_v46, 4 }
 0x37c   : > { %v4258_v40 = vsel %vm7105_vm9, %v4256_v20, %v4257_v63  ;;  %v4195_v32 = vld [vmem:[#allocation4 + $0x4c] sm:$0xf]  ;;  %5172 = vmatprep.mubr.bf16.mxu0 %v6554_v13  ;;  %v6557_v18 = vld [vmem:[#allocation5 + $0x170] ss:$20 sps:$4 sm:$0x3f]   ;;  %v4261_v33 = vsel %vm7105_vm9, %v4259_v23, %v4260_v46  ;;  %v4265_v22 = vrot.slane %v4263_v10, 4 }
 0x37d   : > { %4308 = vst [vmem:[#allocation5 + $0x114] sm:$0xf] %v4258_v40  ;;  %v4264_v6 = vsel %vm7105_vm9, %v4262_v47, %v4263_v10  ;;  %4309 = vst [vmem:[#allocation5 + $0x128] sm:$0xf] %v4261_v33  ;;  %v4266_v42 = vrot.slane %v4193_v17, 6  ;;  %v4269_v56 = vrot.slane %v4194_v57, 6 }
 0x37e   : > { %4310 = vst [vmem:[#allocation5 + $0x13c] sm:$0xf] %v4264_v6  ;;  %v4272_v2 = vrot.slane %v4195_v32, 6  ;;  %5173 = vmatmul.mubr.bf16.gmra.mxu0 %v6557_v18  ;;  %v6559_v55 = vld [vmem:[#allocation5 + $0x38] ss:$20 sps:$4 sm:$0xff]  }
 0x37f   : > { %v6560_v8 = vld [vmem:[#allocation5 + $0x60] ss:$20 sps:$4 sm:$0xff]   ;;  %v4267_v60 = vsel %vm7105_vm9, %v4265_v22, %v4266_v42  ;;  %v4268_v61 = vrot.slane %v4266_v42, 4  ;;  %v4271_v28 = vrot.slane %v4269_v56, 4  ;;  %v6561_v30 = vld [vmem:[#allocation5 + $0x88] ss:$20 sps:$4 sm:$0xff]  }
 0x380   : > { %4311 = vst [vmem:[#allocation5 + $0x150] sm:$0xf] %v4267_v60  ;;  %v4274_v44 = vrot.slane %v4272_v2, 4  ;;  %v6562_v0 = vld [vmem:[#allocation5 + $0xb0] ss:$20 sps:$4 sm:$0xff]  }
 0x381   : > { %6307 = vmatmul.mubr.bf16.vlgmr.msra.gmra.mxu1 %v6559_v55  ;;  %v4270_v1 = vsel %vm7105_vm9, %v4268_v61, %v4269_v56  ;;  %v4273_v39 = vsel %vm7105_vm9, %v4271_v28, %v4272_v2  ;;  %v6563_v31 = vld [vmem:[#allocation5 + $0xd8] ss:$20 sps:$4 sm:$0xff]  }
 0x382   : > { %6310 = vmatprep.mubr.bf16.mxu1 %v6560_v8  ;;  %4314 = vst [vmem:[#allocation5 + $0x18c] sm:$0x3] %v4274_v44  ;;  %4312 = vst [vmem:[#allocation5 + $0x164] sm:$0xf] %v4270_v1 }
 0x383   : > { %4313 = vst [vmem:[#allocation5 + $0x178] sm:$0xf] %v4273_v39 }
 0x384   : > { %v6564_v16 = vld [vmem:[#allocation5 + $0x100] ss:$20 sps:$4 sm:$0xff]  }
 0x385   : > { %v6565_v53 = vld [vmem:[#allocation5 + $0x128] ss:$20 sps:$4 sm:$0xff]  }
 0x389   : > { %6311 = vmatmul.mubr.bf16.gmra.mxu1 %v6561_v30  ;;  %v6566_v21 = vld [vmem:[#allocation5 + $0x150] ss:$20 sps:$4 sm:$0xff]  }
 0x38a   : > { %6314 = vmatprep.mubr.bf16.mxu1 %v6562_v0  ;;  %v6567_v9 = vld [vmem:[#allocation5 + $0x178] ss:$20 sps:$4 sm:$0x3f]  }
 0x391   : > { %6315 = vmatmul.mubr.bf16.gmra.mxu1 %v6563_v31 }
 0x392   : > { %6318 = vmatprep.mubr.bf16.mxu1 %v6564_v16 }
 0x399   : > { %6319 = vmatmul.mubr.bf16.gmra.mxu1 %v6565_v53 }
 0x39a   : > { %6322 = vmatprep.mubr.bf16.mxu1 %v6566_v21 }
 0x3a1   : > { %6323 = vmatmul.mubr.bf16.gmra.mxu1 %v6567_v9 }
 0x3dc   : > { %v6060_v51 = vpop.f32.mrf.mxu1 }
 0x3de   : > { %v6061_v4 = vpop.f32.mrf.mxu1 }
 0x3df   : > { %v8691_v29 = vadd.f32 %v6061_v4, %v6060_v51 }
 0x3e0   : > { %v6063_v41 = vpop.f32.mrf.mxu1 }
 0x3e2   : > { %v6064_v45 = vpop.f32.mrf.mxu1 }
 0x3e3   : > { %v8693_v43 = vadd.f32 %v6064_v45, %v6063_v41 }
 0x3e8   : > { %v8695_v38 = vpop.f32.mrf.mxu0 }
 0x3ea   : > { %v8697_v34 = vpop.f32.mrf.mxu0 }
 0x3ec   : > { %v8699_v54 = vpop.f32.mrf.mxu0 }
 0x3ed   : > { %v6066_v49 = vpop.f32.mrf.mxu1 }
 0x3ee   : > { %v8701_v24 = vpop.f32.mrf.mxu0 }
 0x3ef   : > { %v6067_v58 = vpop.f32.mrf.mxu1 }
 0x3f0   : > { %v8703_v35 = vadd.f32 %v6067_v58, %v6066_v49 }
 0x3f1   : > { %v6142_v26 = vpop.f32.mrf.mxu0  ;;  %v6069_v52 = vpop.f32.mrf.mxu1 }
 0x3f3   : > { %v6143_v5 = vpop.f32.mrf.mxu0  ;;  %v6070_v27 = vpop.f32.mrf.mxu1 }
 0x3f4   : > { %v8705_v50 = vadd.f32 %v6070_v27, %v6069_v52 }
 0x3f5   : > { %v6145_v12 = vpop.f32.mrf.mxu0 }
 0x3f7   : > { %v6072_v14 = vpop.f32.mrf.mxu1  ;;  %v6146_v19 = vpop.f32.mrf.mxu0 }
 0x3f9   : > { %v6073_v48 = vpop.f32.mrf.mxu1 }
 0x3fa   : > { %v8707_v37 = vadd.f32 %v6073_v48, %v6072_v14 }
 0x3fb   : > { %v6075_v3 = vpop.f32.mrf.mxu1 }
 0x3fc   : > { %v8709_v59 = vpop.f32.mrf.mxu0 }
 0x3fd   : > { %v6076_v36 = vpop.f32.mrf.mxu1 }
 0x3fe   : > { %v8711_v25 = vpop.f32.mrf.mxu0  ;;  %v8713_v63 = vadd.f32 %v6076_v36, %v6075_v3  ;;  %v6144_v36 = vadd.f32 %v6143_v5, %v6142_v26  ;;  %v8816_v26 = vld [vmem:[%s9010_s7] ss:$0 sm:$0xff]  ;;  %v6141_v5 = vadd.f32 %v8701_v24, %v8699_v54 }
 0x400   : > { %v8715_v7 = vpop.f32.mrf.mxu0 }
 0x401   : > { %v6078_v62 = vpop.f32.mrf.mxu1 }
 0x402   : > { %v8717_v10 = vpop.f32.mrf.mxu0 }
 0x403   : > { %v6079_v46 = vpop.f32.mrf.mxu1 }
 0x405   : > { %v8719_v15 = vpop.f32.mrf.mxu1  ;;  %v6154_v11 = vpop.f32.mrf.mxu0 }
 0x407   : > { %v8721_v20 = vpop.f32.mrf.mxu1  ;;  %v6155_v17 = vpop.f32.mrf.mxu0 }
 0x409   : > { %v8725_v13 = vpop.f32.mrf.mxu0 }
 0x40a   : > { %v8723_v57 = vpop.f32.mrf.mxu1 }
 0x40b   : > { %v8729_v40 = vpop.f32.mrf.mxu0 }
 0x40c   : > { %v8727_v23 = vpop.f32.mrf.mxu1 }
 0x40e   : > { %v8731_v47 = vpop.f32.mrf.mxu1 }
 0x40f   : > { %v8733_v32 = vpop.f32.mrf.mxu0 }
 0x410   : > { %v8735_v18 = vpop.f32.mrf.mxu1 }
 0x411   : > { %v8737_v33 = vpop.f32.mrf.mxu0 }
 0x413   : > { %v8739_v6 = vpop.f32.mrf.mxu1  ;;  %v8741_v22 = vpop.f32.mrf.mxu0 }
 0x415   : > { %v8743_v42 = vpop.f32.mrf.mxu1  ;;  %v8745_v56 = vpop.f32.mrf.mxu0 }
 0x417   : > { %v8747_v2 = vpop.f32.mrf.mxu1 }
 0x418   : > { %v8749_v55 = vpop.f32.mrf.mxu0 }
 0x419   : > { %v8751_v8 = vpop.f32.mrf.mxu1 }
 0x41a   : > { %v8753_v60 = vpop.f32.mrf.mxu0 }
 0x41c   : > { %v8755_v61 = vpop.f32.mrf.mxu1  ;;  %v8757_v28 = vpop.f32.mrf.mxu0 }
 0x41e   : > { %v8759_v44 = vpop.f32.mrf.mxu1  ;;  %v8761_v1 = vpop.f32.mrf.mxu0 }
 0x420   : > { %v8763_v39 = vpop.f32.mrf.mxu1  ;;  %v8765_v30 = vpop.f32.mrf.mxu0 }
 0x422   : > { %v8767_v0 = vpop.f32.mrf.mxu1  ;;  %v8769_v31 = vpop.f32.mrf.mxu0 }
 0x423   : > { %9236 = vst [vmem:[#allocation23_spill] sm:$0xff] %v8767_v0 }
 0x424   : > { %v8773_v53 = vpop.f32.mrf.mxu0 }
 0x425   : > { %v8771_v16 = vpop.f32.mrf.mxu1  ;;  %9237 = vst [vmem:[#allocation19_spill] sm:$0xff] %v8773_v53 }
 0x426   : > { %v8777_v9 = vpop.f32.mrf.mxu0 }
 0x427   : > { %v8775_v21 = vpop.f32.mrf.mxu1  ;;  %9238 = vst [vmem:[#allocation27_spill] sm:$0xff] %v8777_v9 }
 0x429   : > { %v8779_v51 = vpop.f32.mrf.mxu1 }
 0x42a   : > { %v8783_v41 = vpop.f32.mrf.mxu0 }
 0x42b   : > { %v8781_v4 = vpop.f32.mrf.mxu1 }
 0x42c   : > { %v8789_v58 = vpop.f32.mrf.mxu0 }
 0x42e   : > { %v8785_v45 = vpop.f32.mrf.mxu1  ;;  %v8795_v14 = vpop.f32.mrf.mxu0 }
 0x42f   : > { %9239 = vst [vmem:[#allocation24_spill] sm:$0xff] %v8785_v45 }
 0x430   : > { %v8787_v49 = vpop.f32.mrf.mxu1  ;;  %v8801_v9 = vpop.f32.mrf.mxu0 }
 0x431   : > { %9240 = vst [vmem:[#allocation25_spill] sm:$0xff] %v8787_v49  ;;  %v6138_v49 = vadd.f32 %v8697_v34, %v8695_v38  ;;  %v6080_v34 = vadd.f32 %v6079_v46, %v6078_v62 }
 0x432   : > { %v8791_v52 = vpop.f32.mrf.mxu1 }
 0x433   : > { %9241 = vst [vmem:[#allocation28_spill] sm:$0xff] %v8791_v52  ;;  %v6147_v52 = vadd.f32 %v6146_v19, %v6145_v12  ;;  %v5103_v38 = vadd.f32 %v6138_v49, %v8691_v29  ;;  %v8824_v12 = vld [vmem:[%s9011_s8] ss:$0 sm:$0xff]  ;;  %v6150_v29 = vadd.f32 %v8711_v25, %v8709_v59  ;;  %v6083_v49 = vadd.f32 %v8721_v20, %v8719_v15 }
 0x434   : > { %v8793_v27 = vpop.f32.mrf.mxu1 }
 0x435   : > { %9242 = vst [vmem:[#allocation29_spill] sm:$0xff] %v8793_v27  ;;  %v5111_v27 = vadd.f32 %v6144_v36, %v8703_v35  ;;  %v5114_v54 = vadd.f32 %v6147_v52, %v8705_v50 }
 0x436   : > { %v8809_v0 = vpop.f32.mrf.mxu0 }
 0x437   : > { %9246 = vst [vmem:[#allocation33_spill] sm:$0xff] %v8809_v0 }
 0x438   : > { %v8826_v19 = vpop.f32.mrf.mxu0 }
 0x439   : > { %v8797_v48 = vpop.f32.mrf.mxu1 }
 0x43a   : > { %9243 = vst [vmem:[#allocation26_spill] sm:$0xff] %v8797_v48  ;;  %v8841_v50 = vpop.f32.mrf.mxu0 }
 0x43b   : > { %v8799_v3 = vpop.f32.mrf.mxu1 }
 0x43d   : > { %v8803_v53 = vpop.f32.mrf.mxu1 }
 0x43e   : > { %9244 = vst [vmem:[#allocation31_spill] sm:$0xff] %v8803_v53 }
 0x43f   : > { %v8807_v45 = vpop.f32.mrf.mxu1 }
 0x440   : > { %9245 = vst [vmem:[#allocation30_spill] sm:$0xff] %v8807_v45  ;;  %v6156_v45 = vadd.f32 %v6155_v17, %v6154_v11  ;;  %v5106_v17 = vadd.f32 %v6141_v5, %v8693_v43  ;;  %v5119_v5 = vadd.f32 %v6150_v29, %v8707_v37 }
 0x441   : > { %v6308_v48 = vpop.f32.mrf.mxu1 }
 0x442   : > { %v5224_v53 = vadd.f32 %v6308_v48, %v5111_v27  ;;  %v5127_v48 = vadd.f32 %v6156_v45, %v6080_v34  ;;  %v6092_v45 = vadd.f32 %v8743_v42, %v8739_v6  ;;  %v8857_v34 = vpop.f32.mrf.mxu0  ;;  %v6162_v6 = vadd.f32 %v8737_v33, %v8733_v32 }
 0x443   : > { %v5215_v35 = vpop.f32.mrf.mxu1 }
 0x444   : > { %v5303_v36 = vmul.f32 %v8816_v26, %v5224_v53  ;;  %v5216_v0 = vadd.f32 %v5215_v35, %v5103_v38  ;;  %v6159_v53 = vadd.f32 %v8729_v40, %v8725_v13  ;;  %v6190_v32 = vpop.f32.mrf.mxu0 }
 0x445   : > { %v6309_v24 = vpop.f32.mrf.mxu1 }
 0x446   : > { %v5330_v62 = vadd.f32 %v8824_v12, %v5303_v36  ;;  %v5301_v46 = vmul.f32 %v8816_v26, %v5216_v0  ;;  %v5227_v11 = vadd.f32 %v6309_v24, %v5114_v54  ;;  %v6153_v0 = vadd.f32 %v8717_v10, %v8715_v7 }
 0x447   : > { %v5218_v27 = vpop.f32.mrf.mxu1  ;;  %v6168_v7 = vadd.f32 %v8753_v60, %v8749_v55  ;;  %v5130_v37 = vadd.f32 %v6159_v53, %v6083_v49  ;;  %v6086_v24 = vadd.f32 %v8727_v23, %v8723_v57  ;;  %v6171_v57 = vadd.f32 %v8761_v1, %v8757_v28 }
 0x448   : > { %v5350_v52 = vmax.f32 %v5330_v62, 0.0  ;;  %v5328_v59 = vadd.f32 %v8824_v12, %v5301_v46  ;;  %v5304_v25 = vmul.f32 %v8816_v26, %v5227_v11  ;;  %v5219_v38 = vadd.f32 %v5218_v27, %v5106_v17 }
 0x449   : > { %v6312_v43 = vpop.f32.mrf.mxu1  ;;  %v5122_v55 = vadd.f32 %v6153_v0, %v8713_v63  ;;  %v6095_v17 = vadd.f32 %v8751_v8, %v8747_v2  ;;  %v5143_v49 = vadd.f32 %v6168_v7, %v6092_v45  ;;  %v6165_v2 = vadd.f32 %v8745_v56, %v8741_v22 }
 0x44a   : > { %5771 = vst [vmem:[%s8848_s24 + $0xc] sm:$0xf0] %v5350_v52  ;;  %v5348_v15 = vmax.f32 %v5328_v59, 0.0  ;;  %v5331_v20 = vadd.f32 %v8824_v12, %v5304_v25  ;;  %v5302_v13 = vmul.f32 %v8816_v26, %v5219_v38  ;;  %v5240_v40 = vadd.f32 %v6312_v43, %v5127_v48  ;;  %v6191_v43 = vpop.f32.mrf.mxu0 }
 0x44b   : > { %v5231_v10 = vpop.f32.mrf.mxu1  ;;  %v6089_v48 = vadd.f32 %v8735_v18, %v8731_v47  ;;  %v5135_v52 = vadd.f32 %v6162_v6, %v6086_v24  ;;  %v6104_v38 = vadd.f32 %v8775_v21, %v8771_v16  ;;  %v6180_v0 = vadd.f32 %v8789_v58, %v8783_v41  ;;  %v9248_v24 = vld [vmem:[#allocation19_spill] sm:$0xff] }
 0x44c   : > { %5368 = vst [vmem:[%s8848_s24] sm:$0xff] %v5348_v15  ;;  %v5351_v35 = vmax.f32 %v5331_v20, 0.0  ;;  %v5329_v36 = vadd.f32 %v8824_v12, %v5302_v13  ;;  %v5307_v54 = vmul.f32 %v8816_v26, %v5240_v40  ;;  %v5232_v29 = vadd.f32 %v5231_v10, %v5119_v5  ;;  %v9249_v6 = vld [vmem:[#allocation27_spill] sm:$0xff] }
 0x44d   : > { %v6313_v42 = vpop.f32.mrf.mxu1  ;;  %v5146_v18 = vadd.f32 %v6171_v57, %v6095_v17  ;;  %v6098_v20 = vadd.f32 %v8759_v44, %v8755_v61  ;;  %v6174_v16 = vadd.f32 %v8769_v31, %v8765_v30  ;;  %v5138_v13 = vadd.f32 %v6165_v2, %v6089_v48  ;;  %v9253_v2 = vld [vmem:[#allocation33_spill] sm:$0xff] }
 0x44e   : > { %5772 = vst [vmem:[%s8848_s24 + $0x14] sm:$0xff] %v5351_v35  ;;  %v5349_v60 = vmax.f32 %v5329_v36, 0.0  ;;  %v5334_v62 = vadd.f32 %v8824_v12, %v5307_v54  ;;  %v5305_v46 = vmul.f32 %v8816_v26, %v5232_v29  ;;  %v5243_v11 = vadd.f32 %v6313_v42, %v5130_v37  ;;  %v6193_v37 = vpop.f32.mrf.mxu0  ;;  %v9247_v54 = vld [vmem:[#allocation23_spill] sm:$0xff] }
 0x44f   : > { %v5234_v23 = vpop.f32.mrf.mxu1  ;;  %v6107_v7 = vadd.f32 %v8781_v4, %v8779_v51  ;;  %v6183_v10 = vadd.f32 %v8801_v9, %v8795_v14  ;;  %v5159_v44 = vadd.f32 %v6180_v0, %v6104_v38  ;;  %v6101_v29 = vadd.f32 %v9247_v54, %v8763_v39  ;;  %v9255_v38 = vld [vmem:[#allocation30_spill] sm:$0xff] }
 0x450   : > { %5369 = vst [vmem:[%s8848_s24 + $0x8] sm:$0xff] %v5349_v60  ;;  %v5354_v33 = vmax.f32 %v5334_v62, 0.0  ;;  %v5332_v63 = vadd.f32 %v8824_v12, %v5305_v46  ;;  %v5308_v53 = vmul.f32 %v8816_v26, %v5243_v11  ;;  %v5235_v27 = vadd.f32 %v5234_v23, %v5122_v55  ;;  %v9250_v62 = vld [vmem:[#allocation26_spill] sm:$0xff]  ;;  %v6194_v39 = vpop.f32.mrf.mxu0 }
 0x451   : > { %v6316_v8 = vpop.f32.mrf.mxu1  ;;  %v6177_v51 = vadd.f32 %v9249_v6, %v9248_v24  ;;  %v5151_v42 = vadd.f32 %v6174_v16, %v6098_v20  ;;  %v6116_v46 = vadd.f32 %v8799_v3, %v9250_v62  ;;  %v6192_v11 = vadd.f32 %v6191_v43, %v6190_v32  ;;  %v9257_v20 = vld [vmem:[#allocation29_spill] sm:$0xff] }
 0x452   : > { %5775 = vst [vmem:[%s8848_s24 + $0x28] sm:$0xff] %v5354_v33  ;;  %v5352_v28 = vmax.f32 %v5332_v63, 0.0  ;;  %v5335_v1 = vadd.f32 %v8824_v12, %v5308_v53  ;;  %v5306_v59 = vmul.f32 %v8816_v26, %v5235_v27  ;;  %v5256_v25 = vadd.f32 %v6316_v8, %v5143_v49  ;;  %v9251_v53 = vld [vmem:[#allocation24_spill] sm:$0xff]  ;;  %v9252_v27 = vld [vmem:[#allocation25_spill] sm:$0xff] }
 0x453   : > { %v5247_v47 = vpop.f32.mrf.mxu1  ;;  %v5162_v57 = vadd.f32 %v6183_v10, %v6107_v7  ;;  %v6110_v48 = vadd.f32 %v9252_v27, %v9251_v53  ;;  %v6186_v8 = vadd.f32 %v8826_v19, %v9253_v2  ;;  %v5154_v3 = vadd.f32 %v6177_v51, %v6101_v29 }
 0x454   : > { %5773 = vst [vmem:[%s8848_s24 + $0x1c] sm:$0xf] %v5352_v28  ;;  %v5355_v22 = vmax.f32 %v5335_v1, 0.0  ;;  %v5333_v56 = vadd.f32 %v8824_v12, %v5306_v59  ;;  %v5311_v5 = vmul.f32 %v8816_v26, %v5256_v25  ;;  %v5248_v15 = vadd.f32 %v5247_v47, %v5135_v52  ;;  %v9254_v25 = vld [vmem:[#allocation31_spill] sm:$0xff] }
 0x455   : > { %v6317_v21 = vpop.f32.mrf.mxu1  ;;  %v6119_v0 = vadd.f32 %v9255_v38, %v9254_v25  ;;  %v6195_v47 = vadd.f32 %v6194_v39, %v6193_v37  ;;  %v5175_v43 = vadd.f32 %v6192_v11, %v6116_v46 }
 0x456   : > { %5776 = vst [vmem:[%s8848_s24 + $0x2c] sm:$0xf0] %v5355_v22  ;;  %v5353_v41 = vmax.f32 %v5333_v56, 0.0  ;;  %v5338_v58 = vadd.f32 %v8824_v12, %v5311_v5  ;;  %v5309_v40 = vmul.f32 %v8816_v26, %v5248_v15  ;;  %v5259_v45 = vadd.f32 %v6317_v21, %v5146_v18  ;;  %v9256_v15 = vld [vmem:[#allocation28_spill] sm:$0xff] }
 0x457   : > { %v5250_v61 = vpop.f32.mrf.mxu1  ;;  %v6113_v16 = vadd.f32 %v9257_v20, %v9256_v15  ;;  %v6189_v21 = vadd.f32 %v8857_v34, %v8841_v50 }
 0x458   : > { %5774 = vst [vmem:[%s8848_s24 + $0x20] sm:$0xff] %v5353_v41  ;;  %v5358_v30 = vmax.f32 %v5338_v58, 0.0  ;;  %v5336_v31 = vadd.f32 %v8824_v12, %v5309_v40  ;;  %v5312_v35 = vmul.f32 %v8816_v26, %v5259_v45  ;;  %v5251_v36 = vadd.f32 %v5250_v61, %v5138_v13 }
 0x459   : > { %v6320_v4 = vpop.f32.mrf.mxu1  ;;  %v5167_v41 = vadd.f32 %v6186_v8, %v6110_v48  ;;  %v5178_v61 = vadd.f32 %v6195_v47, %v6119_v0 }
 0x45a   : > { %5779 = vst [vmem:[%s8848_s24 + $0x40] sm:$0xff] %v5358_v30  ;;  %v5356_v9 = vmax.f32 %v5336_v31, 0.0  ;;  %v5339_v14 = vadd.f32 %v8824_v12, %v5312_v35  ;;  %v5310_v55 = vmul.f32 %v8816_v26, %v5251_v36  ;;  %v5272_v60 = vadd.f32 %v6320_v4, %v5159_v44 }
 0x45b   : > { %v5263_v17 = vpop.f32.mrf.mxu1  ;;  %v5170_v31 = vadd.f32 %v6189_v21, %v6113_v16 }
 0x45c   : > { %5777 = vst [vmem:[%s8848_s24 + $0x34] sm:$0xff] %v5356_v9  ;;  %v5359_v23 = vmax.f32 %v5339_v14, 0.0  ;;  %v5337_v49 = vadd.f32 %v8824_v12, %v5310_v55  ;;  %v5315_v33 = vmul.f32 %v8816_v26, %v5272_v60  ;;  %v5264_v63 = vadd.f32 %v5263_v17, %v5151_v42 }
 0x45d   : > { %v6321_v52 = vpop.f32.mrf.mxu1 }
 0x45e   : > { %5780 = vst [vmem:[%s8848_s24 + $0x48] sm:$0xff] %v5359_v23  ;;  %v5357_v32 = vmax.f32 %v5337_v49, 0.0  ;;  %v5342_v28 = vadd.f32 %v8824_v12, %v5315_v33  ;;  %v5313_v1 = vmul.f32 %v8816_v26, %v5264_v63  ;;  %v5275_v59 = vadd.f32 %v6321_v52, %v5162_v57 }
 0x45f   : > { %v5266_v18 = vpop.f32.mrf.mxu1 }
 0x460   : > { %5778 = vst [vmem:[%s8848_s24 + $0x3c] sm:$0xf] %v5357_v32  ;;  %v5362_v22 = vmax.f32 %v5342_v28, 0.0  ;;  %v5340_v19 = vadd.f32 %v8824_v12, %v5313_v1  ;;  %v5316_v56 = vmul.f32 %v8816_v26, %v5275_v59  ;;  %v5267_v5 = vadd.f32 %v5266_v18, %v5154_v3 }
 0x461   : > { %v6324_v13 = vpop.f32.mrf.mxu1 }
 0x462   : > { %5783 = vst [vmem:[%s8848_s24 + $0x5c] sm:$0xf] %v5362_v22  ;;  %v5360_v58 = vmax.f32 %v5340_v19, 0.0  ;;  %v5343_v40 = vadd.f32 %v8824_v12, %v5316_v56  ;;  %v5314_v45 = vmul.f32 %v8816_v26, %v5267_v5  ;;  %v5288_v7 = vadd.f32 %v6324_v13, %v5175_v43 }
 0x463   : > { %v5279_v10 = vpop.f32.mrf.mxu1 }
 0x464   : > { %5781 = vst [vmem:[%s8848_s24 + $0x4c] sm:$0xf0] %v5360_v58  ;;  %v5363_v44 = vmax.f32 %v5343_v40, 0.0  ;;  %v5341_v37 = vadd.f32 %v8824_v12, %v5314_v45  ;;  %v5319_v50 = vmul.f32 %v8816_v26, %v5288_v7  ;;  %v5280_v34 = vadd.f32 %v5279_v10, %v5167_v41 }
 0x465   : > { %v6325_v30 = vpop.f32.mrf.mxu1 }
 0x466   : > { %5784 = vst [vmem:[%s8848_s24 + $0x60] sm:$0xff] %v5363_v44  ;;  %v5361_v35 = vmax.f32 %v5341_v37, 0.0  ;;  %v5346_v36 = vadd.f32 %v8824_v12, %v5319_v50  ;;  %v5317_v54 = vmul.f32 %v8816_v26, %v5280_v34  ;;  %v5291_v29 = vadd.f32 %v6325_v30, %v5178_v61 }
 0x467   : > { %v5282_v24 = vpop.f32.mrf.mxu1 }
 0x468   : > { %5782 = vst [vmem:[%s8848_s24 + $0x54] sm:$0xff] %v5361_v35  ;;  %v5366_v6 = vmax.f32 %v5346_v36, 0.0  ;;  %v5344_v51 = vadd.f32 %v8824_v12, %v5317_v54  ;;  %v5320_v4 = vmul.f32 %v8816_v26, %v5291_v29  ;;  %v5283_v42 = vadd.f32 %v5282_v24, %v5170_v31 }
 0x46a   : > { %5787 = vst [vmem:[%s8848_s24 + $0x74] sm:$0xff] %v5366_v6  ;;  %v5364_v9 = vmax.f32 %v5344_v51, 0.0  ;;  %v5347_v14 = vadd.f32 %v8824_v12, %v5320_v4  ;;  %v5318_v55 = vmul.f32 %v8816_v26, %v5283_v42 }
 0x46c   : > { %5785 = vst [vmem:[%s8848_s24 + $0x68] sm:$0xff] %v5364_v9  ;;  %v5367_v60 = vmax.f32 %v5347_v14, 0.0  ;;  %v5345_v62 = vadd.f32 %v8824_v12, %v5318_v55 }
 0x46e   : > { %5788 = vst [vmem:[%s8848_s24 + $0x7c] sm:$0xf] %v5367_v60  ;;  %v5365_v46 = vmax.f32 %v5345_v62, 0.0 }
 0x470   : > { %5786 = vst [vmem:[%s8848_s24 + $0x6c] sm:$0xf0] %v5365_v46 }
 0x471   : > { %6581 = shalt.err (!%p6578_p3)
}
 0x472   : > { %s6582_s27 = scalar_lea.hbm %s8955_s29, 2048  ;;  %s6586_s21 = scalar_lea.hbm %s9012_s9, 4096 }
 0x473   : > { %p6583_p4 = scmp.ne.s32.totalorder %s8955_s29, %s6582_s27  ;;  %p6587_p9 = scmp.lt.s32.totalorder %s8955_s29, %s9012_s9 }
 0x474   : > { %p6588_p10 = scmp.lt.s32.totalorder %s6586_s21, %s6582_s27 }
 0x475   : > { %p6584_p7 = pnand %p6583_p4, %p6723_p5 }
 0x476   : > { %p6589_p11 = por %p6588_p10, %p6587_p9 }
 0x477   : > { %p6585_p8 = pneg %p6584_p7 }
 0x479   : > { %p6590_p12 = pnand %p6589_p11, %p6585_p8 }
 0x47b   : > { %6593 = shalt.err (!%p6590_p12)
}
 0x47c   : > { %s6633_s28 = smov 128   ;;  %s6634_s14 = smov 8  }
 0x47d   : > { %6326 = dma.vmem_to_hbm [thread:$0]  (%p6723_p5), %s8957_s25, 2048, %s8955_s29, %s8963_s13, %s6633_s28, %s6633_s28, %s6634_s14  }
 0x47e PF: > { %p6332_p13 = scmp.ge.s32.totalorder %s6628_s12, 2  ;;  %s5425_s16 = sand.u32 1, %s6616_s30  }
 0x47f   : > { %s5426_s17 = scalar_lea.sflag [#allocation7], %s5425_s16 }
 0x480   : > { %p6329_p0 = pnand %p6332_p13, %p6727_p6 }
 0x482   : > { %p6330_p1 = pneg %p6329_p0 }
 0x484   : > { %6611 = dma.done.wait (%p6330_p1), %s5426_s17, 2048  }
 0x485   : > { %6613 = vsyncadd (%p6330_p1), %s5426_s17, 4294965248  ;;  %p19_p2 = scmp.ge.s32.totalorder %s6710_s15, 4   ;;  %s9258_s30 = smov %s6620_s10 }
 0x486   : > { %s9259_s10 = smov %s6624_s11  ;;  %s9260_s11 = smov %s6721_s18 }
 0x487   : > { %s9261_s12 = smov %s6710_s15  ;;  %21 = sbr.rel (!%p19_p2) target bundleno = 3 (0x3), region = 115 }
 0x48c   :  { %5431 = vsyncpa [#allocation7], 1 }
 0x48d   :  { %5433 = vsyncpa [#allocation7 + $0x1], 1 }

</bundles_post_ra>
